<compile_context>
chip_gen: v7x
topology: tpu7x:2x2x1
jax: 0.10.0
libtpu: 0.0.40
codegen_flags: <defaults>
</compile_context>

<pallas_src>
from collections import OrderedDict

import jax
import jax.numpy as jnp
from jax.experimental import pallas as pl
from jax.experimental.pallas import tpu as pltpu

# ----------------------------- config ---------------------------------------
NUM_STUFF = 4
NUM_THING = 4
NUM_CLASSES = NUM_STUFF + NUM_THING
HIDDEN = 32
NUM_ANCHORS = 3
TOPK_PROPOSALS = 4

# transformer scale-1 packed output slab (kernel A): [bev1 | vf | pad] lanes
BEV_LO, BEV_HI = 0, HIDDEN
VF_LO, VF_HI = HIDDEN, HIDDEN + 3
TX_N = 128

# RPN + heads packed output slab (kernel C) lane layout
OBJ_LO, OBJ_HI = 0, NUM_ANCHORS
BBX_LO, BBX_HI = OBJ_HI, OBJ_HI + 4 * NUM_ANCHORS
VREG_COL = 16
FREG_COL = 17
MSK_LO, MSK_HI = 18, 18 + NUM_THING
SEM_LO, SEM_HI = MSK_HI, MSK_HI + NUM_CLASSES
PO_LO, PO_HI = SEM_HI, SEM_HI + NUM_CLASSES
SEM_AM_LANE = 120            # low-res semantic argmax, stored as exact small-int f32
PO_AM_LANE = 121             # low-res panoptic argmax
SLAB_N = 128

# Scoped VMEM: 48 MiB is safe on v7x (64 MiB physical) and leaves headroom on
# v5e/v6e (128 MiB physical).  All blocks here are tiny anyway.
_VMEM_LIMIT = 48 * 1024 * 1024


# ------------------------ XLA-side layout helpers ----------------------------
def space_to_depth2_pad(x):
    """NHWC (B,H,W,C) -> (B, H/2+1, W/2+1, 4C): 2x2 space-to-depth plus a zero
    top/left halo.  A 3x3/stride-2 conv over x becomes a 2x2/stride-1 conv over
    this tensor (4 shifted MXU taps in-kernel).  Bytes == input bytes (no 9x
    im2col blow-up)."""
    B, H, W, C = x.shape
    x = x.reshape(B, H // 2, 2, W // 2, 2, C)
    x = x.transpose(0, 1, 3, 2, 4, 5).reshape(B, H // 2, W // 2, 4 * C)
    return jnp.pad(x, ((0, 0), (1, 0), (1, 0), (0, 0)))


def repack_conv_s2(w, cin):
    """(9*Cin, Cout) tap-major 3x3/stride-2 weights -> (4, 4*Cin, Cout) taps of
    the equivalent 2x2/stride-1 conv over the space-to-depth input (out-of-window
    taps are zero)."""
    cout = w.shape[1]
    w9 = w.reshape(3, 3, cin, cout)
    w2 = jnp.zeros((2, 2, 2, 2, cin, cout), w.dtype)
    for ty in range(2):
        for p in range(2):
            dy = 2 * ty + p - 1
            if not 0 <= dy <= 2:
                continue
            for tx in range(2):
                for q in range(2):
                    dx = 2 * tx + q - 1
                    if not 0 <= dx <= 2:
                        continue
                    w2 = w2.at[ty, tx, p, q].set(w9[dy, dx])
    return w2.reshape(4, 4 * cin, cout)


def nearest_up_nhwc(x, r):
    """Nearest upsample (B,h,w,C) -> (B,h*r,w*r,C) as one broadcast (no chained repeats)."""
    B, h, w, C = x.shape
    x = jnp.broadcast_to(x[:, :, None, :, None, :], (B, h, r, w, r, C))
    return x.reshape(B, h * r, w * r, C)


def nearest_up_hw(x, r):
    B, h, w = x.shape
    x = jnp.broadcast_to(x[:, :, None, :, None], (B, h, r, w, r))
    return x.reshape(B, h * r, w * r)


# --------------------------- Pallas kernels ----------------------------------
def _body1_tx1_kernel(x_ref, w1_ref, b1_ref, cond_ref, wp_ref, bp_ref,
                      f1_ref, bevp_ref, vf_ref):
    """Body stage-1 conv (3x3 / stride-2) fused with transformer scale-1."""
    _, Ho, Wo, Cmid = f1_ref.shape
    # 4 shifted taps over the space-to-depth input, accumulated in f32.
    acc = jnp.zeros((Ho * Wo, Cmid), jnp.float32)
    for t in range(4):
        ty, tx = t // 2, t % 2
        patch = x_ref[0, ty:ty + Ho, tx:tx + Wo, :]
        acc += jnp.dot(patch.reshape(Ho * Wo, -1), w1_ref[t],
                       preferred_element_type=jnp.float32)
    f1 = jnp.maximum(acc + b1_ref[...], 0.0)
    f1_ref[0] = f1.reshape(Ho, Wo, Cmid).astype(f1_ref.dtype)

    # Transformer scale-1: single packed matmul (f1 + cond) @ [W_bev | W_vf];
    # the vf lanes' bias already subtracts cond @ W_vf (per batch).
    fc = (f1 + cond_ref[0]).astype(jnp.bfloat16)
    slab = jnp.dot(fc, wp_ref[...], preferred_element_type=jnp.float32) + bp_ref[0]
    lane = jax.lax.broadcasted_iota(jnp.int32, slab.shape, 1)
    slab = jnp.where(lane < BEV_HI, jnp.maximum(slab, 0.0), slab)  # ReLU on bev lanes only

    # Emit bev1 already zero-halo-padded so the RPN 3x3 conv needs no XLA pad.
    bev1 = slab[:, BEV_LO:BEV_HI].reshape(Ho, Wo, Cmid).astype(bevp_ref.dtype)
    bevp_ref[...] = jnp.zeros_like(bevp_ref)
    bevp_ref[0, 1:Ho + 1, 1:Wo + 1, :] = bev1
    vf_ref[0] = slab[:, VF_LO:VF_HI].reshape(Ho, Wo, VF_HI - VF_LO)


def _body2_tx2_kernel(x_ref, w2_ref, b2_ref, cond_ref, wb_ref, bb_ref, wr_ref, br_ref,
                      bev2_ref, reg2_ref):
    """Body stage-2 conv fused with transformer scale-2; f2 never leaves VMEM."""
    _, Ho, Wo, Cmid = bev2_ref.shape
    acc = jnp.zeros((Ho * Wo, Cmid), jnp.float32)
    for t in range(4):
        ty, tx = t // 2, t % 2
        patch = x_ref[0, ty:ty + Ho, tx:tx + Wo, :]
        acc += jnp.dot(patch.reshape(Ho * Wo, -1), w2_ref[t],
                       preferred_element_type=jnp.float32)
    f2 = jnp.maximum(acc + b2_ref[...], 0.0)                       # stays in VMEM
    fc = (f2 + cond_ref[0]).astype(jnp.bfloat16)
    bev2 = jnp.maximum(
        jnp.dot(fc, wb_ref[...], preferred_element_type=jnp.float32) + bb_ref[...], 0.0)
    bev2_ref[0] = bev2.reshape(Ho, Wo, Cmid).astype(bev2_ref.dtype)
    reg2 = jnp.dot(bev2.astype(jnp.bfloat16), wr_ref[...],
                   preferred_element_type=jnp.float32) + br_ref[...]
    reg2_ref[0] = reg2.reshape(Ho, Wo, 2)


def _rpn_heads_kernel(bevp_ref, wr1_ref, br1_ref, wr2_ref, wh_ref, bp_ref,
                      slab_ref, pool_ref):
    """RPN 3x3 conv + obj/bbx heads + all bev1 heads + pooled feature — bev1 is
    read once from its zero-bordered VMEM block; everything lands in one
    lane-dense 128-wide slab (argmaxes packed into spare lanes)."""
    _, Ho, Wo, _ = slab_ref.shape
    C = bevp_ref.shape[-1]

    acc = jnp.zeros((Ho * Wo, HIDDEN), jnp.float32)
    for t in range(9):
        dy, dx = t // 3, t % 3
        patch = bevp_ref[0, dy:dy + Ho, dx:dx + Wo, :]
        acc += jnp.dot(patch.reshape(Ho * Wo, C), wr1_ref[t],
                       preferred_element_type=jnp.float32)
    h = jnp.maximum(acc + br1_ref[...], 0.0).astype(jnp.bfloat16)
    # The heads' input is exactly the center tap, already resident in VMEM.
    center = bevp_ref[0, 1:1 + Ho, 1:1 + Wo, :].reshape(Ho * Wo, C)

    slab = (jnp.dot(h, wr2_ref[...], preferred_element_type=jnp.float32)
            + jnp.dot(center, wh_ref[...], preferred_element_type=jnp.float32)
            + bp_ref[...])

    lane = jax.lax.broadcasted_iota(jnp.int32, slab.shape, 1)      # built once, reused
    neg = jnp.finfo(jnp.float32).min

    def masked_argmax(lo, hi):
        v = jnp.where((lane >= lo) & (lane < hi), slab, neg)
        m = jnp.max(v, axis=-1, keepdims=True)
        cand = jnp.where(v == m, lane, SLAB_N)                     # first index achieving max
        return (jnp.min(cand, axis=-1, keepdims=True) - lo).astype(jnp.float32)

    sem_am = masked_argmax(SEM_LO, SEM_HI)
    po_am = masked_argmax(PO_LO, PO_HI)
    slab = jnp.where(lane == SEM_AM_LANE, sem_am, slab)
    slab = jnp.where(lane == PO_AM_LANE, po_am, slab)
    slab_ref[0] = slab.reshape(Ho, Wo, SLAB_N)

    # Pooled bev1 feature for the ROI classifier (avoids an XLA re-read of bev1).
    pool_ref[0] = jnp.sum(center.astype(jnp.float32), axis=0, keepdims=True) / (Ho * Wo)


# ------------------------------ wrappers --------------------------------------
def body1_transformer1(img_nhwc, w_conv1, b_conv1, cond, w_bev1, b_bev1, w_vf, b_vf):
    B, H, W, Cin = img_nhwc.shape
    Ho, Wo = H // 2, W // 2
    x = space_to_depth2_pad(img_nhwc).astype(jnp.bfloat16)          # (B, Ho+1, Wo+1, 4Cin)
    w1 = repack_conv_s2(w_conv1, Cin).astype(jnp.bfloat16)          # (4, 4Cin, HIDDEN)
    b1 = b_conv1.reshape(1, HIDDEN).astype(jnp.float32)

    wp = jnp.zeros((HIDDEN, TX_N), jnp.float32)
    wp = wp.at[:, BEV_LO:BEV_HI].set(w_bev1).at[:, VF_LO:VF_HI].set(w_vf)
    bp = jnp.zeros((B, 1, TX_N), jnp.float32)
    bp = bp.at[:, 0, BEV_LO:BEV_HI].set(b_bev1)
    bp = bp.at[:, 0, VF_LO:VF_HI].set(b_vf - cond @ w_vf)           # per-batch vf correction
    cond3 = cond.reshape(B, 1, HIDDEN).astype(jnp.float32)

    return pl.pallas_call(
        _body1_tx1_kernel,
        out_shape=(jax.ShapeDtypeStruct((B, Ho, Wo, HIDDEN), jnp.bfloat16),
                   jax.ShapeDtypeStruct((B, Ho + 2, Wo + 2, HIDDEN), jnp.bfloat16),
                   jax.ShapeDtypeStruct((B, Ho, Wo, 3), jnp.float32)),
        grid=(B,),
        in_specs=[
            pl.BlockSpec((1, Ho + 1, Wo + 1, 4 * Cin), lambda b: (b, 0, 0, 0)),
            pl.BlockSpec((4, 4 * Cin, HIDDEN), lambda b: (0, 0, 0)),
            pl.BlockSpec((1, HIDDEN), lambda b: (0, 0)),
            pl.BlockSpec((1, 1, HIDDEN), lambda b: (b, 0, 0)),
            pl.BlockSpec((HIDDEN, TX_N), lambda b: (0, 0)),
            pl.BlockSpec((1, 1, TX_N), lambda b: (b, 0, 0)),
        ],
        out_specs=(pl.BlockSpec((1, Ho, Wo, HIDDEN), lambda b: (b, 0, 0, 0)),
                   pl.BlockSpec((1, Ho + 2, Wo + 2, HIDDEN), lambda b: (b, 0, 0, 0)),
                   pl.BlockSpec((1, Ho, Wo, 3), lambda b: (b, 0, 0, 0))),
        compiler_params=pltpu.CompilerParams(
            dimension_semantics=("parallel",), vmem_limit_bytes=_VMEM_LIMIT),
    )(x, w1, b1, cond3, wp.astype(jnp.bfloat16), bp)


def body2_transformer2(f1, cond, w_conv2, b_conv2, w_bev2, b_bev2,
                       w_vreg, b_vreg, w_freg, b_freg):
    B, H1, W1, C = f1.shape
    Ho, Wo = H1 // 2, W1 // 2
    x = space_to_depth2_pad(f1)                                     # bf16, (B, Ho+1, Wo+1, 4C)
    w2 = repack_conv_s2(w_conv2, C).astype(jnp.bfloat16)
    b2 = b_conv2.reshape(1, HIDDEN).astype(jnp.float32)
    cond3 = cond.reshape(B, 1, HIDDEN).astype(jnp.float32)
    wb = w_bev2.astype(jnp.bfloat16)
    bb = b_bev2.reshape(1, HIDDEN).astype(jnp.float32)
    wr = jnp.concatenate([w_vreg, w_freg], axis=1).astype(jnp.bfloat16)   # (HIDDEN, 2)
    br = jnp.stack([b_vreg[0], b_freg[0]]).reshape(1, 2).astype(jnp.float32)

    return pl.pallas_call(
        _body2_tx2_kernel,
        out_shape=(jax.ShapeDtypeStruct((B, Ho, Wo, HIDDEN), jnp.bfloat16),
                   jax.ShapeDtypeStruct((B, Ho, Wo, 2), jnp.float32)),
        grid=(B,),
        in_specs=[
            pl.BlockSpec((1, Ho + 1, Wo + 1, 4 * C), lambda b: (b, 0, 0, 0)),
            pl.BlockSpec((4, 4 * C, HIDDEN), lambda b: (0, 0, 0)),
            pl.BlockSpec((1, HIDDEN), lambda b: (0, 0)),
            pl.BlockSpec((1, 1, HIDDEN), lambda b: (b, 0, 0)),
            pl.BlockSpec((HIDDEN, HIDDEN), lambda b: (0, 0)),
            pl.BlockSpec((1, HIDDEN), lambda b: (0, 0)),
            pl.BlockSpec((HIDDEN, 2), lambda b: (0, 0)),
            pl.BlockSpec((1, 2), lambda b: (0, 0)),
        ],
        out_specs=(pl.BlockSpec((1, Ho, Wo, HIDDEN), lambda b: (b, 0, 0, 0)),
                   pl.BlockSpec((1, Ho, Wo, 2), lambda b: (b, 0, 0, 0))),
        compiler_params=pltpu.CompilerParams(
            dimension_semantics=("parallel",), vmem_limit_bytes=_VMEM_LIMIT),
    )(x, w2, b2, cond3, wb, bb, wr, br)


def rpn_and_heads(bev1_pad, w_rpn1, b_rpn1, w_obj, b_obj, w_bbx, b_bbx,
                  w_vreg, b_vreg, w_freg, b_freg, w_msk, b_msk, w_sem, b_sem):
    B, Hp, Wp, C = bev1_pad.shape
    Ho, Wo = Hp - 2, Wp - 2
    wr1 = w_rpn1.reshape(3, 3, C, HIDDEN).reshape(9, C, HIDDEN).astype(jnp.bfloat16)
    br1 = b_rpn1.reshape(1, HIDDEN).astype(jnp.float32)

    wr2 = jnp.zeros((HIDDEN, SLAB_N), jnp.float32)
    wr2 = wr2.at[:, OBJ_LO:OBJ_HI].set(w_obj).at[:, BBX_LO:BBX_HI].set(w_bbx)

    # Panoptic fusion folded into extra weight columns: po = sem + pad(msk).
    w_po = w_sem + jnp.pad(w_msk, ((0, 0), (NUM_STUFF, 0)))
    b_po = b_sem + jnp.pad(b_msk, (NUM_STUFF, 0))
    wh = jnp.zeros((C, SLAB_N), jnp.float32)
    wh = wh.at[:, VREG_COL:VREG_COL + 1].set(w_vreg)
    wh = wh.at[:, FREG_COL:FREG_COL + 1].set(w_freg)
    wh = wh.at[:, MSK_LO:MSK_HI].set(w_msk)
    wh = wh.at[:, SEM_LO:SEM_HI].set(w_sem)
    wh = wh.at[:, PO_LO:PO_HI].set(w_po)

    bp = jnp.zeros((SLAB_N,), jnp.float32)
    bp = bp.at[OBJ_LO:OBJ_HI].set(b_obj).at[BBX_LO:BBX_HI].set(b_bbx)
    bp = bp.at[VREG_COL].set(b_vreg[0]).at[FREG_COL].set(b_freg[0])
    bp = bp.at[MSK_LO:MSK_HI].set(b_msk).at[SEM_LO:SEM_HI].set(b_sem)
    bp = bp.at[PO_LO:PO_HI].set(b_po)

    return pl.pallas_call(
        _rpn_heads_kernel,
        out_shape=(jax.ShapeDtypeStruct((B, Ho, Wo, SLAB_N), jnp.float32),
                   jax.ShapeDtypeStruct((B, 1, HIDDEN), jnp.float32)),
        grid=(B,),
        in_specs=[
            pl.BlockSpec((1, Hp, Wp, C), lambda b: (b, 0, 0, 0)),
            pl.BlockSpec((9, C, HIDDEN), lambda b: (0, 0, 0)),
            pl.BlockSpec((1, HIDDEN), lambda b: (0, 0)),
            pl.BlockSpec((HIDDEN, SLAB_N), lambda b: (0, 0)),
            pl.BlockSpec((C, SLAB_N), lambda b: (0, 0)),
            pl.BlockSpec((1, SLAB_N), lambda b: (0, 0)),
        ],
        out_specs=(pl.BlockSpec((1, Ho, Wo, SLAB_N), lambda b: (b, 0, 0, 0)),
                   pl.BlockSpec((1, 1, HIDDEN), lambda b: (b, 0, 0))),
        compiler_params=pltpu.CompilerParams(
            dimension_semantics=("parallel",), vmem_limit_bytes=_VMEM_LIMIT),
    )(bev1_pad, wr1, br1, wr2.astype(jnp.bfloat16), wh.astype(jnp.bfloat16),
      bp.reshape(1, SLAB_N))


# --------------------------- parameters --------------------------------------
def init_params(key):
    def dense(k, k_in, k_out, scale=0.1):
        return (scale * jax.random.normal(k, (k_in, k_out), jnp.float32),
                jnp.zeros((k_out,), jnp.float32))

    ks = jax.random.split(key, 14)
    p = {}
    p["body_conv1"] = dense(ks[0], 9 * 3, HIDDEN)           # body stage 1 (3x3, s2)
    p["body_conv2"] = dense(ks[1], 9 * HIDDEN, HIDDEN)       # body stage 2 (3x3, s2)
    p["calib_mlp"] = dense(ks[2], 9, HIDDEN)                 # calib conditioning
    p["tx_bev1"] = dense(ks[3], HIDDEN, HIDDEN)              # transformer -> BEV s1
    p["tx_bev2"] = dense(ks[4], HIDDEN, HIDDEN)              # transformer -> BEV s2
    p["tx_vf"] = dense(ks[5], HIDDEN, 3)                     # vertical/flat/none
    p["tx_vreg"] = dense(ks[6], HIDDEN, 1)                   # vertical region
    p["tx_freg"] = dense(ks[7], HIDDEN, 1)                   # flat region
    p["rpn_conv"] = dense(ks[8], 9 * HIDDEN, HIDDEN)         # RPN shared conv
    p["rpn_obj"] = dense(ks[9], HIDDEN, NUM_ANCHORS)         # RPN objectness
    p["rpn_bbx"] = dense(ks[10], HIDDEN, 4 * NUM_ANCHORS)    # RPN box deltas
    p["roi_cls"] = dense(ks[11], HIDDEN, NUM_THING + 1)      # ROI classifier
    p["roi_msk"] = dense(ks[12], HIDDEN, NUM_THING)          # ROI mask logits
    p["sem_head"] = dense(ks[13], HIDDEN, NUM_CLASSES)       # semantic head
    return p


# --------------------------- forward pass ------------------------------------
def panoptic_bev_forward(params, img, calib, do_loss=False, do_prediction=True):
    """Prediction-path forward mirroring PanopticBevNet.forward (single view)."""
    result = OrderedDict()
    loss = OrderedDict()
    stats = OrderedDict()

    B, _, H, W = img.shape
    x = jnp.transpose(img, (0, 2, 3, 1))                     # NCHW -> NHWC

    # ---- calib conditioning: tiny M=B MLP, plain XLA -------------------------
    wc, bc = params["calib_mlp"]
    cond = jax.nn.relu(calib.reshape(B, 9) @ wc + bc)        # (B, HIDDEN)

    # ---- body stage 1 + transformer scale 1 (fused kernel A) -----------------
    f1, bev1_pad, vf_logits = body1_transformer1(
        x, *params["body_conv1"], cond, *params["tx_bev1"], *params["tx_vf"])

    # ---- body stage 2 + transformer scale 2 (fused kernel B; f2 stays in VMEM)
    bev2, reg2 = body2_transformer2(
        f1, cond, *params["body_conv2"], *params["tx_bev2"],
        *params["tx_vreg"], *params["tx_freg"])
    ms_bev = (bev1_pad, bev2)                                # multi-scale BEV features
    del ms_bev

    # ---- RPN + all bev1 heads + pooled feature (fused kernel C) --------------
    slab, pooled = rpn_and_heads(
        bev1_pad, *params["rpn_conv"], *params["rpn_obj"], *params["rpn_bbx"],
        *params["tx_vreg"], *params["tx_freg"], *params["roi_msk"], *params["sem_head"])

    obj_logits = slab[..., OBJ_LO:OBJ_HI]
    bbx_deltas = slab[..., BBX_LO:BBX_HI]
    obj_pred, top_idx = jax.lax.top_k(obj_logits.reshape(B, -1), TOPK_PROPOSALS)
    bbx_pred = jnp.take_along_axis(bbx_deltas.reshape(B, -1, 4),
                                   top_idx[:, :, None], axis=1)

    vf_logits_list = [vf_logits]
    v_region_logits_list = [slab[..., VREG_COL:VREG_COL + 1], reg2[..., 0:1]]
    f_region_logits_list = [slab[..., FREG_COL:FREG_COL + 1], reg2[..., 1:2]]
    roi_msk_logits = slab[..., MSK_LO:MSK_HI]
    sem_logits_lr = slab[..., SEM_LO:SEM_HI]
    sem_am = slab[..., SEM_AM_LANE].astype(jnp.int32)
    po_am = slab[..., PO_AM_LANE].astype(jnp.int32)

    # ---- ROI classifier: M=B matmul on the in-kernel pooled feature ----------
    # TODO(synk): the reference model uses ROI-align over top-k proposals; a
    # global pooled classifier is a semantic simplification.
    wr, br = params["roi_cls"]
    cls_pred = jnp.argmax(pooled[:, 0, :] @ wr + br, axis=-1).astype(jnp.int32)
    msk_pred = roi_msk_logits > 0.0                          # == sigmoid(x) > 0.5

    # ---- upsample via single broadcast (argmax commutes with nearest upsample)
    rep = H // sem_logits_lr.shape[1]
    sem_logits = nearest_up_nhwc(sem_logits_lr, rep)
    sem_pred = nearest_up_hw(sem_am, rep)
    po_pred_msk = nearest_up_hw(po_am, rep)
    po_class = cls_pred
    po_iscrowd = jnp.zeros((B, TOPK_PROPOSALS), jnp.int32)

    # TODO(synk): do_loss training path (prepare_inputs / make_vf_mask /
    # make_region_mask GT construction and the *_algo.training losses) and the
    # instance-aware panoptic fusion are not implemented; only the
    # inference/prediction semantics are reproduced.
    loss["obj_loss"] = None
    loss["bbx_loss"] = None
    loss["roi_cls_loss"] = None
    loss["roi_bbx_loss"] = None
    loss["roi_msk_loss"] = None
    loss["sem_loss"] = None
    loss["vf_loss"] = None
    loss["v_region_loss"] = None
    loss["f_region_loss"] = None
    loss["po_loss"] = None

    result["bbx_pred"] = bbx_pred
    result["cls_pred"] = cls_pred
    result["obj_pred"] = obj_pred
    result["msk_pred"] = msk_pred
    result["sem_pred"] = sem_pred
    result["sem_logits"] = sem_logits
    result["vf_logits"] = vf_logits_list
    result["v_region_logits"] = v_region_logits_list
    result["f_region_logits"] = f_region_logits_list
    result["po_pred"] = po_pred_msk
    result["po_class"] = po_class
    result["po_iscrowd"] = po_iscrowd

    stats["sem_conf"] = None
    return loss, result, stats


# ------------------------------ main ------------------------------------------
if __name__ == "__main__":
    key = jax.random.PRNGKey(0)
    k_img, k_calib = jax.random.split(key, 2)

    B, C, H, W = 2, 3, 16, 16
    img = jax.random.normal(k_img, (B, C, H, W), jnp.float32)      # NCHW like PyTorch
    calib = jax.random.normal(k_calib, (B, 3, 3), jnp.float32)     # camera intrinsics

    params = init_params(jax.random.PRNGKey(1))

    fwd = jax.jit(panoptic_bev_forward)
    loss, result, stats = fwd(params, img, calib)

    jax.tree_util.tree_map(
        lambda a: jax.block_until_ready(a) if hasattr(a, "block_until_ready") else a,
        (loss, result, stats),
    )

    assert result["sem_pred"].shape == (B, H, W)
    assert result["po_pred"].shape == (B, H, W)
    assert result["sem_logits"].shape == (B, H, W, NUM_CLASSES)
    assert result["bbx_pred"].shape == (B, TOPK_PROPOSALS, 4)
    assert result["obj_pred"].shape == (B, TOPK_PROPOSALS)
    assert result["msk_pred"].shape == (B, H // 2, W // 2, NUM_THING)
    assert result["vf_logits"][0].shape == (B, H // 2, W // 2, 3)
    assert result["v_region_logits"][0].shape == (B, H // 2, W // 2, 1)
    print("KERNEL_OK")
</pallas_src>

<mosaic_0001>
module attributes {stable_mosaic.version = 11 : i64} {
  func.func @_body1_tx1_kernel(%arg0: i32, %arg1: memref<1x9x9x12xbf16, #tpu.memory_space<vmem>>, %arg2: memref<4x12x32xbf16, #tpu.memory_space<vmem>>, %arg3: memref<1x32xf32, #tpu.memory_space<vmem>>, %arg4: memref<1x1x32xf32, #tpu.memory_space<vmem>>, %arg5: memref<32x128xbf16, #tpu.memory_space<vmem>>, %arg6: memref<1x1x128xf32, #tpu.memory_space<vmem>>, %arg7: memref<1x8x8x32xbf16, #tpu.memory_space<vmem>>, %arg8: memref<1x10x10x32xbf16, #tpu.memory_space<vmem>>, %arg9: memref<1x8x8x3xf32, #tpu.memory_space<vmem>>) attributes {dimension_semantics = [#tpu.dimension_semantics<parallel>], iteration_bounds = array<i64: 2>, scalar_prefetch = 0 : i64, scratch_operands = 0 : i64, tpu.core_type = #tpu.core_type<tc>, window_params = [{transform_indices = @transform_0, window_bounds = array<i64: 1, 9, 9, 12>}, {pipeline_mode = #tpu.pipeline_mode<synchronous>, transform_indices = @transform_1, window_bounds = array<i64: 4, 12, 32>}, {pipeline_mode = #tpu.pipeline_mode<synchronous>, transform_indices = @transform_2, window_bounds = array<i64: 1, 32>}, {transform_indices = @transform_3, window_bounds = array<i64: 1, 1, 32>}, {pipeline_mode = #tpu.pipeline_mode<synchronous>, transform_indices = @transform_4, window_bounds = array<i64: 32, 128>}, {transform_indices = @transform_5, window_bounds = array<i64: 1, 1, 128>}, {transform_indices = @transform_6, window_bounds = array<i64: 1, 8, 8, 32>}, {transform_indices = @transform_7, window_bounds = array<i64: 1, 10, 10, 32>}, {transform_indices = @transform_8, window_bounds = array<i64: 1, 8, 8, 3>}]} {
    %cst = arith.constant 0.000000e+00 : f32
    %0 = vector.broadcast %cst : f32 to vector<64x32xf32>
    %c0 = arith.constant 0 : index
    %c0_0 = arith.constant 0 : index
    %c0_1 = arith.constant 0 : index
    %c0_2 = arith.constant 0 : index
    %1 = vector.load %arg1[%c0, %c0_0, %c0_1, %c0_2] : memref<1x9x9x12xbf16, #tpu.memory_space<vmem>>, vector<1x8x8x12xbf16>
    %2 = vector.shape_cast %1 : vector<1x8x8x12xbf16> to vector<8x8x12xbf16>
    %3 = vector.shape_cast %2 : vector<8x8x12xbf16> to vector<64x12xbf16>
    %c0_3 = arith.constant 0 : index
    %c0_4 = arith.constant 0 : index
    %c0_5 = arith.constant 0 : index
    %4 = vector.load %arg2[%c0_3, %c0_4, %c0_5] : memref<4x12x32xbf16, #tpu.memory_space<vmem>>, vector<1x12x32xbf16>
    %5 = vector.shape_cast %4 : vector<1x12x32xbf16> to vector<12x32xbf16>
    %cst_6 = arith.constant dense<0.000000e+00> : vector<64x32xf32>
    %6 = tpu.matmul %3, %5, %cst_6 {dimension_numbers = #tpu.dot_dimension_numbers<[1], [0], [0], [1], [0, 0, 1, 1], [], []>} : vector<64x12xbf16>, vector<12x32xbf16>, vector<64x32xf32> -> vector<64x32xf32>
    %7 = arith.addf %0, %6 : vector<64x32xf32>
    %c0_7 = arith.constant 0 : index
    %c0_8 = arith.constant 0 : index
    %c1 = arith.constant 1 : index
    %c0_9 = arith.constant 0 : index
    %8 = vector.load %arg1[%c0_7, %c0_8, %c1, %c0_9] : memref<1x9x9x12xbf16, #tpu.memory_space<vmem>>, vector<1x8x8x12xbf16>
    %9 = vector.shape_cast %8 : vector<1x8x8x12xbf16> to vector<8x8x12xbf16>
    %10 = vector.shape_cast %9 : vector<8x8x12xbf16> to vector<64x12xbf16>
    %c1_10 = arith.constant 1 : index
    %c0_11 = arith.constant 0 : index
    %c0_12 = arith.constant 0 : index
    %11 = vector.load %arg2[%c1_10, %c0_11, %c0_12] : memref<4x12x32xbf16, #tpu.memory_space<vmem>>, vector<1x12x32xbf16>
    %12 = vector.shape_cast %11 : vector<1x12x32xbf16> to vector<12x32xbf16>
    %cst_13 = arith.constant dense<0.000000e+00> : vector<64x32xf32>
    %13 = tpu.matmul %10, %12, %cst_13 {dimension_numbers = #tpu.dot_dimension_numbers<[1], [0], [0], [1], [0, 0, 1, 1], [], []>} : vector<64x12xbf16>, vector<12x32xbf16>, vector<64x32xf32> -> vector<64x32xf32>
    %14 = arith.addf %7, %13 : vector<64x32xf32>
    %c0_14 = arith.constant 0 : index
    %c1_15 = arith.constant 1 : index
    %c0_16 = arith.constant 0 : index
    %c0_17 = arith.constant 0 : index
    %15 = vector.load %arg1[%c0_14, %c1_15, %c0_16, %c0_17] : memref<1x9x9x12xbf16, #tpu.memory_space<vmem>>, vector<1x8x8x12xbf16>
    %16 = vector.shape_cast %15 : vector<1x8x8x12xbf16> to vector<8x8x12xbf16>
    %17 = vector.shape_cast %16 : vector<8x8x12xbf16> to vector<64x12xbf16>
    %c2 = arith.constant 2 : index
    %c0_18 = arith.constant 0 : index
    %c0_19 = arith.constant 0 : index
    %18 = vector.load %arg2[%c2, %c0_18, %c0_19] : memref<4x12x32xbf16, #tpu.memory_space<vmem>>, vector<1x12x32xbf16>
    %19 = vector.shape_cast %18 : vector<1x12x32xbf16> to vector<12x32xbf16>
    %cst_20 = arith.constant dense<0.000000e+00> : vector<64x32xf32>
    %20 = tpu.matmul %17, %19, %cst_20 {dimension_numbers = #tpu.dot_dimension_numbers<[1], [0], [0], [1], [0, 0, 1, 1], [], []>} : vector<64x12xbf16>, vector<12x32xbf16>, vector<64x32xf32> -> vector<64x32xf32>
    %21 = arith.addf %14, %20 : vector<64x32xf32>
    %c0_21 = arith.constant 0 : index
    %c1_22 = arith.constant 1 : index
    %c1_23 = arith.constant 1 : index
    %c0_24 = arith.constant 0 : index
    %22 = vector.load %arg1[%c0_21, %c1_22, %c1_23, %c0_24] : memref<1x9x9x12xbf16, #tpu.memory_space<vmem>>, vector<1x8x8x12xbf16>
    %23 = vector.shape_cast %22 : vector<1x8x8x12xbf16> to vector<8x8x12xbf16>
    %24 = vector.shape_cast %23 : vector<8x8x12xbf16> to vector<64x12xbf16>
    %c3 = arith.constant 3 : index
    %c0_25 = arith.constant 0 : index
    %c0_26 = arith.constant 0 : index
    %25 = vector.load %arg2[%c3, %c0_25, %c0_26] : memref<4x12x32xbf16, #tpu.memory_space<vmem>>, vector<1x12x32xbf16>
    %26 = vector.shape_cast %25 : vector<1x12x32xbf16> to vector<12x32xbf16>
    %cst_27 = arith.constant dense<0.000000e+00> : vector<64x32xf32>
    %27 = tpu.matmul %24, %26, %cst_27 {dimension_numbers = #tpu.dot_dimension_numbers<[1], [0], [0], [1], [0, 0, 1, 1], [], []>} : vector<64x12xbf16>, vector<12x32xbf16>, vector<64x32xf32> -> vector<64x32xf32>
    %28 = arith.addf %21, %27 : vector<64x32xf32>
    %c0_28 = arith.constant 0 : index
    %c0_29 = arith.constant 0 : index
    %29 = vector.load %arg3[%c0_28, %c0_29] : memref<1x32xf32, #tpu.memory_space<vmem>>, vector<1x32xf32>
    %30 = vector.broadcast %29 : vector<1x32xf32> to vector<64x32xf32>
    %31 = arith.addf %28, %30 : vector<64x32xf32>
    %cst_30 = arith.constant 0.000000e+00 : f32
    %32 = vector.broadcast %cst_30 : f32 to vector<64x32xf32>
    %33 = arith.maximumf %31, %32 : vector<64x32xf32>
    %34 = vector.shape_cast %33 : vector<64x32xf32> to vector<8x8x32xf32>
    %35 = arith.truncf %34 : vector<8x8x32xf32> to vector<8x8x32xbf16>
    %c0_31 = arith.constant 0 : index
    %c0_32 = arith.constant 0 : index
    %c0_33 = arith.constant 0 : index
    %c0_34 = arith.constant 0 : index
    %36 = vector.load %arg7[%c0_31, %c0_32, %c0_33, %c0_34] : memref<1x8x8x32xbf16, #tpu.memory_space<vmem>>, vector<1x8x8x32xbf16>
    %37 = vector.shape_cast %36 : vector<1x8x8x32xbf16> to vector<8x8x32xbf16>
    %38 = vector.shape_cast %35 : vector<8x8x32xbf16> to vector<1x8x8x32xbf16>
    tpu.vector_store %arg7[%c0_31, %c0_32, %c0_33, %c0_34], %38 {strides = array<i32>} : memref<1x8x8x32xbf16, #tpu.memory_space<vmem>>, vector<1x8x8x32xbf16>,
    %c0_35 = arith.constant 0 : index
    %c0_36 = arith.constant 0 : index
    %c0_37 = arith.constant 0 : index
    %39 = vector.load %arg4[%c0_35, %c0_36, %c0_37] : memref<1x1x32xf32, #tpu.memory_space<vmem>>, vector<1x1x32xf32>
    %40 = vector.shape_cast %39 : vector<1x1x32xf32> to vector<1x32xf32>
    %41 = vector.broadcast %40 : vector<1x32xf32> to vector<64x32xf32>
    %42 = arith.addf %33, %41 : vector<64x32xf32>
    %43 = arith.truncf %42 : vector<64x32xf32> to vector<64x32xbf16>
    %c0_38 = arith.constant 0 : index
    %c0_39 = arith.constant 0 : index
    %44 = vector.load %arg5[%c0_38, %c0_39] : memref<32x128xbf16, #tpu.memory_space<vmem>>, vector<32x128xbf16>
    %cst_40 = arith.constant dense<0.000000e+00> : vector<64x128xf32>
    %45 = tpu.matmul %43, %44, %cst_40 {dimension_numbers = #tpu.dot_dimension_numbers<[1], [0], [0], [1], [0, 0, 1, 1], [], []>} : vector<64x32xbf16>, vector<32x128xbf16>, vector<64x128xf32> -> vector<64x128xf32>
    %c0_41 = arith.constant 0 : index
    %c0_42 = arith.constant 0 : index
    %c0_43 = arith.constant 0 : index
    %46 = vector.load %arg6[%c0_41, %c0_42, %c0_43] : memref<1x1x128xf32, #tpu.memory_space<vmem>>, vector<1x1x128xf32>
    %47 = vector.shape_cast %46 : vector<1x1x128xf32> to vector<1x128xf32>
    %48 = vector.broadcast %47 : vector<1x128xf32> to vector<64x128xf32>
    %49 = arith.addf %45, %48 : vector<64x128xf32>
    %50 = tpu.iota {dimensions = array<i32: 1>} : vector<64x128xi32>
    %c32_i32 = arith.constant 32 : i32
    %51 = vector.broadcast %c32_i32 : i32 to vector<64x128xi32>
    %52 = arith.cmpi slt, %50, %51 : vector<64x128xi32>
    %cst_44 = arith.constant 0.000000e+00 : f32
    %53 = vector.broadcast %cst_44 : f32 to vector<64x128xf32>
    %54 = arith.maximumf %49, %53 : vector<64x128xf32>
    %55 = arith.select %52, %54, %49 : vector<64x128xi1>, vector<64x128xf32>
    %56 = vector.extract_strided_slice %55 {offsets = [0, 0], sizes = [64, 32], strides = [1, 1]} : vector<64x128xf32> to vector<64x32xf32>
    %57 = vector.shape_cast %56 : vector<64x32xf32> to vector<8x8x32xf32>
    %58 = arith.truncf %57 : vector<8x8x32xf32> to vector<8x8x32xbf16>
    %cst_45 = arith.constant 0.000000e+00 : bf16
    %59 = vector.broadcast %cst_45 : bf16 to vector<1x10x10x32xbf16>
    %c0_46 = arith.constant 0 : index
    %c0_47 = arith.constant 0 : index
    %c0_48 = arith.constant 0 : index
    %c0_49 = arith.constant 0 : index
    %60 = vector.load %arg8[%c0_46, %c0_47, %c0_48, %c0_49] : memref<1x10x10x32xbf16, #tpu.memory_space<vmem>>, vector<1x10x10x32xbf16>
    tpu.vector_store %arg8[%c0_46, %c0_47, %c0_48, %c0_49], %59 {strides = array<i32>} : memref<1x10x10x32xbf16, #tpu.memory_space<vmem>>, vector<1x10x10x32xbf16>,
    %c0_50 = arith.constant 0 : index
    %c1_51 = arith.constant 1 : index
    %c1_52 = arith.constant 1 : index
    %c0_53 = arith.constant 0 : index
    %61 = vector.load %arg8[%c0_50, %c1_51, %c1_52, %c0_53] : memref<1x10x10x32xbf16, #tpu.memory_space<vmem>>, vector<1x8x8x32xbf16>
    %62 = vector.shape_cast %61 : vector<1x8x8x32xbf16> to vector<8x8x32xbf16>
    %63 = vector.shape_cast %58 : vector<8x8x32xbf16> to vector<1x8x8x32xbf16>
    tpu.vector_store %arg8[%c0_50, %c1_51, %c1_52, %c0_53], %63 {strides = array<i32>} : memref<1x10x10x32xbf16, #tpu.memory_space<vmem>>, vector<1x8x8x32xbf16>,
    %64 = vector.extract_strided_slice %55 {offsets = [0, 32], sizes = [64, 3], strides = [1, 1]} : vector<64x128xf32> to vector<64x3xf32>
    %65 = vector.shape_cast %64 : vector<64x3xf32> to vector<8x8x3xf32>
    %c0_54 = arith.constant 0 : index
    %c0_55 = arith.constant 0 : index
    %c0_56 = arith.constant 0 : index
    %c0_57 = arith.constant 0 : index
    %66 = vector.load %arg9[%c0_54, %c0_55, %c0_56, %c0_57] : memref<1x8x8x3xf32, #tpu.memory_space<vmem>>, vector<1x8x8x3xf32>
    %67 = vector.shape_cast %66 : vector<1x8x8x3xf32> to vector<8x8x3xf32>
    %68 = vector.shape_cast %65 : vector<8x8x3xf32> to vector<1x8x8x3xf32>
    tpu.vector_store %arg9[%c0_54, %c0_55, %c0_56, %c0_57], %68 {strides = array<i32>} : memref<1x8x8x3xf32, #tpu.memory_space<vmem>>, vector<1x8x8x3xf32>,
    return
  }
  func.func @transform_0(%arg0: i32) -> (i32, i32, i32, i32) {
    %c0_i32 = arith.constant 0 : i32
    %c0_i32_0 = arith.constant 0 : i32
    %c0_i32_1 = arith.constant 0 : i32
    %c0_i32_2 = arith.constant 0 : i32
    return %arg0, %c0_i32, %c0_i32_0, %c0_i32_1 : i32, i32, i32, i32
  }
  func.func @transform_1(%arg0: i32) -> (i32, i32, i32) {
    %c0_i32 = arith.constant 0 : i32
    %c0_i32_0 = arith.constant 0 : i32
    %c0_i32_1 = arith.constant 0 : i32
    %c0_i32_2 = arith.constant 0 : i32
    return %c0_i32, %c0_i32_0, %c0_i32_1 : i32, i32, i32
  }
  func.func @transform_2(%arg0: i32) -> (i32, i32) {
    %c0_i32 = arith.constant 0 : i32
    %c0_i32_0 = arith.constant 0 : i32
    %c0_i32_1 = arith.constant 0 : i32
    return %c0_i32, %c0_i32_0 : i32, i32
  }
  func.func @transform_3(%arg0: i32) -> (i32, i32, i32) {
    %c0_i32 = arith.constant 0 : i32
    %c0_i32_0 = arith.constant 0 : i32
    %c0_i32_1 = arith.constant 0 : i32
    return %arg0, %c0_i32, %c0_i32_0 : i32, i32, i32
  }
  func.func @transform_4(%arg0: i32) -> (i32, i32) {
    %c0_i32 = arith.constant 0 : i32
    %c0_i32_0 = arith.constant 0 : i32
    %c0_i32_1 = arith.constant 0 : i32
    return %c0_i32, %c0_i32_0 : i32, i32
  }
  func.func @transform_5(%arg0: i32) -> (i32, i32, i32) {
    %c0_i32 = arith.constant 0 : i32
    %c0_i32_0 = arith.constant 0 : i32
    %c0_i32_1 = arith.constant 0 : i32
    return %arg0, %c0_i32, %c0_i32_0 : i32, i32, i32
  }
  func.func @transform_6(%arg0: i32) -> (i32, i32, i32, i32) {
    %c0_i32 = arith.constant 0 : i32
    %c0_i32_0 = arith.constant 0 : i32
    %c0_i32_1 = arith.constant 0 : i32
    %c0_i32_2 = arith.constant 0 : i32
    return %arg0, %c0_i32, %c0_i32_0, %c0_i32_1 : i32, i32, i32, i32
  }
  func.func @transform_7(%arg0: i32) -> (i32, i32, i32, i32) {
    %c0_i32 = arith.constant 0 : i32
    %c0_i32_0 = arith.constant 0 : i32
    %c0_i32_1 = arith.constant 0 : i32
    %c0_i32_2 = arith.constant 0 : i32
    return %arg0, %c0_i32, %c0_i32_0, %c0_i32_1 : i32, i32, i32, i32
  }
  func.func @transform_8(%arg0: i32) -> (i32, i32, i32, i32) {
    %c0_i32 = arith.constant 0 : i32
    %c0_i32_0 = arith.constant 0 : i32
    %c0_i32_1 = arith.constant 0 : i32
    %c0_i32_2 = arith.constant 0 : i32
    return %arg0, %c0_i32, %c0_i32_0, %c0_i32_1 : i32, i32, i32, i32
  }
}

module attributes {stable_mosaic.version = 11 : i64} {
  func.func @_rpn_heads_kernel(%arg0: i32, %arg1: memref<1x10x10x32xbf16, #tpu.memory_space<vmem>>, %arg2: memref<9x32x32xbf16, #tpu.memory_space<vmem>>, %arg3: memref<1x32xf32, #tpu.memory_space<vmem>>, %arg4: memref<32x128xbf16, #tpu.memory_space<vmem>>, %arg5: memref<32x128xbf16, #tpu.memory_space<vmem>>, %arg6: memref<1x128xf32, #tpu.memory_space<vmem>>, %arg7: memref<1x8x8x128xf32, #tpu.memory_space<vmem>>, %arg8: memref<1x1x32xf32, #tpu.memory_space<vmem>>) attributes {dimension_semantics = [#tpu.dimension_semantics<parallel>], iteration_bounds = array<i64: 2>, scalar_prefetch = 0 : i64, scratch_operands = 0 : i64, tpu.core_type = #tpu.core_type<tc>, window_params = [{transform_indices = @transform_0, window_bounds = array<i64: 1, 10, 10, 32>}, {pipeline_mode = #tpu.pipeline_mode<synchronous>, transform_indices = @transform_1, window_bounds = array<i64: 9, 32, 32>}, {pipeline_mode = #tpu.pipeline_mode<synchronous>, transform_indices = @transform_2, window_bounds = array<i64: 1, 32>}, {pipeline_mode = #tpu.pipeline_mode<synchronous>, transform_indices = @transform_3, window_bounds = array<i64: 32, 128>}, {pipeline_mode = #tpu.pipeline_mode<synchronous>, transform_indices = @transform_4, window_bounds = array<i64: 32, 128>}, {pipeline_mode = #tpu.pipeline_mode<synchronous>, transform_indices = @transform_5, window_bounds = array<i64: 1, 128>}, {transform_indices = @transform_6, window_bounds = array<i64: 1, 8, 8, 128>}, {transform_indices = @transform_7, window_bounds = array<i64: 1, 1, 32>}]} {
    %cst = arith.constant 0.000000e+00 : f32
    %0 = vector.broadcast %cst : f32 to vector<64x32xf32>
    %c0 = arith.constant 0 : index
    %c0_0 = arith.constant 0 : index
    %c0_1 = arith.constant 0 : index
    %c0_2 = arith.constant 0 : index
    %1 = vector.load %arg1[%c0, %c0_0, %c0_1, %c0_2] : memref<1x10x10x32xbf16, #tpu.memory_space<vmem>>, vector<1x8x8x32xbf16>
    %2 = vector.shape_cast %1 : vector<1x8x8x32xbf16> to vector<8x8x32xbf16>
    %3 = vector.shape_cast %2 : vector<8x8x32xbf16> to vector<64x32xbf16>
    %c0_3 = arith.constant 0 : index
    %c0_4 = arith.constant 0 : index
    %c0_5 = arith.constant 0 : index
    %4 = vector.load %arg2[%c0_3, %c0_4, %c0_5] : memref<9x32x32xbf16, #tpu.memory_space<vmem>>, vector<1x32x32xbf16>
    %5 = vector.shape_cast %4 : vector<1x32x32xbf16> to vector<32x32xbf16>
    %cst_6 = arith.constant dense<0.000000e+00> : vector<64x32xf32>
    %6 = tpu.matmul %3, %5, %cst_6 {dimension_numbers = #tpu.dot_dimension_numbers<[1], [0], [0], [1], [0, 0, 1, 1], [], []>} : vector<64x32xbf16>, vector<32x32xbf16>, vector<64x32xf32> -> vector<64x32xf32>
    %7 = arith.addf %0, %6 : vector<64x32xf32>
    %c0_7 = arith.constant 0 : index
    %c0_8 = arith.constant 0 : index
    %c1 = arith.constant 1 : index
    %c0_9 = arith.constant 0 : index
    %8 = vector.load %arg1[%c0_7, %c0_8, %c1, %c0_9] : memref<1x10x10x32xbf16, #tpu.memory_space<vmem>>, vector<1x8x8x32xbf16>
    %9 = vector.shape_cast %8 : vector<1x8x8x32xbf16> to vector<8x8x32xbf16>
    %10 = vector.shape_cast %9 : vector<8x8x32xbf16> to vector<64x32xbf16>
    %c1_10 = arith.constant 1 : index
    %c0_11 = arith.constant 0 : index
    %c0_12 = arith.constant 0 : index
    %11 = vector.load %arg2[%c1_10, %c0_11, %c0_12] : memref<9x32x32xbf16, #tpu.memory_space<vmem>>, vector<1x32x32xbf16>
    %12 = vector.shape_cast %11 : vector<1x32x32xbf16> to vector<32x32xbf16>
    %cst_13 = arith.constant dense<0.000000e+00> : vector<64x32xf32>
    %13 = tpu.matmul %10, %12, %cst_13 {dimension_numbers = #tpu.dot_dimension_numbers<[1], [0], [0], [1], [0, 0, 1, 1], [], []>} : vector<64x32xbf16>, vector<32x32xbf16>, vector<64x32xf32> -> vector<64x32xf32>
    %14 = arith.addf %7, %13 : vector<64x32xf32>
    %c0_14 = arith.constant 0 : index
    %c0_15 = arith.constant 0 : index
    %c2 = arith.constant 2 : index
    %c0_16 = arith.constant 0 : index
    %15 = vector.load %arg1[%c0_14, %c0_15, %c2, %c0_16] : memref<1x10x10x32xbf16, #tpu.memory_space<vmem>>, vector<1x8x8x32xbf16>
    %16 = vector.shape_cast %15 : vector<1x8x8x32xbf16> to vector<8x8x32xbf16>
    %17 = vector.shape_cast %16 : vector<8x8x32xbf16> to vector<64x32xbf16>
    %c2_17 = arith.constant 2 : index
    %c0_18 = arith.constant 0 : index
    %c0_19 = arith.constant 0 : index
    %18 = vector.load %arg2[%c2_17, %c0_18, %c0_19] : memref<9x32x32xbf16, #tpu.memory_space<vmem>>, vector<1x32x32xbf16>
    %19 = vector.shape_cast %18 : vector<1x32x32xbf16> to vector<32x32xbf16>
    %cst_20 = arith.constant dense<0.000000e+00> : vector<64x32xf32>
    %20 = tpu.matmul %17, %19, %cst_20 {dimension_numbers = #tpu.dot_dimension_numbers<[1], [0], [0], [1], [0, 0, 1, 1], [], []>} : vector<64x32xbf16>, vector<32x32xbf16>, vector<64x32xf32> -> vector<64x32xf32>
    %21 = arith.addf %14, %20 : vector<64x32xf32>
    %c0_21 = arith.constant 0 : index
    %c1_22 = arith.constant 1 : index
    %c0_23 = arith.constant 0 : index
    %c0_24 = arith.constant 0 : index
    %22 = vector.load %arg1[%c0_21, %c1_22, %c0_23, %c0_24] : memref<1x10x10x32xbf16, #tpu.memory_space<vmem>>, vector<1x8x8x32xbf16>
    %23 = vector.shape_cast %22 : vector<1x8x8x32xbf16> to vector<8x8x32xbf16>
    %24 = vector.shape_cast %23 : vector<8x8x32xbf16> to vector<64x32xbf16>
    %c3 = arith.constant 3 : index
    %c0_25 = arith.constant 0 : index
    %c0_26 = arith.constant 0 : index
    %25 = vector.load %arg2[%c3, %c0_25, %c0_26] : memref<9x32x32xbf16, #tpu.memory_space<vmem>>, vector<1x32x32xbf16>
    %26 = vector.shape_cast %25 : vector<1x32x32xbf16> to vector<32x32xbf16>
    %cst_27 = arith.constant dense<0.000000e+00> : vector<64x32xf32>
    %27 = tpu.matmul %24, %26, %cst_27 {dimension_numbers = #tpu.dot_dimension_numbers<[1], [0], [0], [1], [0, 0, 1, 1], [], []>} : vector<64x32xbf16>, vector<32x32xbf16>, vector<64x32xf32> -> vector<64x32xf32>
    %28 = arith.addf %21, %27 : vector<64x32xf32>
    %c0_28 = arith.constant 0 : index
    %c1_29 = arith.constant 1 : index
    %c1_30 = arith.constant 1 : index
    %c0_31 = arith.constant 0 : index
    %29 = vector.load %arg1[%c0_28, %c1_29, %c1_30, %c0_31] : memref<1x10x10x32xbf16, #tpu.memory_space<vmem>>, vector<1x8x8x32xbf16>
    %30 = vector.shape_cast %29 : vector<1x8x8x32xbf16> to vector<8x8x32xbf16>
    %31 = vector.shape_cast %30 : vector<8x8x32xbf16> to vector<64x32xbf16>
    %c4 = arith.constant 4 : index
    %c0_32 = arith.constant 0 : index
    %c0_33 = arith.constant 0 : index
    %32 = vector.load %arg2[%c4, %c0_32, %c0_33] : memref<9x32x32xbf16, #tpu.memory_space<vmem>>, vector<1x32x32xbf16>
    %33 = vector.shape_cast %32 : vector<1x32x32xbf16> to vector<32x32xbf16>
    %cst_34 = arith.constant dense<0.000000e+00> : vector<64x32xf32>
    %34 = tpu.matmul %31, %33, %cst_34 {dimension_numbers = #tpu.dot_dimension_numbers<[1], [0], [0], [1], [0, 0, 1, 1], [], []>} : vector<64x32xbf16>, vector<32x32xbf16>, vector<64x32xf32> -> vector<64x32xf32>
    %35 = arith.addf %28, %34 : vector<64x32xf32>
    %c0_35 = arith.constant 0 : index
    %c1_36 = arith.constant 1 : index
    %c2_37 = arith.constant 2 : index
    %c0_38 = arith.constant 0 : index
    %36 = vector.load %arg1[%c0_35, %c1_36, %c2_37, %c0_38] : memref<1x10x10x32xbf16, #tpu.memory_space<vmem>>, vector<1x8x8x32xbf16>
    %37 = vector.shape_cast %36 : vector<1x8x8x32xbf16> to vector<8x8x32xbf16>
    %38 = vector.shape_cast %37 : vector<8x8x32xbf16> to vector<64x32xbf16>
    %c5 = arith.constant 5 : index
    %c0_39 = arith.constant 0 : index
    %c0_40 = arith.constant 0 : index
    %39 = vector.load %arg2[%c5, %c0_39, %c0_40] : memref<9x32x32xbf16, #tpu.memory_space<vmem>>, vector<1x32x32xbf16>
    %40 = vector.shape_cast %39 : vector<1x32x32xbf16> to vector<32x32xbf16>
    %cst_41 = arith.constant dense<0.000000e+00> : vector<64x32xf32>
    %41 = tpu.matmul %38, %40, %cst_41 {dimension_numbers = #tpu.dot_dimension_numbers<[1], [0], [0], [1], [0, 0, 1, 1], [], []>} : vector<64x32xbf16>, vector<32x32xbf16>, vector<64x32xf32> -> vector<64x32xf32>
    %42 = arith.addf %35, %41 : vector<64x32xf32>
    %c0_42 = arith.constant 0 : index
    %c2_43 = arith.constant 2 : index
    %c0_44 = arith.constant 0 : index
    %c0_45 = arith.constant 0 : index
    %43 = vector.load %arg1[%c0_42, %c2_43, %c0_44, %c0_45] : memref<1x10x10x32xbf16, #tpu.memory_space<vmem>>, vector<1x8x8x32xbf16>
    %44 = vector.shape_cast %43 : vector<1x8x8x32xbf16> to vector<8x8x32xbf16>
    %45 = vector.shape_cast %44 : vector<8x8x32xbf16> to vector<64x32xbf16>
    %c6 = arith.constant 6 : index
    %c0_46 = arith.constant 0 : index
    %c0_47 = arith.constant 0 : index
    %46 = vector.load %arg2[%c6, %c0_46, %c0_47] : memref<9x32x32xbf16, #tpu.memory_space<vmem>>, vector<1x32x32xbf16>
    %47 = vector.shape_cast %46 : vector<1x32x32xbf16> to vector<32x32xbf16>
    %cst_48 = arith.constant dense<0.000000e+00> : vector<64x32xf32>
    %48 = tpu.matmul %45, %47, %cst_48 {dimension_numbers = #tpu.dot_dimension_numbers<[1], [0], [0], [1], [0, 0, 1, 1], [], []>} : vector<64x32xbf16>, vector<32x32xbf16>, vector<64x32xf32> -> vector<64x32xf32>
    %49 = arith.addf %42, %48 : vector<64x32xf32>
    %c0_49 = arith.constant 0 : index
    %c2_50 = arith.constant 2 : index
    %c1_51 = arith.constant 1 : index
    %c0_52 = arith.constant 0 : index
    %50 = vector.load %arg1[%c0_49, %c2_50, %c1_51, %c0_52] : memref<1x10x10x32xbf16, #tpu.memory_space<vmem>>, vector<1x8x8x32xbf16>
    %51 = vector.shape_cast %50 : vector<1x8x8x32xbf16> to vector<8x8x32xbf16>
    %52 = vector.shape_cast %51 : vector<8x8x32xbf16> to vector<64x32xbf16>
    %c7 = arith.constant 7 : index
    %c0_53 = arith.constant 0 : index
    %c0_54 = arith.constant 0 : index
    %53 = vector.load %arg2[%c7, %c0_53, %c0_54] : memref<9x32x32xbf16, #tpu.memory_space<vmem>>, vector<1x32x32xbf16>
    %54 = vector.shape_cast %53 : vector<1x32x32xbf16> to vector<32x32xbf16>
    %cst_55 = arith.constant dense<0.000000e+00> : vector<64x32xf32>
    %55 = tpu.matmul %52, %54, %cst_55 {dimension_numbers = #tpu.dot_dimension_numbers<[1], [0], [0], [1], [0, 0, 1, 1], [], []>} : vector<64x32xbf16>, vector<32x32xbf16>, vector<64x32xf32> -> vector<64x32xf32>
    %56 = arith.addf %49, %55 : vector<64x32xf32>
    %c0_56 = arith.constant 0 : index
    %c2_57 = arith.constant 2 : index
    %c2_58 = arith.constant 2 : index
    %c0_59 = arith.constant 0 : index
    %57 = vector.load %arg1[%c0_56, %c2_57, %c2_58, %c0_59] : memref<1x10x10x32xbf16, #tpu.memory_space<vmem>>, vector<1x8x8x32xbf16>
    %58 = vector.shape_cast %57 : vector<1x8x8x32xbf16> to vector<8x8x32xbf16>
    %59 = vector.shape_cast %58 : vector<8x8x32xbf16> to vector<64x32xbf16>
    %c8 = arith.constant 8 : index
    %c0_60 = arith.constant 0 : index
    %c0_61 = arith.constant 0 : index
    %60 = vector.load %arg2[%c8, %c0_60, %c0_61] : memref<9x32x32xbf16, #tpu.memory_space<vmem>>, vector<1x32x32xbf16>
    %61 = vector.shape_cast %60 : vector<1x32x32xbf16> to vector<32x32xbf16>
    %cst_62 = arith.constant dense<0.000000e+00> : vector<64x32xf32>
    %62 = tpu.matmul %59, %61, %cst_62 {dimension_numbers = #tpu.dot_dimension_numbers<[1], [0], [0], [1], [0, 0, 1, 1], [], []>} : vector<64x32xbf16>, vector<32x32xbf16>, vector<64x32xf32> -> vector<64x32xf32>
    %63 = arith.addf %56, %62 : vector<64x32xf32>
    %c0_63 = arith.constant 0 : index
    %c0_64 = arith.constant 0 : index
    %64 = vector.load %arg3[%c0_63, %c0_64] : memref<1x32xf32, #tpu.memory_space<vmem>>, vector<1x32xf32>
    %65 = vector.broadcast %64 : vector<1x32xf32> to vector<64x32xf32>
    %66 = arith.addf %63, %65 : vector<64x32xf32>
    %cst_65 = arith.constant 0.000000e+00 : f32
    %67 = vector.broadcast %cst_65 : f32 to vector<64x32xf32>
    %68 = arith.maximumf %66, %67 : vector<64x32xf32>
    %69 = arith.truncf %68 : vector<64x32xf32> to vector<64x32xbf16>
    %c0_66 = arith.constant 0 : index
    %c1_67 = arith.constant 1 : index
    %c1_68 = arith.constant 1 : index
    %c0_69 = arith.constant 0 : index
    %70 = vector.load %arg1[%c0_66, %c1_67, %c1_68, %c0_69] : memref<1x10x10x32xbf16, #tpu.memory_space<vmem>>, vector<1x8x8x32xbf16>
    %71 = vector.shape_cast %70 : vector<1x8x8x32xbf16> to vector<8x8x32xbf16>
    %72 = vector.shape_cast %71 : vector<8x8x32xbf16> to vector<64x32xbf16>
    %c0_70 = arith.constant 0 : index
    %c0_71 = arith.constant 0 : index
    %73 = vector.load %arg4[%c0_70, %c0_71] : memref<32x128xbf16, #tpu.memory_space<vmem>>, vector<32x128xbf16>
    %cst_72 = arith.constant dense<0.000000e+00> : vector<64x128xf32>
    %74 = tpu.matmul %69, %73, %cst_72 {dimension_numbers = #tpu.dot_dimension_numbers<[1], [0], [0], [1], [0, 0, 1, 1], [], []>} : vector<64x32xbf16>, vector<32x128xbf16>, vector<64x128xf32> -> vector<64x128xf32>
    %c0_73 = arith.constant 0 : index
    %c0_74 = arith.constant 0 : index
    %75 = vector.load %arg5[%c0_73, %c0_74] : memref<32x128xbf16, #tpu.memory_space<vmem>>, vector<32x128xbf16>
    %cst_75 = arith.constant dense<0.000000e+00> : vector<64x128xf32>
    %76 = tpu.matmul %72, %75, %cst_75 {dimension_numbers = #tpu.dot_dimension_numbers<[1], [0], [0], [1], [0, 0, 1, 1], [], []>} : vector<64x32xbf16>, vector<32x128xbf16>, vector<64x128xf32> -> vector<64x128xf32>
    %77 = arith.addf %74, %76 : vector<64x128xf32>
    %c0_76 = arith.constant 0 : index
    %c0_77 = arith.constant 0 : index
    %78 = vector.load %arg6[%c0_76, %c0_77] : memref<1x128xf32, #tpu.memory_space<vmem>>, vector<1x128xf32>
    %79 = vector.broadcast %78 : vector<1x128xf32> to vector<64x128xf32>
    %80 = arith.addf %77, %79 : vector<64x128xf32>
    %81 = tpu.iota {dimensions = array<i32: 1>} : vector<64x128xi32>
    %c22_i32 = arith.constant 22 : i32
    %82 = vector.broadcast %c22_i32 : i32 to vector<64x128xi32>
    %83 = arith.cmpi sge, %81, %82 : vector<64x128xi32>
    %c30_i32 = arith.constant 30 : i32
    %84 = vector.broadcast %c30_i32 : i32 to vector<64x128xi32>
    %85 = arith.cmpi slt, %81, %84 : vector<64x128xi32>
    %86 = arith.andi %83, %85 : vector<64x128xi1>
    %cst_78 = arith.constant -3.40282347E+38 : f32
    %87 = vector.broadcast %cst_78 : f32 to vector<64x128xf32>
    %88 = arith.select %86, %80, %87 : vector<64x128xi1>, vector<64x128xf32>
    %cst_79 = arith.constant dense<0xFF800000> : vector<64xf32>
    %89 = vector.multi_reduction <maximumf>, %88, %cst_79 [1] : vector<64x128xf32> to vector<64xf32>
    %90 = vector.shape_cast %89 : vector<64xf32> to vector<64x1xf32>
    %91 = vector.broadcast %90 : vector<64x1xf32> to vector<64x128xf32>
    %92 = arith.cmpf oeq, %88, %91 : vector<64x128xf32>
    %c128_i32 = arith.constant 128 : i32
    %93 = vector.broadcast %c128_i32 : i32 to vector<64x128xi32>
    %94 = arith.select %92, %81, %93 : vector<64x128xi1>, vector<64x128xi32>
    %cst_80 = arith.constant dense<2147483647> : vector<64xi32>
    %95 = vector.multi_reduction <minsi>, %94, %cst_80 [1] : vector<64x128xi32> to vector<64xi32>
    %96 = vector.shape_cast %95 : vector<64xi32> to vector<64x1xi32>
    %c22_i32_81 = arith.constant 22 : i32
    %97 = vector.broadcast %c22_i32_81 : i32 to vector<64x1xi32>
    %98 = arith.subi %96, %97 : vector<64x1xi32>
    %99 = arith.sitofp %98 : vector<64x1xi32> to vector<64x1xf32>
    %c30_i32_82 = arith.constant 30 : i32
    %100 = vector.broadcast %c30_i32_82 : i32 to vector<64x128xi32>
    %101 = arith.cmpi sge, %81, %100 : vector<64x128xi32>
    %c38_i32 = arith.constant 38 : i32
    %102 = vector.broadcast %c38_i32 : i32 to vector<64x128xi32>
    %103 = arith.cmpi slt, %81, %102 : vector<64x128xi32>
    %104 = arith.andi %101, %103 : vector<64x128xi1>
    %cst_83 = arith.constant -3.40282347E+38 : f32
    %105 = vector.broadcast %cst_83 : f32 to vector<64x128xf32>
    %106 = arith.select %104, %80, %105 : vector<64x128xi1>, vector<64x128xf32>
    %cst_84 = arith.constant dense<0xFF800000> : vector<64xf32>
    %107 = vector.multi_reduction <maximumf>, %106, %cst_84 [1] : vector<64x128xf32> to vector<64xf32>
    %108 = vector.shape_cast %107 : vector<64xf32> to vector<64x1xf32>
    %109 = vector.broadcast %108 : vector<64x1xf32> to vector<64x128xf32>
    %110 = arith.cmpf oeq, %106, %109 : vector<64x128xf32>
    %c128_i32_85 = arith.constant 128 : i32
    %111 = vector.broadcast %c128_i32_85 : i32 to vector<64x128xi32>
    %112 = arith.select %110, %81, %111 : vector<64x128xi1>, vector<64x128xi32>
    %cst_86 = arith.constant dense<2147483647> : vector<64xi32>
    %113 = vector.multi_reduction <minsi>, %112, %cst_86 [1] : vector<64x128xi32> to vector<64xi32>
    %114 = vector.shape_cast %113 : vector<64xi32> to vector<64x1xi32>
    %c30_i32_87 = arith.constant 30 : i32
    %115 = vector.broadcast %c30_i32_87 : i32 to vector<64x1xi32>
    %116 = arith.subi %114, %115 : vector<64x1xi32>
    %117 = arith.sitofp %116 : vector<64x1xi32> to vector<64x1xf32>
    %c120_i32 = arith.constant 120 : i32
    %118 = vector.broadcast %c120_i32 : i32 to vector<64x128xi32>
    %119 = arith.cmpi eq, %81, %118 : vector<64x128xi32>
    %120 = vector.shape_cast %99 : vector<64x1xf32> to vector<64x1xf32>
    %121 = vector.broadcast %120 : vector<64x1xf32> to vector<64x128xf32>
    %122 = arith.select %119, %121, %80 : vector<64x128xi1>, vector<64x128xf32>
    %c121_i32 = arith.constant 121 : i32
    %123 = vector.broadcast %c121_i32 : i32 to vector<64x128xi32>
    %124 = arith.cmpi eq, %81, %123 : vector<64x128xi32>
    %125 = vector.shape_cast %117 : vector<64x1xf32> to vector<64x1xf32>
    %126 = vector.broadcast %125 : vector<64x1xf32> to vector<64x128xf32>
    %127 = arith.select %124, %126, %122 : vector<64x128xi1>, vector<64x128xf32>
    %128 = vector.shape_cast %127 : vector<64x128xf32> to vector<8x8x128xf32>
    %c0_88 = arith.constant 0 : index
    %c0_89 = arith.constant 0 : index
    %c0_90 = arith.constant 0 : index
    %c0_91 = arith.constant 0 : index
    %129 = vector.load %arg7[%c0_88, %c0_89, %c0_90, %c0_91] : memref<1x8x8x128xf32, #tpu.memory_space<vmem>>, vector<1x8x8x128xf32>
    %130 = vector.shape_cast %129 : vector<1x8x8x128xf32> to vector<8x8x128xf32>
    %131 = vector.shape_cast %128 : vector<8x8x128xf32> to vector<1x8x8x128xf32>
    tpu.vector_store %arg7[%c0_88, %c0_89, %c0_90, %c0_91], %131 {strides = array<i32>} : memref<1x8x8x128xf32, #tpu.memory_space<vmem>>, vector<1x8x8x128xf32>,
    %132 = arith.extf %72 : vector<64x32xbf16> to vector<64x32xf32>
    %cst_92 = arith.constant dense<0.000000e+00> : vector<32xf32>
    %133 = vector.multi_reduction <add>, %132, %cst_92 [0] : vector<64x32xf32> to vector<32xf32>
    %134 = vector.shape_cast %133 : vector<32xf32> to vector<1x32xf32>
    %cst_93 = arith.constant 6.400000e+01 : f32
    %135 = vector.broadcast %cst_93 : f32 to vector<1x32xf32>
    %136 = arith.divf %134, %135 : vector<1x32xf32>
    %c0_94 = arith.constant 0 : index
    %c0_95 = arith.constant 0 : index
    %c0_96 = arith.constant 0 : index
    %137 = vector.load %arg8[%c0_94, %c0_95, %c0_96] : memref<1x1x32xf32, #tpu.memory_space<vmem>>, vector<1x1x32xf32>
    %138 = vector.shape_cast %137 : vector<1x1x32xf32> to vector<1x32xf32>
    %139 = vector.shape_cast %136 : vector<1x32xf32> to vector<1x1x32xf32>
    tpu.vector_store %arg8[%c0_94, %c0_95, %c0_96], %139 {strides = array<i32>} : memref<1x1x32xf32, #tpu.memory_space<vmem>>, vector<1x1x32xf32>,
    return
  }
  func.func @transform_0(%arg0: i32) -> (i32, i32, i32, i32) {
    %c0_i32 = arith.constant 0 : i32
    %c0_i32_0 = arith.constant 0 : i32
    %c0_i32_1 = arith.constant 0 : i32
    %c0_i32_2 = arith.constant 0 : i32
    return %arg0, %c0_i32, %c0_i32_0, %c0_i32_1 : i32, i32, i32, i32
  }
  func.func @transform_1(%arg0: i32) -> (i32, i32, i32) {
    %c0_i32 = arith.constant 0 : i32
    %c0_i32_0 = arith.constant 0 : i32
    %c0_i32_1 = arith.constant 0 : i32
    %c0_i32_2 = arith.constant 0 : i32
    return %c0_i32, %c0_i32_0, %c0_i32_1 : i32, i32, i32
  }
  func.func @transform_2(%arg0: i32) -> (i32, i32) {
    %c0_i32 = arith.constant 0 : i32
    %c0_i32_0 = arith.constant 0 : i32
    %c0_i32_1 = arith.constant 0 : i32
    return %c0_i32, %c0_i32_0 : i32, i32
  }
  func.func @transform_3(%arg0: i32) -> (i32, i32) {
    %c0_i32 = arith.constant 0 : i32
    %c0_i32_0 = arith.constant 0 : i32
    %c0_i32_1 = arith.constant 0 : i32
    return %c0_i32, %c0_i32_0 : i32, i32
  }
  func.func @transform_4(%arg0: i32) -> (i32, i32) {
    %c0_i32 = arith.constant 0 : i32
    %c0_i32_0 = arith.constant 0 : i32
    %c0_i32_1 = arith.constant 0 : i32
    return %c0_i32, %c0_i32_0 : i32, i32
  }
  func.func @transform_5(%arg0: i32) -> (i32, i32) {
    %c0_i32 = arith.constant 0 : i32
    %c0_i32_0 = arith.constant 0 : i32
    %c0_i32_1 = arith.constant 0 : i32
    return %c0_i32, %c0_i32_0 : i32, i32
  }
  func.func @transform_6(%arg0: i32) -> (i32, i32, i32, i32) {
    %c0_i32 = arith.constant 0 : i32
    %c0_i32_0 = arith.constant 0 : i32
    %c0_i32_1 = arith.constant 0 : i32
    %c0_i32_2 = arith.constant 0 : i32
    return %arg0, %c0_i32, %c0_i32_0, %c0_i32_1 : i32, i32, i32, i32
  }
  func.func @transform_7(%arg0: i32) -> (i32, i32, i32) {
    %c0_i32 = arith.constant 0 : i32
    %c0_i32_0 = arith.constant 0 : i32
    %c0_i32_1 = arith.constant 0 : i32
    return %arg0, %c0_i32, %c0_i32_0 : i32, i32, i32
  }
}

module attributes {stable_mosaic.version = 11 : i64} {
  func.func @_body2_tx2_kernel(%arg0: i32, %arg1: memref<1x5x5x128xbf16, #tpu.memory_space<vmem>>, %arg2: memref<4x128x32xbf16, #tpu.memory_space<vmem>>, %arg3: memref<1x32xf32, #tpu.memory_space<vmem>>, %arg4: memref<1x1x32xf32, #tpu.memory_space<vmem>>, %arg5: memref<32x32xbf16, #tpu.memory_space<vmem>>, %arg6: memref<1x32xf32, #tpu.memory_space<vmem>>, %arg7: memref<32x2xbf16, #tpu.memory_space<vmem>>, %arg8: memref<1x2xf32, #tpu.memory_space<vmem>>, %arg9: memref<1x4x4x32xbf16, #tpu.memory_space<vmem>>, %arg10: memref<1x4x4x2xf32, #tpu.memory_space<vmem>>) attributes {dimension_semantics = [#tpu.dimension_semantics<parallel>], iteration_bounds = array<i64: 2>, scalar_prefetch = 0 : i64, scratch_operands = 0 : i64, tpu.core_type = #tpu.core_type<tc>, window_params = [{transform_indices = @transform_0, window_bounds = array<i64: 1, 5, 5, 128>}, {pipeline_mode = #tpu.pipeline_mode<synchronous>, transform_indices = @transform_1, window_bounds = array<i64: 4, 128, 32>}, {pipeline_mode = #tpu.pipeline_mode<synchronous>, transform_indices = @transform_2, window_bounds = array<i64: 1, 32>}, {transform_indices = @transform_3, window_bounds = array<i64: 1, 1, 32>}, {pipeline_mode = #tpu.pipeline_mode<synchronous>, transform_indices = @transform_4, window_bounds = array<i64: 32, 32>}, {pipeline_mode = #tpu.pipeline_mode<synchronous>, transform_indices = @transform_5, window_bounds = array<i64: 1, 32>}, {pipeline_mode = #tpu.pipeline_mode<synchronous>, transform_indices = @transform_6, window_bounds = array<i64: 32, 2>}, {pipeline_mode = #tpu.pipeline_mode<synchronous>, transform_indices = @transform_7, window_bounds = array<i64: 1, 2>}, {transform_indices = @transform_8, window_bounds = array<i64: 1, 4, 4, 32>}, {transform_indices = @transform_9, window_bounds = array<i64: 1, 4, 4, 2>}]} {
    %cst = arith.constant 0.000000e+00 : f32
    %0 = vector.broadcast %cst : f32 to vector<16x32xf32>
    %c0 = arith.constant 0 : index
    %c0_0 = arith.constant 0 : index
    %c0_1 = arith.constant 0 : index
    %c0_2 = arith.constant 0 : index
    %1 = vector.load %arg1[%c0, %c0_0, %c0_1, %c0_2] : memref<1x5x5x128xbf16, #tpu.memory_space<vmem>>, vector<1x4x4x128xbf16>
    %2 = vector.shape_cast %1 : vector<1x4x4x128xbf16> to vector<4x4x128xbf16>
    %3 = vector.shape_cast %2 : vector<4x4x128xbf16> to vector<16x128xbf16>
    %c0_3 = arith.constant 0 : index
    %c0_4 = arith.constant 0 : index
    %c0_5 = arith.constant 0 : index
    %4 = vector.load %arg2[%c0_3, %c0_4, %c0_5] : memref<4x128x32xbf16, #tpu.memory_space<vmem>>, vector<1x128x32xbf16>
    %5 = vector.shape_cast %4 : vector<1x128x32xbf16> to vector<128x32xbf16>
    %cst_6 = arith.constant dense<0.000000e+00> : vector<16x32xf32>
    %6 = tpu.matmul %3, %5, %cst_6 {dimension_numbers = #tpu.dot_dimension_numbers<[1], [0], [0], [1], [0, 0, 1, 1], [], []>} : vector<16x128xbf16>, vector<128x32xbf16>, vector<16x32xf32> -> vector<16x32xf32>
    %7 = arith.addf %0, %6 : vector<16x32xf32>
    %c0_7 = arith.constant 0 : index
    %c0_8 = arith.constant 0 : index
    %c1 = arith.constant 1 : index
    %c0_9 = arith.constant 0 : index
    %8 = vector.load %arg1[%c0_7, %c0_8, %c1, %c0_9] : memref<1x5x5x128xbf16, #tpu.memory_space<vmem>>, vector<1x4x4x128xbf16>
    %9 = vector.shape_cast %8 : vector<1x4x4x128xbf16> to vector<4x4x128xbf16>
    %10 = vector.shape_cast %9 : vector<4x4x128xbf16> to vector<16x128xbf16>
    %c1_10 = arith.constant 1 : index
    %c0_11 = arith.constant 0 : index
    %c0_12 = arith.constant 0 : index
    %11 = vector.load %arg2[%c1_10, %c0_11, %c0_12] : memref<4x128x32xbf16, #tpu.memory_space<vmem>>, vector<1x128x32xbf16>
    %12 = vector.shape_cast %11 : vector<1x128x32xbf16> to vector<128x32xbf16>
    %cst_13 = arith.constant dense<0.000000e+00> : vector<16x32xf32>
    %13 = tpu.matmul %10, %12, %cst_13 {dimension_numbers = #tpu.dot_dimension_numbers<[1], [0], [0], [1], [0, 0, 1, 1], [], []>} : vector<16x128xbf16>, vector<128x32xbf16>, vector<16x32xf32> -> vector<16x32xf32>
    %14 = arith.addf %7, %13 : vector<16x32xf32>
    %c0_14 = arith.constant 0 : index
    %c1_15 = arith.constant 1 : index
    %c0_16 = arith.constant 0 : index
    %c0_17 = arith.constant 0 : index
    %15 = vector.load %arg1[%c0_14, %c1_15, %c0_16, %c0_17] : memref<1x5x5x128xbf16, #tpu.memory_space<vmem>>, vector<1x4x4x128xbf16>
    %16 = vector.shape_cast %15 : vector<1x4x4x128xbf16> to vector<4x4x128xbf16>
    %17 = vector.shape_cast %16 : vector<4x4x128xbf16> to vector<16x128xbf16>
    %c2 = arith.constant 2 : index
    %c0_18 = arith.constant 0 : index
    %c0_19 = arith.constant 0 : index
    %18 = vector.load %arg2[%c2, %c0_18, %c0_19] : memref<4x128x32xbf16, #tpu.memory_space<vmem>>, vector<1x128x32xbf16>
    %19 = vector.shape_cast %18 : vector<1x128x32xbf16> to vector<128x32xbf16>
    %cst_20 = arith.constant dense<0.000000e+00> : vector<16x32xf32>
    %20 = tpu.matmul %17, %19, %cst_20 {dimension_numbers = #tpu.dot_dimension_numbers<[1], [0], [0], [1], [0, 0, 1, 1], [], []>} : vector<16x128xbf16>, vector<128x32xbf16>, vector<16x32xf32> -> vector<16x32xf32>
    %21 = arith.addf %14, %20 : vector<16x32xf32>
    %c0_21 = arith.constant 0 : index
    %c1_22 = arith.constant 1 : index
    %c1_23 = arith.constant 1 : index
    %c0_24 = arith.constant 0 : index
    %22 = vector.load %arg1[%c0_21, %c1_22, %c1_23, %c0_24] : memref<1x5x5x128xbf16, #tpu.memory_space<vmem>>, vector<1x4x4x128xbf16>
    %23 = vector.shape_cast %22 : vector<1x4x4x128xbf16> to vector<4x4x128xbf16>
    %24 = vector.shape_cast %23 : vector<4x4x128xbf16> to vector<16x128xbf16>
    %c3 = arith.constant 3 : index
    %c0_25 = arith.constant 0 : index
    %c0_26 = arith.constant 0 : index
    %25 = vector.load %arg2[%c3, %c0_25, %c0_26] : memref<4x128x32xbf16, #tpu.memory_space<vmem>>, vector<1x128x32xbf16>
    %26 = vector.shape_cast %25 : vector<1x128x32xbf16> to vector<128x32xbf16>
    %cst_27 = arith.constant dense<0.000000e+00> : vector<16x32xf32>
    %27 = tpu.matmul %24, %26, %cst_27 {dimension_numbers = #tpu.dot_dimension_numbers<[1], [0], [0], [1], [0, 0, 1, 1], [], []>} : vector<16x128xbf16>, vector<128x32xbf16>, vector<16x32xf32> -> vector<16x32xf32>
    %28 = arith.addf %21, %27 : vector<16x32xf32>
    %c0_28 = arith.constant 0 : index
    %c0_29 = arith.constant 0 : index
    %29 = vector.load %arg3[%c0_28, %c0_29] : memref<1x32xf32, #tpu.memory_space<vmem>>, vector<1x32xf32>
    %30 = vector.broadcast %29 : vector<1x32xf32> to vector<16x32xf32>
    %31 = arith.addf %28, %30 : vector<16x32xf32>
    %cst_30 = arith.constant 0.000000e+00 : f32
    %32 = vector.broadcast %cst_30 : f32 to vector<16x32xf32>
    %33 = arith.maximumf %31, %32 : vector<16x32xf32>
    %c0_31 = arith.constant 0 : index
    %c0_32 = arith.constant 0 : index
    %c0_33 = arith.constant 0 : index
    %34 = vector.load %arg4[%c0_31, %c0_32, %c0_33] : memref<1x1x32xf32, #tpu.memory_space<vmem>>, vector<1x1x32xf32>
    %35 = vector.shape_cast %34 : vector<1x1x32xf32> to vector<1x32xf32>
    %36 = vector.broadcast %35 : vector<1x32xf32> to vector<16x32xf32>
    %37 = arith.addf %33, %36 : vector<16x32xf32>
    %38 = arith.truncf %37 : vector<16x32xf32> to vector<16x32xbf16>
    %c0_34 = arith.constant 0 : index
    %c0_35 = arith.constant 0 : index
    %39 = vector.load %arg5[%c0_34, %c0_35] : memref<32x32xbf16, #tpu.memory_space<vmem>>, vector<32x32xbf16>
    %cst_36 = arith.constant dense<0.000000e+00> : vector<16x32xf32>
    %40 = tpu.matmul %38, %39, %cst_36 {dimension_numbers = #tpu.dot_dimension_numbers<[1], [0], [0], [1], [0, 0, 1, 1], [], []>} : vector<16x32xbf16>, vector<32x32xbf16>, vector<16x32xf32> -> vector<16x32xf32>
    %c0_37 = arith.constant 0 : index
    %c0_38 = arith.constant 0 : index
    %41 = vector.load %arg6[%c0_37, %c0_38] : memref<1x32xf32, #tpu.memory_space<vmem>>, vector<1x32xf32>
    %42 = vector.broadcast %41 : vector<1x32xf32> to vector<16x32xf32>
    %43 = arith.addf %40, %42 : vector<16x32xf32>
    %cst_39 = arith.constant 0.000000e+00 : f32
    %44 = vector.broadcast %cst_39 : f32 to vector<16x32xf32>
    %45 = arith.maximumf %43, %44 : vector<16x32xf32>
    %46 = vector.shape_cast %45 : vector<16x32xf32> to vector<4x4x32xf32>
    %47 = arith.truncf %46 : vector<4x4x32xf32> to vector<4x4x32xbf16>
    %c0_40 = arith.constant 0 : index
    %c0_41 = arith.constant 0 : index
    %c0_42 = arith.constant 0 : index
    %c0_43 = arith.constant 0 : index
    %48 = vector.load %arg9[%c0_40, %c0_41, %c0_42, %c0_43] : memref<1x4x4x32xbf16, #tpu.memory_space<vmem>>, vector<1x4x4x32xbf16>
    %49 = vector.shape_cast %48 : vector<1x4x4x32xbf16> to vector<4x4x32xbf16>
    %50 = vector.shape_cast %47 : vector<4x4x32xbf16> to vector<1x4x4x32xbf16>
    tpu.vector_store %arg9[%c0_40, %c0_41, %c0_42, %c0_43], %50 {strides = array<i32>} : memref<1x4x4x32xbf16, #tpu.memory_space<vmem>>, vector<1x4x4x32xbf16>,
    %51 = arith.truncf %45 : vector<16x32xf32> to vector<16x32xbf16>
    %c0_44 = arith.constant 0 : index
    %c0_45 = arith.constant 0 : index
    %52 = vector.load %arg7[%c0_44, %c0_45] : memref<32x2xbf16, #tpu.memory_space<vmem>>, vector<32x2xbf16>
    %cst_46 = arith.constant dense<0.000000e+00> : vector<16x2xf32>
    %53 = tpu.matmul %51, %52, %cst_46 {dimension_numbers = #tpu.dot_dimension_numbers<[1], [0], [0], [1], [0, 0, 1, 1], [], []>} : vector<16x32xbf16>, vector<32x2xbf16>, vector<16x2xf32> -> vector<16x2xf32>
    %c0_47 = arith.constant 0 : index
    %c0_48 = arith.constant 0 : index
    %54 = vector.load %arg8[%c0_47, %c0_48] : memref<1x2xf32, #tpu.memory_space<vmem>>, vector<1x2xf32>
    %55 = vector.broadcast %54 : vector<1x2xf32> to vector<16x2xf32>
    %56 = arith.addf %53, %55 : vector<16x2xf32>
    %57 = vector.shape_cast %56 : vector<16x2xf32> to vector<4x4x2xf32>
    %c0_49 = arith.constant 0 : index
    %c0_50 = arith.constant 0 : index
    %c0_51 = arith.constant 0 : index
    %c0_52 = arith.constant 0 : index
    %58 = vector.load %arg10[%c0_49, %c0_50, %c0_51, %c0_52] : memref<1x4x4x2xf32, #tpu.memory_space<vmem>>, vector<1x4x4x2xf32>
    %59 = vector.shape_cast %58 : vector<1x4x4x2xf32> to vector<4x4x2xf32>
    %60 = vector.shape_cast %57 : vector<4x4x2xf32> to vector<1x4x4x2xf32>
    tpu.vector_store %arg10[%c0_49, %c0_50, %c0_51, %c0_52], %60 {strides = array<i32>} : memref<1x4x4x2xf32, #tpu.memory_space<vmem>>, vector<1x4x4x2xf32>,
    return
  }
  func.func @transform_0(%arg0: i32) -> (i32, i32, i32, i32) {
    %c0_i32 = arith.constant 0 : i32
    %c0_i32_0 = arith.constant 0 : i32
    %c0_i32_1 = arith.constant 0 : i32
    %c0_i32_2 = arith.constant 0 : i32
    return %arg0, %c0_i32, %c0_i32_0, %c0_i32_1 : i32, i32, i32, i32
  }
  func.func @transform_1(%arg0: i32) -> (i32, i32, i32) {
    %c0_i32 = arith.constant 0 : i32
    %c0_i32_0 = arith.constant 0 : i32
    %c0_i32_1 = arith.constant 0 : i32
    %c0_i32_2 = arith.constant 0 : i32
    return %c0_i32, %c0_i32_0, %c0_i32_1 : i32, i32, i32
  }
  func.func @transform_2(%arg0: i32) -> (i32, i32) {
    %c0_i32 = arith.constant 0 : i32
    %c0_i32_0 = arith.constant 0 : i32
    %c0_i32_1 = arith.constant 0 : i32
    return %c0_i32, %c0_i32_0 : i32, i32
  }
  func.func @transform_3(%arg0: i32) -> (i32, i32, i32) {
    %c0_i32 = arith.constant 0 : i32
    %c0_i32_0 = arith.constant 0 : i32
    %c0_i32_1 = arith.constant 0 : i32
    return %arg0, %c0_i32, %c0_i32_0 : i32, i32, i32
  }
  func.func @transform_4(%arg0: i32) -> (i32, i32) {
    %c0_i32 = arith.constant 0 : i32
    %c0_i32_0 = arith.constant 0 : i32
    %c0_i32_1 = arith.constant 0 : i32
    return %c0_i32, %c0_i32_0 : i32, i32
  }
  func.func @transform_5(%arg0: i32) -> (i32, i32) {
    %c0_i32 = arith.constant 0 : i32
    %c0_i32_0 = arith.constant 0 : i32
    %c0_i32_1 = arith.constant 0 : i32
    return %c0_i32, %c0_i32_0 : i32, i32
  }
  func.func @transform_6(%arg0: i32) -> (i32, i32) {
    %c0_i32 = arith.constant 0 : i32
    %c0_i32_0 = arith.constant 0 : i32
    %c0_i32_1 = arith.constant 0 : i32
    return %c0_i32, %c0_i32_0 : i32, i32
  }
  func.func @transform_7(%arg0: i32) -> (i32, i32) {
    %c0_i32 = arith.constant 0 : i32
    %c0_i32_0 = arith.constant 0 : i32
    %c0_i32_1 = arith.constant 0 : i32
    return %c0_i32, %c0_i32_0 : i32, i32
  }
  func.func @transform_8(%arg0: i32) -> (i32, i32, i32, i32) {
    %c0_i32 = arith.constant 0 : i32
    %c0_i32_0 = arith.constant 0 : i32
    %c0_i32_1 = arith.constant 0 : i32
    %c0_i32_2 = arith.constant 0 : i32
    return %arg0, %c0_i32, %c0_i32_0, %c0_i32_1 : i32, i32, i32, i32
  }
  func.func @transform_9(%arg0: i32) -> (i32, i32, i32, i32) {
    %c0_i32 = arith.constant 0 : i32
    %c0_i32_0 = arith.constant 0 : i32
    %c0_i32_1 = arith.constant 0 : i32
    %c0_i32_2 = arith.constant 0 : i32
    return %arg0, %c0_i32, %c0_i32_0, %c0_i32_1 : i32, i32, i32, i32
  }
}

</mosaic_0001>

<bundles_post_ra>
// kernel: panoptic_bev_forward.3
= control target key start
LH: loop header
LB: loop body
LE: loop exit
PB: predicated region body
PF: predicated region fallthrough
CT: control target
= control target key end

     0   :  { %s1936_s27 = smov 0   ;;  %s2327_s0 = inlined_call_operand.vmem [shape: bf16[2,9,9,12], index: 0, kind: input, shape index: {}]   ;;  %s2328_s1 = inlined_call_operand.vmem [shape: bf16[4,12,32], index: 1, kind: input, shape index: {}]   ;;  %s2329_s2 = inlined_call_operand.vmem [shape: f32[1,32], index: 2, kind: input, shape index: {}]   ;;  %s2330_s3 = inlined_call_operand.vmem [shape: f32[2,1,32], index: 3, kind: input, shape index: {}]   ;;  %s2331_s4 = inlined_call_operand.vmem [shape: bf16[32,128], index: 4, kind: input, shape index: {}]   ;;  %s2332_s5 = inlined_call_operand.vmem [shape: f32[2,1,128], index: 5, kind: input, shape index: {}]   ;;  %s2333_s6 = inlined_call_operand.vmem [shape: bf16[2,8,8,32], index: 6, kind: output, shape index: {0}]   ;;  %s2334_s7 = inlined_call_operand.vmem [shape: bf16[2,10,10,32], index: 7, kind: output, shape index: {1}]   ;;  %s2335_s8 = inlined_call_operand.vmem [shape: f32[2,8,8,3], index: 8, kind: output, shape index: {2}]  }
   0x1 LB: > { %s1608_s28 = sadd.s32 4294967295, %s1887_s27   ;;  %p1612_p0 = scmp.ge.s32.totalorder %s1887_s27, 1  ;;  %s1887_s27 = sphi %s1936_s27, %s19_s27  }
   0x2   : > { %p283_p1 = scmp.lt.s32.totalorder %s1887_s27, 3 }
   0x4   : > { %p284_p2 = pnand %p1612_p0, %p283_p1 }
   0x5   : > { %vm526_vm0 = vcmask (!%p284_p2), 1045504   ;;  %p333_p3 = scmp.lt.s32.totalorder (!%p284_p2), %s1608_s28, 1  ;;  %v1867_v0 = vld [vmem:[%s2328_s1] sm:$0x3f] (!%p284_p2)   ;;  %v1869_v1 = vld [vmem:[%s2328_s1 + $0x10] sm:$0x3f] (!%p284_p2)  }
   0x6   : > { %287 = sbr.rel (%p284_p2) target bundleno = 631 (0x277), region = 44  ;;  %1851 = vmatprep.subr.msk.bf16.mxu0 (!%p284_p2), %vm526_vm0, %v1867_v0  ;;  %v1954_v2 = vsel (!%p284_p2), %vm526_vm0, %v1867_v0, 0  ;;  %v1871_v3 = vld [vmem:[%s2328_s1 + $0x8] sm:$0x3f] (!%p284_p2)   ;;  %vm513_vm1 = vcmask (!%p284_p2), 97280   ;;  %v750_v4 = vsel (!%p284_p2), %vm526_vm0, %v1869_v1, 0 }
   0x7   : > { %1783 = vmatpush3.bf16.msra.mxu0 (!%p284_p2), %v1954_v2  ;;  %vm378_vm2 = vsmask.f32 (!%p284_p2), 3328  ;;  %1850 = vmatprep.subr.msk.bf16.mxu1 (!%p284_p2), %vm526_vm0, %v1871_v3  ;;  %v528_v5 = vsel (!%p284_p2), %vm526_vm0, %v1871_v3, 0  ;;  %vm379_vm3 = vsmask.f32 (!%p284_p2), 7440  ;;  %v1879_v36 = vld [vmem:[%s2331_s4] sm:$0xff] (!%p284_p2)  }
   0x8   : > { %1853 = vmatprep.subr.msk.bf16.mxu0 (!%p284_p2), %vm526_vm0, %v1869_v1  ;;  %1773 = vmatpush3.bf16.msra.mxu1 (!%p284_p2), %v528_v5  ;;  %v1980_v24 = vld [vmem:[%s2328_s1 + $0x18] sm:$0x3f] (!%p284_p2)   ;;  %vm1987_vm4 = vmor (!%p284_p2), %vm378_vm2, %vm379_vm3  ;;  %vm1092_vm5 = vcmask (!%p284_p2), 257024   ;;  %vm1143_vm6 = vcmask (!%p284_p2), 261120   ;;  %vm1249_vm7 = vcmask (!%p284_p2), 253952   ;;  %vm1460_vm13 = vcmask (!%p284_p2), 23552  }
   0x9   : > { %1852 = vmatprep.subr.msk.bf16.mxu1 (!%p284_p2), %vm526_vm0, %v1867_v0  ;;  %vm1375_vm9 = vsmask.f32 (!%p284_p2), 7938  ;;  %vm1381_vm10 = vsmask.f32 (!%p284_p2), 256 }
   0xa   : > { %vm2222_vm11 = vmand (!%p284_p2), %vm1092_vm5, %vm1375_vm9 }
   0xb   : > { %vm2229_vm12 = vmand (!%p284_p2), %vm1249_vm7, %vm1381_vm10 }
   0xd   : > { %s2343_s28 = smov (!%p333_p3, %s1608_s28), 1 }
   0xe   : > { %s1855_s11 = smul.u32 72, %s2343_s28  ;;  %s1736_s12 = sshll.u32 %s2343_s28, 5 }
   0xf   : > { %s1856_s19 = smul.u32 80, %s2343_s28  ;;  %s2144_s15 = scalar_lea.vmem %s2333_s6, %s1736_s12 }
  0x10   : > { %s1965_s16 = scalar_lea.vmem %s2327_s0, %s1855_s11  ;;  %s340_s11 = scalar_lea.vmem %s2330_s3, %s2343_s28 }
  0x11   : > { %v360_v6 = vld [vmem:[%s1965_s16] sm:$0xf]  ;;  %v361_v7 = vld [vmem:[%s1965_s16 + $0x8] sm:$0xf]  ;;  %v362_v8 = vld [vmem:[%s1965_s16 + $0x10] sm:$0xf]  ;;  %s2095_s22 = scalar_lea.vmem %s2334_s7, %s1856_s19  ;;  %s343_s18 = scalar_lea.vmem %s2332_s5, %s2343_s28 }
  0x12   : > { %v382_v9 = vshrl.u32 %v360_v6, 16  ;;  %v385_v10 = vshll.u32 %v360_v6, 16  ;;  %v396_v11 = vshrl.u32 %v361_v7, 16  ;;  %v399_v12 = vshll.u32 %v361_v7, 16  ;;  %v363_v13 = vld [vmem:[%s1965_s16 + $0x18] sm:$0xf] }
  0x13   : > { %v1630_v14 = vcombine.low %v360_v6, %v361_v7  ;;  %v410_v15 = vshrl.u32 %v362_v8, 16  ;;  %v413_v16 = vshll.u32 %v362_v8, 16  ;;  %v424_v17 = vshrl.u32 %v363_v13, 16  ;;  %v370_v18 = vld [vmem:[%s1965_s16 + $0x4] sm:$0x1]  ;;  %s1890_s19 = smov 96  }
  0x14   : > { %v384_v19 = vrot.slane %v382_v9, 4  ;;  %v387_v20 = vrot.slane %v385_v10, 5  ;;  %v398_v21 = vrot.slane %v396_v11, 4  ;;  %v401_v22 = vrot.slane %v399_v12, 5  ;;  %v371_v23 = vld [vmem:[%s1965_s16 + $0xc] sm:$0x1] }
  0x15   : > { %1784 = vmatprep.mubr.msk.bf16.mxu0 %vm513_vm1, %v1630_v14  ;;  %v412_v25 = vrot.slane %v410_v15, 4  ;;  %v415_v26 = vrot.slane %v413_v16, 5  ;;  %v426_v27 = vrot.slane %v424_v17, 4  ;;  %v427_v28 = vshll.u32 %v363_v13, 16  ;;  %v372_v29 = vld [vmem:[%s1965_s16 + $0x14] sm:$0x1] }
  0x16   : > { %v1631_v30 = vcombine.low %v362_v8, %v363_v13  ;;  %v388_v31 = vor.u32 %v387_v20, %v384_v19  ;;  %v391_v32 = vshll.u32 %v370_v18, 16  ;;  %v402_v33 = vor.u32 %v401_v22, %v398_v21  ;;  %v373_v34 = vld [vmem:[%s1965_s16 + $0x1c] sm:$0x1]  ;;  %v1872_v44 = vld [vmem:[%s1965_s16 + $0x8] ss:$8 sps:$4 sm:$0xff]   ;;  %s1737_s20 = sshll.u32 %s2343_s28, 6 }
  0x17   : > { %v429_v35 = vrot.slane %v427_v28, 5  ;;  %v405_v37 = vshll.u32 %v371_v23, 16  ;;  %v416_v38 = vor.u32 %v415_v26, %v412_v25  ;;  %v419_v39 = vshll.u32 %v372_v29, 16  ;;  %v2003_v54 = vld [vmem:[%s1965_s16 + $0x20] sm:$0xf]  ;;  %s358_s24 = scalar_lea.vmem %s2335_s8, %s1737_s20 }
  0x18   : > { %1785 = vmatmul.mubr.msk.bf16.vlgmr.msra.gmra.mrb[0].mxu0 %vm513_vm1, %v1631_v30  ;;  %v389_v40 = vrot.slane %v388_v31, 4  ;;  %v393_v41 = vrot.slane %v391_v32, 5  ;;  %v403_v42 = vrot.slane %v402_v33, 4  ;;  %v433_v43 = vshll.u32 %v373_v34, 16  ;;  %v2006_v55 = vld [vmem:[%s1965_s16 + $0x28] sm:$0xf] }
  0x19   : > { %1793 = vmatpush3.bf16.msra.mxu0 %v750_v4  ;;  %v407_v45 = vrot.slane %v405_v37, 5  ;;  %v417_v46 = vrot.slane %v416_v38, 4  ;;  %v421_v47 = vrot.slane %v419_v39, 5  ;;  %v430_v48 = vor.u32 %v429_v35, %v426_v27  ;;  %1794 = vmatprep.mubr.msk.bf16.mxu0 %vm513_vm1, %v1872_v44  ;;  %v374_v57 = vld [vmem:[%s1965_s16 + $0x24] sm:$0x1] }
  0x1a   : > { %v394_v49 = vsel %vm1987_vm4, %v389_v40, %v393_v41  ;;  %v435_v50 = vrot.slane %v433_v43, 5  ;;  %1854 = vmatprep.subr.msk.bf16.mxu0 %vm526_vm0, %v1980_v24  ;;  %v375_v58 = vld [vmem:[%s1965_s16 + $0x2c] sm:$0x1]  ;;  %v438_v59 = vshrl.u32 %v2003_v54, 16  ;;  %v441_v60 = vshll.u32 %v2003_v54, 16 }
  0x1b   : > { %v408_v51 = vsel %vm1987_vm4, %v403_v42, %v407_v45  ;;  %v422_v52 = vsel %vm1987_vm4, %v417_v46, %v421_v47  ;;  %v431_v53 = vrot.slane %v430_v48, 4  ;;  %v447_v62 = vshll.u32 %v374_v57, 16  ;;  %v2017_v1 = vld [vmem:[%s1965_s16 + $0x30] sm:$0xf]  ;;  %v1874_v4 = vld [vmem:[%s1965_s16 + $0x18] ss:$8 sps:$4 sm:$0xff]  }
  0x1c   : > { %v1621_v56 = vcombine.low %v394_v49, %v408_v51  ;;  %v452_v63 = vshrl.u32 %v2006_v55, 16  ;;  %v455_v0 = vshll.u32 %v2006_v55, 16  ;;  %v440_v5 = vrot.slane %v438_v59, 4  ;;  %v2022_v8 = vld [vmem:[%s1965_s16 + $0x38] sm:$0xf] }
  0x1d   : > { %v436_v61 = vsel %vm1987_vm4, %v431_v53, %v435_v50  ;;  %v443_v6 = vrot.slane %v441_v60, 5  ;;  %v461_v7 = vshll.u32 %v375_v58, 16  ;;  %v449_v9 = vrot.slane %v447_v62, 5  ;;  %v376_v12 = vld [vmem:[%s1965_s16 + $0x34] sm:$0x1] }
  0x1e   : > { %1774 = vmatprep.mubr.msk.bf16.mxu1 %vm513_vm1, %v1621_v56  ;;  %v1622_v3 = vcombine.low %v422_v52, %v436_v61  ;;  %v454_v10 = vrot.slane %v452_v63, 4  ;;  %v457_v11 = vrot.slane %v455_v0, 5  ;;  %v466_v13 = vshrl.u32 %v2017_v1, 16  ;;  %v377_v16 = vld [vmem:[%s1965_s16 + $0x3c] sm:$0x1] }
  0x1f   : > { %v444_v14 = vor.u32 %v443_v6, %v440_v5  ;;  %v463_v15 = vrot.slane %v461_v7, 5  ;;  %v469_v17 = vshll.u32 %v2017_v1, 16  ;;  %v475_v18 = vshll.u32 %v376_v12, 16  ;;  %v1875_v31 = vld [vmem:[%s1965_s16 + $0x28] ss:$8 sps:$4 sm:$0xff]  }
  0x20   : > { %1775 = vmatmul.mubr.msk.bf16.vlgmr.msra.gmra.mrb[0].mxu1 %vm513_vm1, %v1622_v3  ;;  %v458_v19 = vor.u32 %v457_v11, %v454_v10  ;;  %v468_v20 = vrot.slane %v466_v13, 4  ;;  %v480_v21 = vshrl.u32 %v2022_v8, 16  ;;  %v483_v22 = vshll.u32 %v2022_v8, 16  ;;  %v1658_v37 = vld [vmem:[%s1965_s16 + $0x8] sm:$0xf] }
  0x21   : > { %1825 = vmatpush3.bf16.msra.mxu1 %v1954_v2  ;;  %v986_v23 = vsel %vm526_vm0, %v1980_v24, 0  ;;  %v445_v25 = vrot.slane %v444_v14, 4  ;;  %v471_v26 = vrot.slane %v469_v17, 5  ;;  %v489_v27 = vshll.u32 %v377_v16, 16  ;;  %v1659_v38 = vld [vmem:[%s1965_s16 + $0xc] sm:$0x1] }
  0x22   : > { %v459_v28 = vrot.slane %v458_v19, 4  ;;  %v482_v29 = vrot.slane %v480_v21, 4  ;;  %v485_v30 = vrot.slane %v483_v22, 5  ;;  %v477_v33 = vrot.slane %v475_v18, 5  ;;  %v1876_v41 = vld [vmem:[%s1965_s16 + $0x38] ss:$8 sps:$4 sm:$0xff]   ;;  %1812 = vmatprep.subr.bf16.mxu1 %v1879_v36 }
  0x23   : > { %v450_v2 = vsel %vm1987_vm4, %v445_v25, %v449_v9  ;;  %v472_v32 = vor.u32 %v471_v26, %v468_v20  ;;  %v491_v35 = vrot.slane %v489_v27, 5  ;;  %v1660_v42 = vld [vmem:[%s1965_s16 + $0x10] sm:$0xf]  ;;  %v1661_v43 = vld [vmem:[%s1965_s16 + $0x14] sm:$0x1]  ;;  %v842_v44 = vshrl.u32 %v1658_v37, 16 }
  0x24   : > { %1795 = vmatmul.mubr.msk.bf16.vlgmr.msra.gmra.mrb[0].mxu0 %vm513_vm1, %v1874_v4  ;;  %v464_v24 = vsel %vm1987_vm4, %v459_v28, %v463_v15  ;;  %v486_v34 = vor.u32 %v485_v30, %v482_v29  ;;  %v1632_v45 = vcombine.low %v2003_v54, %v2006_v55  ;;  %v845_v47 = vshll.u32 %v1658_v37, 16  ;;  %v1662_v50 = vld [vmem:[%s1965_s16 + $0x18] sm:$0xf]  ;;  %v1663_v57 = vld [vmem:[%s1965_s16 + $0x1c] sm:$0x1] }
  0x25   : > { %1803 = vmatpush3.bf16.msra.mxu0 %v986_v23  ;;  %1798 = vmatprep.mubr.msk.bf16.mxu0 %vm513_vm1, %v1875_v31  ;;  %v1623_v39 = vcombine.low %v450_v2, %v464_v24  ;;  %v473_v40 = vrot.slane %v472_v32, 4  ;;  %v851_v48 = vshll.u32 %v1659_v38, 16  ;;  %v856_v49 = vshrl.u32 %v1660_v42, 16  ;;  %v1664_v60 = vld [vmem:[%s1965_s16 + $0x20] sm:$0xf] }
  0x26   : > { %v487_v46 = vrot.slane %v486_v34, 4  ;;  %v844_v52 = vrot.slane %v842_v44, 4  ;;  %v859_v53 = vshll.u32 %v1660_v42, 16  ;;  %v865_v56 = vshll.u32 %v1661_v43, 16  ;;  %v1665_v0 = vld [vmem:[%s1965_s16 + $0x24] sm:$0x1] }
  0x27   : > { %1778 = vmatprep.mubr.msk.bf16.mxu1 %vm513_vm1, %v1623_v39  ;;  %v478_v51 = vsel %vm1987_vm4, %v473_v40, %v477_v33  ;;  %v847_v55 = vrot.slane %v845_v47, 5  ;;  %v853_v58 = vrot.slane %v851_v48, 5  ;;  %v858_v59 = vrot.slane %v856_v49, 4  ;;  %v1666_v9 = vld [vmem:[%s1965_s16 + $0x28] sm:$0xf] }
  0x28   : > { %v492_v54 = vsel %vm1987_vm4, %v487_v46, %v491_v35  ;;  %v861_v62 = vrot.slane %v859_v53, 5  ;;  %v867_v63 = vrot.slane %v865_v56, 5  ;;  %v870_v3 = vshrl.u32 %v1662_v50, 16  ;;  %v1667_v14 = vld [vmem:[%s1965_s16 + $0x2c] sm:$0x1] }
  0x29   : > { %v1624_v61 = vcombine.low %v478_v51, %v492_v54  ;;  %v848_v4 = vor.u32 %v847_v55, %v844_v52  ;;  %v873_v5 = vshll.u32 %v1662_v50, 16  ;;  %v879_v6 = vshll.u32 %v1663_v57, 16  ;;  %v1668_v19 = vld [vmem:[%s1965_s16 + $0x30] sm:$0xf]  ;;  %v1669_v27 = vld [vmem:[%s1965_s16 + $0x34] sm:$0x1] }
  0x2a   : > { %v884_v7 = vshrl.u32 %v1664_v60, 16  ;;  %v862_v10 = vor.u32 %v861_v62, %v858_v59  ;;  %v872_v11 = vrot.slane %v870_v3, 4  ;;  %v887_v12 = vshll.u32 %v1664_v60, 16  ;;  %v1670_v33 = vld [vmem:[%s1965_s16 + $0x38] sm:$0xf] }
  0x2b   : > { %1779 = vmatmul.mubr.msk.bf16.gmra.mrb[4].mxu1 %vm513_vm1, %v1624_v61  ;;  %v893_v13 = vshll.u32 %v1665_v0, 16  ;;  %v849_v15 = vrot.slane %v848_v4, 4  ;;  %v875_v16 = vrot.slane %v873_v5, 5  ;;  %v881_v17 = vrot.slane %v879_v6, 5  ;;  %v1671_v24 = vld [vmem:[%s1965_s16 + $0x3c] sm:$0x1] }
  0x2c   : > { %1799 = vmatmul.mubr.msk.bf16.gmra.mrb[4].mxu0 %vm513_vm1, %v1876_v41  ;;  %1788 = vmatprep.mubr.msk.bf16.mxu1 %vm513_vm1, %v1632_v45  ;;  %v886_v18 = vrot.slane %v884_v7, 4  ;;  %v863_v20 = vrot.slane %v862_v10, 4  ;;  %v889_v21 = vrot.slane %v887_v12, 5  ;;  %v898_v23 = vshrl.u32 %v1666_v9, 16  ;;  %v1672_v39 = vld [vmem:[%s1965_s16 + $0x40] sm:$0xf] }
  0x2d   : > { %v895_v22 = vrot.slane %v893_v13, 5  ;;  %v854_v25 = vsel %vm1987_vm4, %v849_v15, %v853_v58  ;;  %v876_v26 = vor.u32 %v875_v16, %v872_v11  ;;  %v901_v28 = vshll.u32 %v1666_v9, 16  ;;  %v1880_v15 = vld [vmem:[%s2331_s4 + $0x8] sm:$0xff]  }
  0x2e   : > { %v907_v29 = vshll.u32 %v1667_v14, 16  ;;  %v868_v30 = vsel %vm1987_vm4, %v863_v20, %v867_v63  ;;  %v890_v31 = vor.u32 %v889_v21, %v886_v18  ;;  %v900_v2 = vrot.slane %v898_v23, 4  ;;  %v1685_v21 = vld [vmem:[%s2329_s2] ss:$0 sm:$0xff] }
  0x2f   : > { %v912_v32 = vshrl.u32 %v1668_v19, 16  ;;  %v1676_v34 = vcombine.low %v854_v25, %v868_v30  ;;  %v877_v35 = vrot.slane %v876_v26, 4  ;;  %v1633_v37 = vcombine.low %v2017_v1, %v2022_v8  ;;  %v1673_v1 = vld [vmem:[%s1965_s16 + $0x44] sm:$0x1] }
  0x30   : > { %v903_v38 = vrot.slane %v901_v28, 5  ;;  %v891_v40 = vrot.slane %v890_v31, 4  ;;  %v915_v42 = vshll.u32 %v1668_v19, 16  ;;  %v921_v43 = vshll.u32 %v1669_v27, 16 }
  0x31   : > { %v914_v41 = vrot.slane %v912_v32, 4  ;;  %1804 = vmatprep.mubr.msk.bf16.mxu0 %vm513_vm1, %v1676_v34  ;;  %v882_v44 = vsel %vm1987_vm4, %v877_v35, %v881_v17  ;;  %v926_v46 = vshrl.u32 %v1670_v33, 16  ;;  %v929_v47 = vshll.u32 %v1670_v33, 16 }
  0x32   : > { %v904_v45 = vor.u32 %v903_v38, %v900_v2  ;;  %v896_v48 = vsel %vm1987_vm4, %v891_v40, %v895_v22  ;;  %v909_v49 = vrot.slane %v907_v29, 5  ;;  %v917_v50 = vrot.slane %v915_v42, 5 }
  0x33   : > { %v935_v8 = vshll.u32 %v1671_v24, 16  ;;  %v1677_v51 = vcombine.low %v882_v44, %v896_v48  ;;  %v928_v53 = vrot.slane %v926_v46, 4  ;;  %v931_v56 = vrot.slane %v929_v47, 5 }
  0x34   : > { %v905_v52 = vrot.slane %v904_v45, 4  ;;  %v918_v57 = vor.u32 %v917_v50, %v914_v41  ;;  %v923_v54 = vrot.slane %v921_v43, 5  ;;  %v940_v55 = vshrl.u32 %v1672_v39, 16 }
  0x35   : > { %v943_v58 = vshll.u32 %v1672_v39, 16  ;;  %1805 = vmatmul.mubr.msk.bf16.vlgmr.msra.gmra.mrb[0].mxu0 %vm513_vm1, %v1677_v51  ;;  %v932_v59 = vor.u32 %v931_v56, %v928_v53  ;;  %v937_v60 = vrot.slane %v935_v8, 5  ;;  %v949_v61 = vshll.u32 %v1673_v1, 16 }
  0x36   : > { %v910_v62 = vsel %vm1987_vm4, %v905_v52, %v909_v49  ;;  %v919_v63 = vrot.slane %v918_v57, 4  ;;  %v942_v0 = vrot.slane %v940_v55, 4  ;;  %v1889_v14 = vmov 0  }
  0x37   : > { %1789 = vmatmul.mubr.msk.bf16.vlgmr.msra.gmra.mrb[4].mxu1 %vm513_vm1, %v1633_v37  ;;  %v945_v3 = vrot.slane %v943_v58, 5  ;;  %v933_v4 = vrot.slane %v932_v59, 4  ;;  %v951_v7 = vrot.slane %v949_v61, 5  ;;  %1248 = vst.msk [vmem:[%s2095_s22] sm:$0xf] %vm1092_vm5, %v1889_v14 }
  0x38   : > { %v924_v5 = vsel %vm1987_vm4, %v919_v63, %v923_v54  ;;  %1267 = vst.msk [vmem:[%s2095_s22 + $0x48] sm:$0xf] %vm1092_vm5, %v1889_v14  ;;  %1251 = vst.msk [vmem:[%s2095_s22 + $0x8] sm:$0xf] %vm1092_vm5, %v1889_v14  ;;  %1813 = vmatpush3.bf16.msra.mxu1 %v1879_v36  ;;  %v1686_v37 = vld [vmem:[%s340_s11] ss:$0 sm:$0xff] }
  0x39   : > { %v946_v6 = vor.u32 %v945_v3, %v942_v0  ;;  %v1678_v9 = vcombine.low %v910_v62, %v924_v5  ;;  %v938_v10 = vsel %vm1987_vm4, %v933_v4, %v937_v60  ;;  %1253 = vst.msk [vmem:[%s2095_s22 + $0x10] sm:$0xf] %vm1092_vm5, %v1889_v14  ;;  %1255 = vst.msk [vmem:[%s2095_s22 + $0x18] sm:$0xf] %vm1092_vm5, %v1889_v14  ;;  %1814 = vmatprep.subr.bf16.mxu1 %v1880_v15 }
  0x3a   : > { %1257 = vst.msk [vmem:[%s2095_s22 + $0x20] sm:$0xf] %vm1092_vm5, %v1889_v14  ;;  %1259 = vst.msk [vmem:[%s2095_s22 + $0x28] sm:$0xf] %vm1092_vm5, %v1889_v14 }
  0x3b   : > { %v947_v11 = vrot.slane %v946_v6, 4  ;;  %1808 = vmatprep.mubr.msk.bf16.mxu0 %vm513_vm1, %v1678_v9  ;;  %1261 = vst.msk [vmem:[%s2095_s22 + $0x30] sm:$0xf] %vm1092_vm5, %v1889_v14  ;;  %1263 = vst.msk [vmem:[%s2095_s22 + $0x38] sm:$0xf] %vm1092_vm5, %v1889_v14 }
  0x3c   : > { %1265 = vst.msk [vmem:[%s2095_s22 + $0x40] sm:$0xf] %vm1092_vm5, %v1889_v14  ;;  %1815 = vmatpush3.bf16.msra.mxu1 %v1880_v15  ;;  %v1221_v15 = vlaneseq }
  0x3d   : > { %v952_v12 = vsel %vm1987_vm4, %v947_v11, %v951_v7  ;;  %1250 = vst.msk [vmem:[%s2095_s22 + $0x4] sm:$0x1] %vm1249_vm7, %v1889_v14  ;;  %1256 = vst.msk [vmem:[%s2095_s22 + $0x1c] sm:$0x1] %vm1249_vm7, %v1889_v14 }
  0x3e   : > { %v1679_v13 = vcombine.low %v938_v10, %v952_v12  ;;  %1268 = vst.msk [vmem:[%s2095_s22 + $0x4c] sm:$0x1] %vm1249_vm7, %v1889_v14  ;;  %1252 = vst.msk [vmem:[%s2095_s22 + $0xc] sm:$0x1] %vm1249_vm7, %v1889_v14 }
  0x3f   : > { %1254 = vst.msk [vmem:[%s2095_s22 + $0x14] sm:$0x1] %vm1249_vm7, %v1889_v14  ;;  %1258 = vst.msk [vmem:[%s2095_s22 + $0x24] sm:$0x1] %vm1249_vm7, %v1889_v14 }
  0x40   : > { %1809 = vmatmul.mubr.msk.bf16.gmra.mrb[4].mxu0 %vm513_vm1, %v1679_v13  ;;  %1260 = vst.msk [vmem:[%s2095_s22 + $0x2c] sm:$0x1] %vm1249_vm7, %v1889_v14  ;;  %1262 = vst.msk [vmem:[%s2095_s22 + $0x34] sm:$0x1] %vm1249_vm7, %v1889_v14 }
  0x41   : > { %1264 = vst.msk [vmem:[%s2095_s22 + $0x3c] sm:$0x1] %vm1249_vm7, %v1889_v14  ;;  %1266 = vst.msk [vmem:[%s2095_s22 + $0x44] sm:$0x1] %vm1249_vm7, %v1889_v14 }
  0xf3   : > { %v1776_v16 = vpop.f32.mrb[0].mxu1 }
  0xf4   : > { %v564_v17 = vpop.f32.mrb[1].mxu1 }
  0xf5   : > { %v1777_v18 = vpop.f32.mrb[2].mxu1 }
  0xf6   : > { %v567_v19 = vpop.f32.mrb[3].mxu1 }
 0x108   : > { %v1806_v20 = vpop.f32.mrb[0].mxu0 }
 0x109   : > { %v1826_v22 = vadd.f32 %v1806_v20, %v1776_v16  ;;  %v1022_v25 = vpop.f32.mrb[1].mxu0  ;;  %v2200_v16 = vld [vmem:[%s343_s18] ss:$0 sm:$0xff] }
 0x10a   : > { %v1790_v23 = vpop.f32.mrb[4].mxu1  ;;  %v1827_v26 = vadd.f32 %v1022_v25, %v564_v17  ;;  %v1807_v28 = vpop.f32.mrb[2].mxu0  ;;  %v2202_v17 = vand.u32 127, %v1221_v15 }
 0x10b   : > { %v685_v27 = vpop.f32.mrb[5].mxu1  ;;  %v1070_v29 = vadd.f32 %v1826_v22, %v1685_v21  ;;  %v1828_v30 = vadd.f32 %v1807_v28, %v1777_v18  ;;  %v1025_v2 = vpop.f32.mrb[3].mxu0 }
 0x10c   : > { %v1791_v31 = vpop.f32.mrb[6].mxu1  ;;  %v1068_v32 = vadd.f32 %v1827_v26, %v1685_v21  ;;  %v1829_v33 = vadd.f32 %v1025_v2, %v567_v19  ;;  %vm1223_vm8 = vcmp.lt.s32.totalorder %v2202_v17, 32 }
 0x10d   : > { %v688_v24 = vpop.f32.mrb[7].mxu1  ;;  %v1078_v34 = vmax.f32 %v1070_v29, 0.0  ;;  %v1071_v35 = vadd.f32 %v1828_v30, %v1685_v21 }
 0x10e   : > { %v1076_v38 = vmax.f32 %v1068_v32, 0.0  ;;  %v1069_v39 = vadd.f32 %v1829_v33, %v1685_v21 }
 0x10f   : > { %v1086_v40 = vpack.c.bf16 %v1078_v34, %v1078_v34  ;;  %v1079_v41 = vmax.f32 %v1071_v35, 0.0  ;;  %v1110_v44 = vadd.f32 %v1686_v37, %v1078_v34 }
 0x110   : > { %v1084_v42 = vpack.c.bf16 %v1076_v38, %v1076_v38  ;;  %v1077_v43 = vmax.f32 %v1069_v39, 0.0  ;;  %v1108_v47 = vadd.f32 %v1686_v37, %v1076_v38  ;;  %v1712_v38 = vld [vmem:[%s2095_s22 + $0x1c] sm:$0x1] }
 0x111   : > { %1095 = vst.msk [vmem:[%s2144_s15 + $0x8] sm:$0xf] %vm1092_vm5, %v1086_v40  ;;  %v1087_v45 = vpack.c.bf16 %v1079_v41, %v1079_v41  ;;  %v1111_v46 = vadd.f32 %v1686_v37, %v1079_v41 }
 0x112   : > { %1093 = vst.msk [vmem:[%s2144_s15] sm:$0xf] %vm1092_vm5, %v1084_v42  ;;  %v1085_v48 = vpack.c.bf16 %v1077_v43, %v1077_v43  ;;  %v1109_v49 = vadd.f32 %v1686_v37, %v1077_v43 }
 0x113   : > { %v1810_v50 = vpop.f32.mrb[4].mxu0  ;;  %1096 = vst.msk [vmem:[%s2144_s15 + $0xc] sm:$0xf] %vm1092_vm5, %v1087_v45  ;;  %v1117_v1 = vpack.c.bf16 %v1111_v46, %v1110_v44 }
 0x114   : > { %v1830_v8 = vadd.f32 %v1810_v50, %v1790_v23  ;;  %v1038_v51 = vpop.f32.mrb[5].mxu0  ;;  %1094 = vst.msk [vmem:[%s2144_s15 + $0x4] sm:$0xf] %vm1092_vm5, %v1085_v48  ;;  %v1116_v52 = vpack.c.bf16 %v1109_v49, %v1108_v47  ;;  %v1702_v49 = vld [vmem:[%s2095_s22 + $0x8] sm:$0xf] }
 0x115   : > { %v1831_v53 = vadd.f32 %v1038_v51, %v685_v27  ;;  %v1811_v56 = vpop.f32.mrb[6].mxu0 }
 0x116   : > { %v1074_v57 = vadd.f32 %v1830_v8, %v1685_v21  ;;  %v1832_v54 = vadd.f32 %v1811_v56, %v1791_v31  ;;  %v1041_v55 = vpop.f32.mrb[7].mxu0  ;;  %1816 = vmatprep.mubr.msk.bf16.mxu1 %vm1143_vm6, %v1116_v52 }
 0x117   : > { %v1072_v58 = vadd.f32 %v1831_v53, %v1685_v21  ;;  %v1833_v59 = vadd.f32 %v1041_v55, %v688_v24  ;;  %1817 = vmatmul.mubr.msk.bf16.vlgmr.msra.gmra.mrb[8].mxu1 %vm1143_vm6, %v1117_v1 }
 0x118   : > { %v1082_v60 = vmax.f32 %v1074_v57, 0.0  ;;  %v1075_v61 = vadd.f32 %v1832_v54, %v1685_v21  ;;  %v1704_v57 = vld [vmem:[%s2095_s22 + $0xc] sm:$0x1] }
 0x119   : > { %v1080_v62 = vmax.f32 %v1072_v58, 0.0  ;;  %v1073_v63 = vadd.f32 %v1833_v59, %v1685_v21 }
 0x11a   : > { %v1090_v0 = vpack.c.bf16 %v1082_v60, %v1082_v60  ;;  %v1083_v3 = vmax.f32 %v1075_v61, 0.0  ;;  %v1114_v6 = vadd.f32 %v1686_v37, %v1082_v60 }
 0x11b   : > { %v1088_v4 = vpack.c.bf16 %v1080_v62, %v1080_v62  ;;  %v1081_v5 = vmax.f32 %v1073_v63, 0.0  ;;  %v1112_v10 = vadd.f32 %v1686_v37, %v1080_v62  ;;  %v1714_v62 = vld [vmem:[%s2095_s22 + $0x20] sm:$0xf] }
 0x11c   : > { %1099 = vst.msk [vmem:[%s2144_s15 + $0x18] sm:$0xf] %vm1092_vm5, %v1090_v0  ;;  %v1091_v7 = vpack.c.bf16 %v1083_v3, %v1083_v3  ;;  %v1115_v9 = vadd.f32 %v1686_v37, %v1083_v3 }
 0x11d   : > { %1097 = vst.msk [vmem:[%s2144_s15 + $0x10] sm:$0xf] %vm1092_vm5, %v1088_v4  ;;  %v1089_v11 = vpack.c.bf16 %v1081_v5, %v1081_v5  ;;  %v1113_v12 = vadd.f32 %v1686_v37, %v1081_v5  ;;  %v1710_v37 = vld [vmem:[%s2095_s22 + $0x18] sm:$0xf] }
 0x11e   : > { %1100 = vst.msk [vmem:[%s2144_s15 + $0x1c] sm:$0xf] %vm1092_vm5, %v1091_v7  ;;  %v1119_v13 = vpack.c.bf16 %v1115_v9, %v1114_v6  ;;  %v1716_v6 = vld [vmem:[%s2095_s22 + $0x24] sm:$0x1] }
 0x11f   : > { %1098 = vst.msk [vmem:[%s2144_s15 + $0x14] sm:$0xf] %vm1092_vm5, %v1089_v11  ;;  %v1118_v36 = vpack.c.bf16 %v1113_v12, %v1112_v10 }
 0x121   : > { %1820 = vmatprep.mubr.msk.bf16.mxu1 %vm1143_vm6, %v1118_v36 }
 0x122   : > { %1821 = vmatmul.mubr.msk.bf16.gmra.mrb[12].mxu1 %vm1143_vm6, %v1119_v13 }
 0x1ea   : > { %v1818_v18 = vpop.f32.mrb[8].mxu1 }
 0x1eb   : > { %v1199_v19 = vadd.f32 %v1818_v18, %v2200_v16  ;;  %v1190_v20 = vpop.f32.mrb[9].mxu1 }
 0x1ec   : > { %v1191_v21 = vadd.f32 %v2200_v16, %v1190_v20  ;;  %v1819_v22 = vpop.f32.mrb[10].mxu1  ;;  %v1706_v20 = vld [vmem:[%s2095_s22 + $0x10] sm:$0xf] }
 0x1ed   : > { %v1226_v23 = vmax.f32 %v1199_v19, 0.0  ;;  %v1202_v14 = vadd.f32 %v1819_v22, %v2200_v16  ;;  %v1193_v25 = vpop.f32.mrb[11].mxu1 }
 0x1ee   : > { %v1224_v26 = vmax.f32 %v1191_v21, 0.0  ;;  %v1194_v27 = vadd.f32 %v2200_v16, %v1193_v25 }
 0x1ef   : > { %v1227_v28 = vmax.f32 %v1202_v14, 0.0  ;;  %v1234_v29 = vsel %vm1223_vm8, %v1226_v23, %v1199_v19 }
 0x1f0   : > { %v1225_v30 = vmax.f32 %v1194_v27, 0.0  ;;  %1440 = vrot.lane.b32.xlu1 %v1234_v29, %s1890_s19  ;;  %v1740_v31 = vpack.c.bf16 %v1234_v29, %v1234_v29  ;;  %v1232_v2 = vsel %vm1223_vm8, %v1224_v26, %v1191_v21  ;;  %v1708_v21 = vld [vmem:[%s2095_s22 + $0x14] sm:$0x1] }
 0x1f1   : > { %1436 = vrot.lane.b32.xlu0 %v1232_v2, %s1890_s19  ;;  %v1738_v32 = vpack.c.bf16 %v1232_v2, %v1232_v2  ;;  %v1235_v33 = vsel %vm1223_vm8, %v1227_v28, %v1202_v14 }
 0x1f2   : > { %v1310_v24 = vshrl.u32 %v1740_v31, 16  ;;  %v1741_v34 = vpack.c.bf16 %v1235_v33, %v1235_v33  ;;  %v1233_v35 = vsel %vm1223_vm8, %v1225_v30, %v1194_v27  ;;  %v1313_v39 = vshll.u32 %v1740_v31, 16 }
 0x1f3   : > { %v1294_v40 = vshrl.u32 %v1738_v32, 16  ;;  %v1739_v41 = vpack.c.bf16 %v1233_v35, %v1233_v35  ;;  %v1297_v44 = vshll.u32 %v1738_v32, 16 }
 0x1f4   : > { %v1312_v43 = vrot.slane %v1310_v24, 7  ;;  %1442 = vrot.lane.b32.xlu1 %v1235_v33, %s1890_s19  ;;  %v1318_v46 = vshrl.u32 %v1741_v34, 16  ;;  %v1321_v47 = vshll.u32 %v1741_v34, 16 }
 0x1f5   : > { %v1822_v45 = vpop.f32.mrb[12].mxu1  ;;  %v1296_v50 = vrot.slane %v1294_v40, 7  ;;  %v1302_v51 = vshrl.u32 %v1739_v41, 16  ;;  %v1305_v52 = vshll.u32 %v1739_v41, 16  ;;  %1438 = vrot.lane.b32.xlu0 %v1233_v35, %s1890_s19 }
 0x1f6   : > { %v1215_v1 = vadd.f32 %v1822_v45, %v2200_v16  ;;  %v1206_v8 = vpop.f32.mrb[13].mxu1  ;;  %v1315_v53 = vor.u32 %v1313_v39, %v1312_v43  ;;  %v1316_v56 = vrot.slane %v1312_v43, 4  ;;  %v1320_v55 = vrot.slane %v1318_v46, 7  ;;  %v1728_v45 = vld [vmem:[%s2095_s22 + $0x3c] sm:$0x1] }
 0x1f7   : > { %v1207_v54 = vadd.f32 %v2200_v16, %v1206_v8  ;;  %v1823_v58 = vpop.f32.mrb[14].mxu1  ;;  %v1299_v59 = vor.u32 %v1297_v44, %v1296_v50  ;;  %v1300_v60 = vrot.slane %v1296_v50, 4  ;;  %v1304_v36 = vrot.slane %v1302_v51, 7  ;;  %v1726_v44 = vld [vmem:[%s2095_s22 + $0x38] sm:$0xf] }
 0x1f8   : > { %v1230_v61 = vmax.f32 %v1215_v1, 0.0  ;;  %v1218_v63 = vadd.f32 %v1823_v58, %v2200_v16  ;;  %v1209_v0 = vpop.f32.mrb[15].mxu1  ;;  %v1393_v3 = vsel %vm2222_vm11, %v1315_v53, %v1710_v37  ;;  %v1396_v4 = vsel %vm2229_vm12, %v1316_v56, %v1712_v38  ;;  %v1718_v37 = vld [vmem:[%s2095_s22 + $0x28] sm:$0xf]  ;;  %v1720_v38 = vld [vmem:[%s2095_s22 + $0x2c] sm:$0x1] }
 0x1f9   : > { %v1228_v5 = vmax.f32 %v1207_v54, 0.0  ;;  %v1323_v7 = vor.u32 %v1321_v47, %v1320_v55  ;;  %1711 = vst [vmem:[%s2095_s22 + $0x18] sm:$0xf] %v1393_v3  ;;  %1713 = vst [vmem:[%s2095_s22 + $0x1c] sm:$0x1] %v1396_v4  ;;  %v1378_v9 = vsel %vm2222_vm11, %v1299_v59, %v1702_v49  ;;  %v1384_v10 = vsel %vm2229_vm12, %v1300_v60, %v1704_v57 }
 0x1fa   : > { %v1324_v11 = vrot.slane %v1320_v55, 4  ;;  %v1231_v12 = vmax.f32 %v1218_v63, 0.0  ;;  %1703 = vst [vmem:[%s2095_s22 + $0x8] sm:$0xf] %v1378_v9  ;;  %1705 = vst [vmem:[%s2095_s22 + $0xc] sm:$0x1] %v1384_v10  ;;  %v1210_v15 = vadd.f32 %v2200_v16, %v1209_v0  ;;  %v1238_v23 = vsel %vm1223_vm8, %v1230_v61, %v1215_v1 }
 0x1fb   : > { %v1399_v13 = vsel %vm2222_vm11, %v1323_v7, %v1714_v62  ;;  %v1236_v18 = vsel %vm1223_vm8, %v1228_v5, %v1207_v54  ;;  %v1307_v14 = vor.u32 %v1305_v52, %v1304_v36  ;;  %v1308_v25 = vrot.slane %v1304_v36, 4  ;;  %v1730_v53 = vld [vmem:[%s2095_s22 + $0x40] sm:$0xf]  ;;  %v1732_v56 = vld [vmem:[%s2095_s22 + $0x44] sm:$0x1] }
 0x1fc   : > { %1715 = vst [vmem:[%s2095_s22 + $0x20] sm:$0xf] %v1399_v13  ;;  %v1402_v19 = vsel %vm2229_vm12, %v1324_v11, %v1716_v6  ;;  %1444 = vrot.lane.b32.xlu0 %v1236_v18, %s1890_s19  ;;  %v1742_v22 = vpack.c.bf16 %v1236_v18, %v1236_v18  ;;  %v1239_v16 = vsel %vm1223_vm8, %v1231_v12, %v1218_v63  ;;  %v1229_v26 = vmax.f32 %v1210_v15, 0.0  ;;  %v1722_v57 = vld [vmem:[%s2095_s22 + $0x30] sm:$0xf] }
 0x1fd   : > { %1717 = vst [vmem:[%s2095_s22 + $0x24] sm:$0x1] %v1402_v19  ;;  %v1744_v27 = vpack.c.bf16 %v1238_v23, %v1238_v23  ;;  %v1745_v29 = vpack.c.bf16 %v1239_v16, %v1239_v16  ;;  %v1387_v30 = vsel %vm2222_vm11, %v1307_v14, %v1706_v20  ;;  %v1390_v31 = vsel %vm2229_vm12, %v1308_v25, %v1708_v21  ;;  %v1724_v54 = vld [vmem:[%s2095_s22 + $0x34] sm:$0x1] }
 0x1fe   : > { %v1326_v28 = vshrl.u32 %v1742_v22, 16  ;;  %v1237_v2 = vsel %vm1223_vm8, %v1229_v26, %v1210_v15  ;;  %1707 = vst [vmem:[%s2095_s22 + $0x10] sm:$0xf] %v1387_v30  ;;  %1709 = vst [vmem:[%s2095_s22 + $0x14] sm:$0x1] %v1390_v31  ;;  %v1329_v24 = vshll.u32 %v1742_v22, 16 }
 0x1ff   : > { %v1342_v32 = vshrl.u32 %v1744_v27, 16  ;;  %1446 = vrot.lane.b32.xlu1 %v1237_v2, %s1890_s19  ;;  %v1743_v34 = vpack.c.bf16 %v1237_v2, %v1237_v2  ;;  %v1350_v35 = vshrl.u32 %v1745_v29, 16  ;;  %v1345_v17 = vshll.u32 %v1744_v27, 16 }
 0x200   : > { %v1328_v33 = vrot.slane %v1326_v28, 7  ;;  %1448 = vrot.lane.b32.xlu0 %v1238_v23, %s1890_s19  ;;  %v1353_v50 = vshll.u32 %v1745_v29, 16 }
 0x201   : > { %v1344_v39 = vrot.slane %v1342_v32, 7  ;;  %v1334_v43 = vshrl.u32 %v1743_v34, 16  ;;  %v1352_v49 = vrot.slane %v1350_v35, 7  ;;  %v1337_v52 = vshll.u32 %v1743_v34, 16 }
 0x202   : > { %v1331_v40 = vor.u32 %v1329_v24, %v1328_v33  ;;  %v1332_v41 = vrot.slane %v1328_v33, 4 }
 0x203   : > { %v1347_v46 = vor.u32 %v1345_v17, %v1344_v39  ;;  %v1348_v47 = vrot.slane %v1344_v39, 4  ;;  %v1336_v51 = vrot.slane %v1334_v43, 7  ;;  %1450 = vrot.lane.b32.xlu1 %v1239_v16, %s1890_s19  ;;  %v1355_v59 = vor.u32 %v1353_v50, %v1352_v49 }
 0x204   : > { %v1405_v1 = vsel %vm2222_vm11, %v1331_v40, %v1718_v37  ;;  %v1408_v8 = vsel %vm2229_vm12, %v1332_v41, %v1720_v38  ;;  %v1356_v60 = vrot.slane %v1352_v49, 4 }
 0x205   : > { %1719 = vst [vmem:[%s2095_s22 + $0x28] sm:$0xf] %v1405_v1  ;;  %1721 = vst [vmem:[%s2095_s22 + $0x2c] sm:$0x1] %v1408_v8  ;;  %v1417_v55 = vsel %vm2222_vm11, %v1347_v46, %v1726_v44  ;;  %v1420_v58 = vsel %vm2229_vm12, %v1348_v47, %v1728_v45  ;;  %v1339_v61 = vor.u32 %v1337_v52, %v1336_v51  ;;  %v1340_v62 = vrot.slane %v1336_v51, 4 }
 0x206   : > { %1727 = vst [vmem:[%s2095_s22 + $0x38] sm:$0xf] %v1417_v55  ;;  %1729 = vst [vmem:[%s2095_s22 + $0x3c] sm:$0x1] %v1420_v58  ;;  %v1423_v63 = vsel %vm2222_vm11, %v1355_v59, %v1730_v53  ;;  %v1426_v0 = vsel %vm2229_vm12, %v1356_v60, %v1732_v56 }
 0x207   : > { %v1411_v3 = vsel %vm2222_vm11, %v1339_v61, %v1722_v57  ;;  %v1414_v4 = vsel %vm2229_vm12, %v1340_v62, %v1724_v54  ;;  %1731 = vst [vmem:[%s2095_s22 + $0x40] sm:$0xf] %v1423_v63  ;;  %1733 = vst [vmem:[%s2095_s22 + $0x44] sm:$0x1] %v1426_v0 }
 0x208   : > { %1723 = vst [vmem:[%s2095_s22 + $0x30] sm:$0xf] %v1411_v3  ;;  %1725 = vst [vmem:[%s2095_s22 + $0x34] sm:$0x1] %v1414_v4 }
 0x262   : > { %v1441_v5 = vpop.permute.xlu1 %1440 }
 0x263   : > { %1463 = vst.msk [vmem:[%s358_s24 + $0x10] sm:$0xff] %vm1460_vm13, %v1441_v5  ;;  %v1437_v6 = vpop.permute.xlu0 %1436 }
 0x264   : > { %1461 = vst.msk [vmem:[%s358_s24] sm:$0xff] %vm1460_vm13, %v1437_v6 }
 0x266   : > { %v1443_v42 = vpop.permute.xlu1 %1442 }
 0x267   : > { %1464 = vst.msk [vmem:[%s358_s24 + $0x18] sm:$0xff] %vm1460_vm13, %v1443_v42  ;;  %v1439_v48 = vpop.permute.xlu0 %1438 }
 0x268   : > { %1462 = vst.msk [vmem:[%s358_s24 + $0x8] sm:$0xff] %vm1460_vm13, %v1439_v48 }
 0x26e   : > { %v1445_v7 = vpop.permute.xlu0 %1444 }
 0x26f   : > { %1465 = vst.msk [vmem:[%s358_s24 + $0x20] sm:$0xff] %vm1460_vm13, %v1445_v7 }
 0x271   : > { %v1447_v9 = vpop.permute.xlu1 %1446 }
 0x272   : > { %v1449_v10 = vpop.permute.xlu0 %1448  ;;  %1466 = vst.msk [vmem:[%s358_s24 + $0x28] sm:$0xff] %vm1460_vm13, %v1447_v9 }
 0x273   : > { %1467 = vst.msk [vmem:[%s358_s24 + $0x30] sm:$0xff] %vm1460_vm13, %v1449_v10 }
 0x275   : > { %v1451_v11 = vpop.permute.xlu1 %1450 }
 0x276   : > { %1468 = vst.msk [vmem:[%s358_s24 + $0x38] sm:$0xff] %vm1460_vm13, %v1451_v11 }
 0x277 PF: > { %s19_s27 = sadd.s32 1, %s1887_s27  }
 0x278   : > { %p16_p4 = scmp.ge.s32.totalorder %s19_s27, 4  }
 0x27a   :  { %18 = sbr.rel (!%p16_p4) target bundleno = 1 (0x1), region = 109 }

// kernel: panoptic_bev_forward.5
= control target key start
LH: loop header
LB: loop body
LE: loop exit
PB: predicated region body
PF: predicated region fallthrough
CT: control target
= control target key end

     0   :  { %s3218_s24 = smov 0   ;;  %s4127_s0 = inlined_call_operand.vmem [shape: bf16[2,10,10,32], index: 0, kind: input, shape index: {}]   ;;  %s4128_s1 = inlined_call_operand.vmem [shape: bf16[9,32,32], index: 1, kind: input, shape index: {}]   ;;  %s4129_s2 = inlined_call_operand.vmem [shape: f32[1,32], index: 2, kind: input, shape index: {}]   ;;  %s4130_s3 = inlined_call_operand.vmem [shape: bf16[32,128], index: 3, kind: input, shape index: {}]   ;;  %s4131_s4 = inlined_call_operand.vmem [shape: bf16[32,128], index: 4, kind: input, shape index: {}]   ;;  %s4132_s5 = inlined_call_operand.vmem [shape: f32[1,128], index: 5, kind: input, shape index: {}]   ;;  %s4133_s6 = inlined_call_operand.vmem [shape: f32[2,8,8,128], index: 6, kind: output, shape index: {0}]   ;;  %s4134_s7 = inlined_call_operand.vmem [shape: f32[2,1,32], index: 7, kind: output, shape index: {1}]  }
   0x1 LB: > { %s2606_s25 = sadd.s32 4294967295, %s3176_s24   ;;  %p2610_p0 = scmp.ge.s32.totalorder %s3176_s24, 1  ;;  %s3176_s24 = sphi %s3218_s24, %s18_s24  }
   0x2   : > { %p240_p1 = scmp.lt.s32.totalorder %s3176_s24, 3 }
   0x4   : > { %p241_p2 = pnand %p2610_p0, %p240_p1 }
   0x5   : > { %v3229_v0 = vld [vmem:[%s4128_s1 + $0x30] sm:$0xff] (!%p241_p2)   ;;  %p275_p3 = scmp.lt.s32.totalorder (!%p241_p2), %s2606_s25, 1  ;;  %v3234_v1 = vld [vmem:[%s4128_s1 + $0x38] sm:$0xff] (!%p241_p2)   ;;  %v3144_v2 = vld [vmem:[%s4128_s1 + $0x40] sm:$0xff] (!%p241_p2)   ;;  %vm453_vm0 = vcmask (!%p241_p2), 261120   ;;  %vm664_vm4 = vcmask (!%p241_p2), 1042432  }
   0x6   : > { %244 = sbr.rel (%p241_p2) target bundleno = 1040 (0x410), region = 44  ;;  %2959 = vmatprep.subr.bf16.mxu0 (!%p241_p2), %v3229_v0  ;;  %v3145_v3 = vld [vmem:[%s4128_s1 + $0x10] sm:$0xff] (!%p241_p2)   ;;  %v3146_v4 = vld [vmem:[%s4128_s1 + $0x18] sm:$0xff] (!%p241_p2)   ;;  %v3147_v5 = vld [vmem:[%s4128_s1 + $0x48] sm:$0xff] (!%p241_p2)   ;;  %vm309_vm1 = vsmask.f32 (!%p241_p2), 3328 }
   0x7   : > { %2960 = vmatpush3.bf16.msra.mxu0 (!%p241_p2), %v3229_v0  ;;  %2923 = vmatprep.subr.bf16.mxu1 (!%p241_p2), %v3145_v3  ;;  %vm310_vm2 = vsmask.f32 (!%p241_p2), 7440  ;;  %v3302_v34 = vld [vmem:[%s4128_s1 + $0x50] sm:$0xff] (!%p241_p2)   ;;  %v3149_v41 = vld [vmem:[%s4128_s1] sm:$0xff] (!%p241_p2)   ;;  %vm665_vm5 = vcmask (!%p241_p2), 1046532   ;;  %vm2524_vm7 = vcmask (!%p241_p2), 253952  }
   0x8   : > { %2961 = vmatprep.subr.bf16.mxu0 (!%p241_p2), %v3234_v1  ;;  %2924 = vmatpush3.bf16.msra.mxu1 (!%p241_p2), %v3145_v3  ;;  %vm3306_vm3 = vmor (!%p241_p2), %vm309_vm1, %vm310_vm2 }
   0x9   : > { %2925 = vmatprep.subr.bf16.mxu1 (!%p241_p2), %v3146_v4  ;;  %vm3472_vm6 = vmor (!%p241_p2), %vm664_vm4, %vm665_vm5 }
   0xb   : > { %2962 = vmatpush3.bf16.msra.mxu0 (!%p241_p2), %v3234_v1 }
   0xc   : > { %2971 = vmatprep.subr.bf16.mxu0 (!%p241_p2), %v3144_v2  ;;  %2926 = vmatpush3.bf16.msra.mxu1 (!%p241_p2), %v3146_v4 }
   0xd   : > { %s4144_s25 = smov (!%p275_p3, %s2606_s25), 1  ;;  %2935 = vmatprep.subr.bf16.mxu1 %v3149_v41 }
   0xe   : > { %s3131_s11 = smul.u32 80, %s4144_s25  ;;  %s287_s19 = scalar_lea.vmem %s4134_s7, %s4144_s25 }
   0xf   : > { %s2856_s17 = sshll.u32 %s4144_s25, 6 }
  0x10   : > { %s3254_s16 = scalar_lea.vmem %s4127_s0, %s3131_s11  ;;  %s4065_s20 = scalar_lea.vmem %s4133_s6, %s2856_s17 }
  0x11   : > { %v3142_v6 = vld [vmem:[%s3254_s16 + $0x8] ss:$8 sps:$4 sm:$0xff]   ;;  %v3143_v7 = vld [vmem:[%s3254_s16 + $0x18] ss:$8 sps:$4 sm:$0xff]   ;;  %v3270_v10 = vld [vmem:[%s3254_s16 + $0x4] sm:$0x1] }
  0x12   : > { %2963 = vmatprep.mubr.msk.bf16.mxu0 %vm453_vm0, %v3142_v6  ;;  %v3264_v8 = vld [vmem:[%s3254_s16] sm:$0xf]  ;;  %v3267_v9 = vld [vmem:[%s3254_s16 + $0x8] sm:$0xf]  ;;  %v3274_v11 = vld [vmem:[%s3254_s16 + $0xc] sm:$0x1] }
  0x13   : > { %2964 = vmatmul.mubr.msk.bf16.vlgmr.msra.gmra.mrb[0].mxu0 %vm453_vm0, %v3143_v7  ;;  %v313_v12 = vshrl.u32 %v3264_v8, 16  ;;  %v316_v13 = vshll.u32 %v3264_v8, 16  ;;  %v322_v14 = vshll.u32 %v3270_v10, 16  ;;  %v327_v15 = vshrl.u32 %v3267_v9, 16  ;;  %v3285_v20 = vld [vmem:[%s3254_s16 + $0x10] sm:$0xf] }
  0x14   : > { %2972 = vmatpush3.bf16.msra.mxu0 %v3144_v2  ;;  %v330_v16 = vshll.u32 %v3267_v9, 16  ;;  %v336_v17 = vshll.u32 %v3274_v11, 16  ;;  %v669_v18 = vrot.slane %v3270_v10, 5  ;;  %v673_v19 = vrot.slane %v3274_v11, 5  ;;  %v3288_v25 = vld [vmem:[%s3254_s16 + $0x18] sm:$0xf] }
  0x15   : > { %2973 = vmatprep.subr.bf16.mxu0 %v3147_v5  ;;  %v315_v21 = vrot.slane %v313_v12, 4  ;;  %v318_v22 = vrot.slane %v316_v13, 5  ;;  %v324_v23 = vrot.slane %v322_v14, 5  ;;  %v329_v24 = vrot.slane %v327_v15, 4  ;;  %v3291_v28 = vld [vmem:[%s3254_s16 + $0x14] sm:$0x1] }
  0x16   : > { %v332_v26 = vrot.slane %v330_v16, 5  ;;  %v338_v27 = vrot.slane %v336_v17, 5  ;;  %v3294_v29 = vld [vmem:[%s3254_s16 + $0x1c] sm:$0x1]  ;;  %v341_v31 = vshrl.u32 %v3285_v20, 16  ;;  %v344_v32 = vshll.u32 %v3285_v20, 16 }
  0x17   : > { %v319_v30 = vor.u32 %v318_v22, %v315_v21  ;;  %v350_v33 = vshll.u32 %v3291_v28, 16  ;;  %v355_v37 = vshrl.u32 %v3288_v25, 16  ;;  %v358_v38 = vshll.u32 %v3288_v25, 16  ;;  %v2682_v40 = vld [vmem:[%s3254_s16 + $0x8] sm:$0xf] }
  0x18   : > { %2974 = vmatpush3.bf16.msra.mxu0 %v3147_v5  ;;  %v333_v36 = vor.u32 %v332_v26, %v329_v24  ;;  %v364_v39 = vshll.u32 %v3294_v29, 16  ;;  %v343_v43 = vrot.slane %v341_v31, 4  ;;  %v346_v44 = vrot.slane %v344_v32, 5  ;;  %v3318_v45 = vld [vmem:[%s3254_s16 + $0xc] sm:$0x1] }
  0x19   : > { %v320_v42 = vrot.slane %v319_v30, 4  ;;  %2983 = vmatprep.subr.bf16.mxu0 %v3302_v34  ;;  %v2628_v46 = vcombine.low %v3264_v8, %v3267_v9  ;;  %v357_v48 = vrot.slane %v355_v37, 4  ;;  %v360_v49 = vrot.slane %v358_v38, 5  ;;  %v2684_v50 = vld [vmem:[%s3254_s16 + $0x10] sm:$0xf] }
  0x1a   : > { %v334_v47 = vrot.slane %v333_v36, 4  ;;  %v2629_v51 = vcombine.low %v3285_v20, %v3288_v25  ;;  %v347_v53 = vor.u32 %v346_v44, %v343_v43  ;;  %v352_v54 = vrot.slane %v350_v33, 5  ;;  %v3331_v58 = vld [vmem:[%s3254_s16 + $0x14] sm:$0x1]  ;;  %v2686_v61 = vld [vmem:[%s3254_s16 + $0x18] sm:$0xf] }
  0x1b   : > { %v325_v52 = vsel %vm3306_vm3, %v320_v42, %v324_v23  ;;  %v366_v55 = vrot.slane %v364_v39, 5  ;;  %v361_v57 = vor.u32 %v360_v49, %v357_v48  ;;  %v961_v59 = vshrl.u32 %v2682_v40, 16  ;;  %v3336_v12 = vld [vmem:[%s3254_s16 + $0x1c] sm:$0x1]  ;;  %v2688_v17 = vld [vmem:[%s3254_s16 + $0x20] sm:$0xf] }
  0x1c   : > { %v339_v56 = vsel %vm3306_vm3, %v334_v47, %v338_v27  ;;  %v964_v60 = vshll.u32 %v2682_v40, 16  ;;  %v348_v63 = vrot.slane %v347_v53, 4  ;;  %v970_v2 = vshll.u32 %v3318_v45, 16  ;;  %v3346_v24 = vld [vmem:[%s3254_s16 + $0x24] sm:$0x1]  ;;  %v3151_v33 = vld [vmem:[%s4128_s1 + $0x8] sm:$0xff]  }
  0x1d   : > { %v2618_v62 = vcombine.low %v325_v52, %v339_v56  ;;  %v975_v3 = vshrl.u32 %v2684_v50, 16  ;;  %v362_v4 = vrot.slane %v361_v57, 4  ;;  %v963_v5 = vrot.slane %v961_v59, 4  ;;  %v3355_v47 = vld [vmem:[%s3254_s16 + $0x20] sm:$0xf] }
  0x1e   : > { %v966_v6 = vrot.slane %v964_v60, 5  ;;  %v978_v7 = vshll.u32 %v2684_v50, 16  ;;  %v353_v13 = vsel %vm3306_vm3, %v348_v63, %v352_v54  ;;  %v972_v14 = vrot.slane %v970_v2, 5  ;;  %v3361_v53 = vld [vmem:[%s3254_s16 + $0x24] sm:$0x1] }
  0x1f   : > { %2927 = vmatprep.mubr.msk.bf16.mxu1 %vm453_vm0, %v2618_v62  ;;  %v977_v15 = vrot.slane %v975_v3, 4  ;;  %v984_v16 = vshll.u32 %v3331_v58, 16  ;;  %v367_v21 = vsel %vm3306_vm3, %v362_v4, %v366_v55  ;;  %v989_v26 = vshrl.u32 %v2686_v61, 16  ;;  %v3366_v54 = vld [vmem:[%s4128_s1 + $0x20] sm:$0xff]   ;;  %v3372_v62 = vld [vmem:[%s3254_s16 + $0x28] sm:$0xf] }
  0x20   : > { %v967_v22 = vor.u32 %v966_v6, %v963_v5  ;;  %v980_v23 = vrot.slane %v978_v7, 5  ;;  %v2619_v27 = vcombine.low %v353_v13, %v367_v21  ;;  %v992_v31 = vshll.u32 %v2686_v61, 16  ;;  %v3380_v7 = vld [vmem:[%s3254_s16 + $0x2c] sm:$0x1]  ;;  %v2715_v9 = vld [vmem:[%s3254_s16 + $0x20] sm:$0xe] }
  0x21   : > { %v986_v30 = vrot.slane %v984_v16, 5  ;;  %v998_v32 = vshll.u32 %v3336_v12, 16  ;;  %v991_v38 = vrot.slane %v989_v26, 4  ;;  %v1003_v39 = vshrl.u32 %v2688_v17, 16  ;;  %v646_v11 = vld [vmem:[%s3254_s16 + $0x30] sm:$0xe] }
  0x22   : > { %v968_v36 = vrot.slane %v967_v22, 4  ;;  %v981_v37 = vor.u32 %v980_v23, %v977_v15  ;;  %2928 = vmatmul.mubr.msk.bf16.vlgmr.msra.gmra.mrb[0].mxu1 %vm453_vm0, %v2619_v27  ;;  %v994_v40 = vrot.slane %v992_v31, 5  ;;  %v1006_v43 = vshll.u32 %v2688_v17, 16  ;;  %v3391_v23 = vld [vmem:[%s3254_s16 + $0x30] sm:$0xf] }
  0x23   : > { %v1000_v42 = vrot.slane %v998_v32, 5  ;;  %v1012_v44 = vshll.u32 %v3346_v24, 16  ;;  %v1005_v50 = vrot.slane %v1003_v39, 4  ;;  %v1228_v52 = vrot.slane %v3336_v12, 5  ;;  %2936 = vmatpush3.bf16.msra.mxu1 %v3149_v41  ;;  %v3395_v32 = vld [vmem:[%s3254_s16 + $0x38] sm:$0xf] }
  0x24   : > { %v973_v48 = vsel %vm3306_vm3, %v968_v36, %v972_v14  ;;  %v982_v49 = vrot.slane %v981_v37, 4  ;;  %v995_v56 = vor.u32 %v994_v40, %v991_v38  ;;  %v1008_v57 = vrot.slane %v1006_v43, 5  ;;  %2937 = vmatprep.subr.bf16.mxu1 %v3151_v33  ;;  %v3401_v36 = vld [vmem:[%s3254_s16 + $0x3c] sm:$0x1] }
  0x25   : > { %v2493_v55 = vunpack.c.l.bf16 %v973_v48  ;;  %v1014_v59 = vrot.slane %v1012_v44, 5  ;;  %v1232_v61 = vrot.slane %v3346_v24, 5  ;;  %v369_v41 = vshrl.u32 %v3355_v47, 16  ;;  %v642_v24 = vld [vmem:[%s3254_s16 + $0x10] sm:$0xe] }
  0x26   : > { %v987_v60 = vsel %vm3306_vm3, %v982_v49, %v986_v30  ;;  %v372_v63 = vshll.u32 %v3355_v47, 16  ;;  %v996_v5 = vrot.slane %v995_v56, 4  ;;  %v1009_v6 = vor.u32 %v1008_v57, %v1005_v50 }
  0x27   : > { %v3376_v2 = vcombine.low %v973_v48, %v987_v60  ;;  %v2494_v3 = vunpack.c.l.bf16 %v987_v60  ;;  %v2501_v4 = vsel %vm453_vm0, %v2493_v55, 0.0  ;;  %v371_v13 = vrot.slane %v369_v41, 4  ;;  %2938 = vmatpush3.bf16.msra.mxu1 %v3151_v33  ;;  %v3398_v33 = vld [vmem:[%s3254_s16 + $0x34] sm:$0x1]  ;;  %v3150_v60 = vld [vmem:[%s4128_s1 + $0x58] sm:$0xff]  }
  0x28   : > { %v374_v14 = vrot.slane %v372_v63, 5  ;;  %v378_v15 = vshll.u32 %v3361_v53, 16  ;;  %v1001_v17 = vsel %vm3306_vm3, %v996_v5, %v1000_v42  ;;  %v383_v21 = vshrl.u32 %v3372_v62, 16  ;;  %2947 = vmatprep.subr.bf16.mxu1 %v3366_v54  ;;  %v2690_v42 = vld [vmem:[%s3254_s16 + $0x28] sm:$0xf] }
  0x29   : > { %2975 = vmatprep.mubr.msk.bf16.mxu0 %vm453_vm0, %v3376_v2  ;;  %v2502_v16 = vsel %vm453_vm0, %v2494_v3, 0.0  ;;  %v386_v22 = vshll.u32 %v3372_v62, 16  ;;  %v1010_v27 = vrot.slane %v1009_v6, 4  ;;  %v2495_v30 = vunpack.c.l.bf16 %v1001_v17 }
  0x2a   : > { %v2503_v26 = vadd.f32 %v2502_v16, %v2501_v4  ;;  %v375_v31 = vor.u32 %v374_v14, %v371_v13  ;;  %v380_v37 = vrot.slane %v378_v15, 5  ;;  %v385_v38 = vrot.slane %v383_v21, 4  ;;  %v3424_v14 = vld [vmem:[%s3254_s16 + $0x2c] sm:$0x1] }
  0x2b   : > { %v388_v39 = vrot.slane %v386_v22, 5  ;;  %v392_v40 = vshll.u32 %v3380_v7, 16  ;;  %v1015_v43 = vsel %vm3306_vm3, %v1010_v27, %v1014_v59  ;;  %v2504_v44 = vsel %vm453_vm0, %v2495_v30, 0.0 }
  0x2c   : > { %v376_v48 = vrot.slane %v375_v31, 4  ;;  %v397_v49 = vshrl.u32 %v3391_v23, 16  ;;  %v3409_v50 = vcombine.low %v1001_v17, %v1015_v43  ;;  %v2496_v55 = vunpack.c.l.bf16 %v1015_v43  ;;  %v2692_v17 = vld [vmem:[%s3254_s16 + $0x30] sm:$0xf] }
  0x2d   : > { %v389_v56 = vor.u32 %v388_v39, %v385_v38  ;;  %v394_v57 = vrot.slane %v392_v40, 5  ;;  %v400_v63 = vshll.u32 %v3391_v23, 16  ;;  %v406_v3 = vshll.u32 %v3398_v33, 16  ;;  %v3431_v38 = vld [vmem:[%s3254_s16 + $0x34] sm:$0x1] }
  0x2e   : > { %v381_v41 = vsel %vm3306_vm3, %v376_v48, %v380_v37  ;;  %v399_v59 = vrot.slane %v397_v49, 4  ;;  %2976 = vmatmul.mubr.msk.bf16.vlgmr.msra.gmra.mrb[0].mxu0 %vm453_vm0, %v3409_v50  ;;  %v411_v5 = vshrl.u32 %v3395_v32, 16  ;;  %v414_v6 = vshll.u32 %v3395_v32, 16 }
  0x2f   : > { %v390_v4 = vrot.slane %v389_v56, 4  ;;  %v420_v13 = vshll.u32 %v3401_v36, 16  ;;  %2984 = vmatpush3.bf16.msra.mxu0 %v3302_v34  ;;  %v402_v15 = vrot.slane %v400_v63, 5  ;;  %v408_v16 = vrot.slane %v406_v3, 5  ;;  %v3436_v34 = vld [vmem:[%s4128_s1 + $0x60] sm:$0xff]  }
  0x30   : > { %v1017_v21 = vshrl.u32 %v2690_v42, 16  ;;  %v1020_v22 = vshll.u32 %v2690_v42, 16  ;;  %v413_v30 = vrot.slane %v411_v5, 4  ;;  %v416_v31 = vrot.slane %v414_v6, 5  ;;  %2985 = vmatprep.subr.bf16.mxu0 %v3150_v60  ;;  %v2694_v42 = vld [vmem:[%s3254_s16 + $0x38] sm:$0xf] }
  0x31   : > { %v395_v27 = vsel %vm3306_vm3, %v390_v4, %v394_v57  ;;  %v422_v37 = vrot.slane %v420_v13, 5  ;;  %v403_v40 = vor.u32 %v402_v15, %v399_v59  ;;  %v1026_v56 = vshll.u32 %v3424_v14, 16 }
  0x32   : > { %v2620_v39 = vcombine.low %v381_v41, %v395_v27  ;;  %v1019_v43 = vrot.slane %v1017_v21, 4  ;;  %v1022_v48 = vrot.slane %v1020_v22, 5  ;;  %v417_v49 = vor.u32 %v416_v31, %v413_v30  ;;  %v3443_v21 = vld [vmem:[%s3254_s16 + $0x3c] sm:$0x1]  ;;  %v2696_v31 = vld [vmem:[%s3254_s16 + $0x40] sm:$0xf] }
  0x33   : > { %v1031_v57 = vshrl.u32 %v2692_v17, 16  ;;  %v1034_v63 = vshll.u32 %v2692_v17, 16  ;;  %v404_v3 = vrot.slane %v403_v40, 4  ;;  %v1040_v5 = vshll.u32 %v3431_v38, 16  ;;  %2986 = vmatpush3.bf16.msra.mxu0 %v3150_v60 }
  0x34   : > { %2931 = vmatprep.mubr.msk.bf16.mxu1 %vm453_vm0, %v2620_v39  ;;  %v1023_v4 = vor.u32 %v1022_v48, %v1019_v43  ;;  %v2505_v6 = vadd.f32 %v2504_v44, %v2503_v26  ;;  %v418_v41 = vrot.slane %v417_v49, 4  ;;  %v1028_v59 = vrot.slane %v1026_v56, 5  ;;  %2995 = vmatprep.subr.bf16.mxu0 %v3436_v34  ;;  %v3453_v39 = vld [vmem:[%s3254_s16 + $0x44] sm:$0x1]  ;;  %v2712_v56 = vld [vmem:[%s3254_s16 + $0x8] sm:$0xe] }
  0x35   : > { %v1033_v13 = vrot.slane %v1031_v57, 4  ;;  %v1036_v15 = vrot.slane %v1034_v63, 5  ;;  %v409_v17 = vsel %vm3306_vm3, %v404_v3, %v408_v16  ;;  %v1042_v27 = vrot.slane %v1040_v5, 5 }
  0x36   : > { %v1024_v22 = vrot.slane %v1023_v4, 4  ;;  %v2506_v30 = vsel %vm453_vm0, %v2496_v55, 0.0  ;;  %v423_v26 = vsel %vm3306_vm3, %v418_v41, %v422_v37  ;;  %v1045_v40 = vshrl.u32 %v2694_v42, 16 }
  0x37   : > { %v1037_v44 = vor.u32 %v1036_v15, %v1033_v13  ;;  %v2507_v60 = vadd.f32 %v2506_v30, %v2505_v6  ;;  %v2621_v43 = vcombine.low %v409_v17, %v423_v26  ;;  %v1048_v49 = vshll.u32 %v2694_v42, 16  ;;  %v2713_v13 = vld [vmem:[%s3254_s16 + $0x10] sm:$0xe] }
  0x38   : > { %v1029_v48 = vsel %vm3306_vm3, %v1024_v22, %v1028_v59  ;;  %v1054_v16 = vshll.u32 %v3443_v21, 16  ;;  %v1047_v63 = vrot.slane %v1045_v40, 4  ;;  %v1059_v3 = vshrl.u32 %v2696_v31, 16 }
  0x39   : > { %v1038_v57 = vrot.slane %v1037_v44, 4  ;;  %v2497_v55 = vunpack.c.l.bf16 %v1029_v48  ;;  %2932 = vmatmul.mubr.msk.bf16.gmra.mrb[4].mxu1 %vm453_vm0, %v2621_v43  ;;  %v1050_v37 = vrot.slane %v1048_v49, 5  ;;  %v1062_v5 = vshll.u32 %v2696_v31, 16  ;;  %v3169_v31 = vld [vmem:[%s4130_s3 + $0x8] sm:$0xff]  }
  0x3a   : > { %v1056_v4 = vrot.slane %v1054_v16, 5  ;;  %v1068_v6 = vshll.u32 %v3453_v39, 16  ;;  %v1061_v59 = vrot.slane %v1059_v3, 4  ;;  %2939 = vmatprep.mubr.msk.bf16.mxu1 %vm453_vm0, %v2628_v46  ;;  %v2720_v40 = vrot.slane %v2712_v56, 9 }
  0x3b   : > { %v1043_v41 = vsel %vm3306_vm3, %v1038_v57, %v1042_v27  ;;  %v2508_v42 = vsel %vm453_vm0, %v2497_v55, 0.0  ;;  %v1051_v30 = vor.u32 %v1050_v37, %v1047_v63  ;;  %v2714_v27 = vld [vmem:[%s3254_s16 + $0x18] sm:$0xe]  ;;  %v1064_v26 = vrot.slane %v1062_v5, 5  ;;  %v3155_v37 = vld [vmem:[%s4128_s1 + $0x28] sm:$0xff]  }
  0x3c   : > { %v3469_v15 = vcombine.low %v1029_v48, %v1043_v41  ;;  %v2498_v17 = vunpack.c.l.bf16 %v1043_v41  ;;  %v2509_v22 = vadd.f32 %v2508_v42, %v2507_v60  ;;  %v1070_v44 = vrot.slane %v1068_v6, 5  ;;  %v2717_v42 = vld [vmem:[%s3254_s16 + $0x30] sm:$0xe] }
  0x3d   : > { %v1220_v8 = vrot.slane %v3318_v45, 5  ;;  %v1052_v60 = vrot.slane %v1051_v30, 4  ;;  %v2721_v43 = vrot.slane %v2713_v13, 9  ;;  %v1224_v48 = vrot.slane %v3331_v58, 5  ;;  %v2716_v45 = vld [vmem:[%s3254_s16 + $0x28] sm:$0xe] }
  0x3e   : > { %2979 = vmatprep.mubr.msk.bf16.mxu0 %vm453_vm0, %v3469_v15  ;;  %v2510_v46 = vsel %vm453_vm0, %v2498_v17, 0.0  ;;  %v1065_v16 = vor.u32 %v1064_v26, %v1061_v59  ;;  %v2722_v56 = vrot.slane %v2714_v27, 9  ;;  %v2723_v3 = vrot.slane %v2715_v9, 9  ;;  %v640_v59 = vld [vmem:[%s3254_s16] sm:$0xe] }
  0x3f   : > { %v2511_v49 = vadd.f32 %v2510_v46, %v2509_v22  ;;  %v1221_v57 = vsel %vm3472_vm6, %v2720_v40, %v1220_v8  ;;  %v1057_v55 = vsel %vm3306_vm3, %v1052_v60, %v1056_v4  ;;  %v1225_v63 = vsel %vm3472_vm6, %v2721_v43, %v1224_v48  ;;  %v641_v13 = vld [vmem:[%s3254_s16 + $0x8] sm:$0xe]  ;;  %v2719_v30 = vld [vmem:[%s3254_s16 + $0x40] sm:$0xe] }
  0x40   : > { %v2630_v58 = vcombine.low %v3355_v47, %v3372_v62  ;;  %v677_v5 = vrot.slane %v3291_v28, 5  ;;  %v1066_v6 = vrot.slane %v1065_v16, 4  ;;  %v2499_v41 = vunpack.c.l.bf16 %v1057_v55  ;;  %v2718_v62 = vld [vmem:[%s3254_s16 + $0x38] sm:$0xe]  ;;  %v644_v40 = vld [vmem:[%s3254_s16 + $0x20] sm:$0xe] }
  0x41   : > { %2940 = vmatmul.mubr.msk.bf16.vlgmr.msra.gmra.mrb[0].mxu1 %vm453_vm0, %v2629_v51  ;;  %v2732_v4 = vcombine.low %v1221_v57, %v1225_v63  ;;  %v3505_v47 = vsel %vm3472_vm6, %v2722_v56, %v1228_v52  ;;  %v3511_v28 = vsel %vm3472_vm6, %v2723_v3, %v1232_v61  ;;  %v2724_v51 = vrot.slane %v2716_v45, 9 }
  0x42   : > { %v1071_v20 = vsel %vm3306_vm3, %v1066_v6, %v1070_v44  ;;  %v2512_v25 = vsel %vm453_vm0, %v2499_v41, 0.0  ;;  %2943 = vmatprep.mubr.msk.bf16.mxu1 %vm453_vm0, %v2630_v58  ;;  %2948 = vmatpush3.bf16.msra.mxu1 %v3366_v54  ;;  %v1236_v12 = vrot.slane %v3424_v14, 5  ;;  %v2725_v22 = vrot.slane %v2717_v42, 9  ;;  %v643_v54 = vld [vmem:[%s3254_s16 + $0x18] sm:$0xe]  ;;  %v3154_v6 = vld [vmem:[%s4128_s1 + $0x68] sm:$0xff]  }
  0x43   : > { %v3523_v52 = vcombine.low %v1057_v55, %v1071_v20  ;;  %v2500_v61 = vunpack.c.l.bf16 %v1071_v20  ;;  %v2513_v17 = vadd.f32 %v2512_v25, %v2511_v49  ;;  %2949 = vmatprep.subr.bf16.mxu1 %v3155_v37  ;;  %v681_v27 = vrot.slane %v3294_v29, 5  ;;  %v2764_v42 = vld [vmem:[%s3254_s16 + $0x10] sm:$0xf] }
  0x44   : > { %v2631_v26 = vcombine.low %v3391_v23, %v3395_v32  ;;  %v1240_v44 = vrot.slane %v3431_v38, 5  ;;  %v2733_v8 = vcombine.low %v3505_v47, %v3511_v28  ;;  %v2638_v9 = vrot.slane %v640_v59, 9  ;;  %v645_v38 = vld [vmem:[%s3254_s16 + $0x28] sm:$0xe]  ;;  %v2766_v28 = vld [vmem:[%s3254_s16 + $0x18] sm:$0xf] }
  0x45   : > { %2980 = vmatmul.mubr.msk.bf16.gmra.mrb[4].mxu0 %vm453_vm0, %v3523_v52  ;;  %v2514_v14 = vsel %vm453_vm0, %v2500_v61, 0.0  ;;  %v2639_v46 = vrot.slane %v641_v13, 9  ;;  %v1237_v29 = vsel %vm3472_vm6, %v2724_v51, %v1236_v12  ;;  %v2726_v23 = vrot.slane %v2718_v62, 9  ;;  %v3585_v61 = vld [vmem:[%s4128_s1 + $0x70] sm:$0xff]  }
  0x46   : > { %v2515_v60 = vadd.f32 %v2514_v14, %v2513_v17  ;;  %2987 = vmatprep.mubr.msk.bf16.mxu0 %vm453_vm0, %v2732_v4  ;;  %2950 = vmatpush3.bf16.msra.mxu1 %v3155_v37  ;;  %v2640_v32 = vrot.slane %v642_v24, 9  ;;  %v1241_v43 = vsel %vm3472_vm6, %v2725_v22, %v1240_v44  ;;  %v1244_v48 = vrot.slane %v3443_v21, 5  ;;  %v647_v37 = vld [vmem:[%s3254_s16 + $0x38] sm:$0xe]  ;;  %v3597_v14 = vld [vmem:[%s3254_s16 + $0x14] sm:$0x1] }
  0x47   : > { %v670_v49 = vsel %vm3472_vm6, %v2638_v9, %v669_v18  ;;  %v674_v16 = vsel %vm3472_vm6, %v2639_v46, %v673_v19  ;;  %3055 = vmatprep.subr.bf16.mxu1 %v3229_v0  ;;  %v2727_v56 = vrot.slane %v2719_v30, 9  ;;  %v1248_v45 = vrot.slane %v3453_v39, 5  ;;  %v2768_v30 = vld [vmem:[%s3254_s16 + $0x20] sm:$0xf] }
  0x48   : > { %v2516_v57 = vrot.slane %v2515_v60, 4  ;;  %v2650_v55 = vcombine.low %v670_v49, %v674_v16  ;;  %v2641_v10 = vrot.slane %v643_v54, 9  ;;  %v2642_v21 = vrot.slane %v644_v40, 9  ;;  %v2774_v49 = vld [vmem:[%s3254_s16 + $0x38] sm:$0xf] }
  0x49   : > { %2944 = vmatmul.mubr.msk.bf16.gmra.mrb[4].mxu1 %vm453_vm0, %v2631_v26  ;;  %v685_v18 = vrot.slane %v3361_v53, 5  ;;  %v2643_v63 = vrot.slane %v645_v38, 9  ;;  %v2734_v19 = vcombine.low %v1237_v29, %v1241_v43  ;;  %v678_v58 = vsel %vm3472_vm6, %v2640_v32, %v677_v5  ;;  %v2770_v26 = vld [vmem:[%s3254_s16 + $0x28] sm:$0xf]  ;;  %v2772_v32 = vld [vmem:[%s3254_s16 + $0x30] sm:$0xf] }
  0x4a   : > { %v2517_v3 = vadd.f32 %v2516_v57, %v2515_v60  ;;  %2951 = vmatprep.mubr.msk.bf16.mxu1 %vm453_vm0, %v2650_v55  ;;  %v689_v39 = vrot.slane %v3380_v7, 5  ;;  %v682_v53 = vsel %vm3472_vm6, %v2641_v10, %v681_v27  ;;  %v1245_v47 = vsel %vm3472_vm6, %v2726_v23, %v1244_v48 }
  0x4b   : > { %v686_v41 = vsel %vm3472_vm6, %v2642_v21, %v685_v18  ;;  %v1249_v5 = vsel %vm3472_vm6, %v2727_v56, %v1248_v45  ;;  %v2651_v62 = vcombine.low %v678_v58, %v682_v53  ;;  %v2644_v59 = vrot.slane %v646_v11, 9  ;;  %v3162_v45 = vld [vmem:[%s3254_s16 + $0x28] ss:$8 sps:$4 sm:$0xff]   ;;  %v3620_v11 = vld [vmem:[%s3254_s16 + $0x24] sm:$0x1] }
  0x4c   : > { %v2518_v4 = vrot.slane %v2517_v3, 2  ;;  %v690_v7 = vsel %vm3472_vm6, %v2643_v63, %v689_v39  ;;  %v693_v13 = vrot.slane %v3398_v33, 5  ;;  %v2645_v20 = vrot.slane %v647_v37, 9  ;;  %v3157_v21 = vld [vmem:[%s3254_s16 + $0x20] ss:$8 sps:$4 sm:$0xff]  }
  0x4d   : > { %2988 = vmatmul.mubr.msk.bf16.vlgmr.msra.gmra.mrb[0].mxu0 %vm453_vm0, %v2733_v8  ;;  %v2652_v51 = vcombine.low %v686_v41, %v690_v7  ;;  %v697_v12 = vrot.slane %v3401_v36, 5  ;;  %v1512_v24 = vshrl.u32 %v2764_v42, 16  ;;  %v1515_v33 = vshll.u32 %v2764_v42, 16  ;;  %v3156_v36 = vld [vmem:[%s3254_s16 + $0x10] ss:$8 sps:$4 sm:$0xff]  }
  0x4e   : > { %v2519_v25 = vadd.f32 %v2518_v4, %v2517_v3  ;;  %2996 = vmatpush3.bf16.msra.mxu0 %v3436_v34  ;;  %2991 = vmatprep.mubr.msk.bf16.mxu0 %vm453_vm0, %v2734_v19  ;;  %v1526_v17 = vshrl.u32 %v2766_v28, 16  ;;  %v1529_v22 = vshll.u32 %v2766_v28, 16  ;;  %v2735_v27 = vcombine.low %v1245_v47, %v1249_v5  ;;  %v3600_v8 = vld [vmem:[%s3254_s16 + $0x1c] sm:$0x1]  ;;  %v3623_v3 = vld [vmem:[%s3254_s16 + $0x2c] sm:$0x1] }
  0x4f   : > { %2997 = vmatprep.subr.bf16.mxu0 %v3154_v6  ;;  %v694_v54 = vsel %vm3472_vm6, %v2644_v59, %v693_v13  ;;  %v698_v40 = vsel %vm3472_vm6, %v2645_v20, %v697_v12  ;;  %v1514_v9 = vrot.slane %v1512_v24, 4  ;;  %v1517_v46 = vrot.slane %v1515_v33, 5  ;;  %v3159_v47 = vld [vmem:[%s3254_s16 + $0x30] ss:$8 sps:$4 sm:$0xff]   ;;  %v2776_v28 = vld [vmem:[%s3254_s16 + $0x40] sm:$0xf] }
  0x50   : > { %v2520_v34 = vrot.slane %v2519_v25, 1  ;;  %v1528_v60 = vrot.slane %v1526_v17, 4  ;;  %v1531_v29 = vrot.slane %v1529_v22, 5  ;;  %v1540_v23 = vshrl.u32 %v2768_v30, 16  ;;  %v3639_v33 = vld [vmem:[%s3254_s16 + $0x3c] sm:$0x1] }
  0x51   : > { %2952 = vmatmul.mubr.msk.bf16.vlgmr.msra.gmra.mrb[0].mxu1 %vm453_vm0, %v2651_v62  ;;  %v1543_v43 = vshll.u32 %v2768_v30, 16  ;;  %v1554_v48 = vshrl.u32 %v2770_v26, 16  ;;  %v2653_v16 = vcombine.low %v694_v54, %v698_v40  ;;  %v1557_v57 = vshll.u32 %v2770_v26, 16 }
  0x52   : > { %v2521_v44 = vadd.f32 %v2520_v34, %v2519_v25  ;;  %2998 = vmatpush3.bf16.msra.mxu0 %v3154_v6  ;;  %2955 = vmatprep.mubr.msk.bf16.mxu1 %vm453_vm0, %v2652_v51  ;;  %v1535_v56 = vshll.u32 %v3600_v8, 16  ;;  %v1568_v55 = vshrl.u32 %v2772_v32, 16  ;;  %v1571_v10 = vshll.u32 %v2772_v32, 16  ;;  %v3626_v6 = vld [vmem:[%s3254_s16 + $0x34] sm:$0x1] }
  0x53   : > { %3007 = vmatprep.subr.bf16.mxu0 %v3585_v61  ;;  %3057 = vmatpush3.bf16.msra.mxu1 %v3229_v0  ;;  %v1521_v0 = vshll.u32 %v3597_v14, 16  ;;  %v1518_v18 = vor.u32 %v1517_v46, %v1514_v9  ;;  %v1532_v63 = vor.u32 %v1531_v29, %v1528_v60  ;;  %v1542_v19 = vrot.slane %v1540_v23, 4  ;;  %v2778_v25 = vld [vmem:[%s3254_s16 + $0x48] sm:$0xf]  ;;  %v3163_v9 = vld [vmem:[%s4128_s1 + $0x80] sm:$0xff]  }
  0x54   : > { %v2523_v38 = vmul.f32 0.015625, %v2521_v44  ;;  %3056 = vmatprep.subr.bf16.mxu1 %v3234_v1  ;;  %v1582_v58 = vshrl.u32 %v2774_v49, 16  ;;  %v1545_v39 = vrot.slane %v1543_v43, 5  ;;  %v1556_v37 = vrot.slane %v1554_v48, 4  ;;  %v3160_v44 = vld [vmem:[%s3254_s16 + $0x40] ss:$8 sps:$4 sm:$0xff]  }
  0x55   : > { %2992 = vmatmul.mubr.msk.bf16.gmra.mrb[4].mxu0 %vm453_vm0, %v2735_v27  ;;  %v1559_v53 = vrot.slane %v1557_v57, 5  ;;  %v1570_v41 = vrot.slane %v1568_v55, 4  ;;  %v1573_v42 = vrot.slane %v1571_v10, 5  ;;  %v1585_v4 = vshll.u32 %v2774_v49, 16  ;;  %v3164_v46 = vld [vmem:[%s3254_s16 + $0x38] ss:$8 sps:$4 sm:$0xff]  }
  0x56   : > { %2525 = vst.msk [vmem:[%s287_s19] sm:$0x1] %vm2524_vm7, %v2523_v38  ;;  %2999 = vmatprep.mubr.msk.bf16.mxu0 %vm453_vm0, %v3156_v36  ;;  %v1523_v5 = vrot.slane %v1521_v0, 5  ;;  %v1537_v7 = vrot.slane %v1535_v56, 5  ;;  %v1519_v62 = vrot.slane %v1518_v18, 4  ;;  %v1533_v59 = vrot.slane %v1532_v63, 4 }
  0x57   : > { %3058 = vmatpush3.bf16.msra.mxu1 %v3234_v1  ;;  %v3161_v1 = vld [vmem:[%s4128_s1 + $0x78] sm:$0xff]   ;;  %v1584_v13 = vrot.slane %v1582_v58, 4  ;;  %v1587_v20 = vrot.slane %v1585_v4, 5  ;;  %v1546_v51 = vor.u32 %v1545_v39, %v1542_v19  ;;  %v1549_v12 = vshll.u32 %v3620_v11, 16  ;;  %v3656_v43 = vld [vmem:[%s3254_s16 + $0x44] sm:$0x1] }
  0x58   : > { %v1563_v24 = vshll.u32 %v3623_v3, 16  ;;  %v1577_v17 = vshll.u32 %v3626_v6, 16  ;;  %v1560_v22 = vor.u32 %v1559_v53, %v1556_v37  ;;  %v1574_v34 = vor.u32 %v1573_v42, %v1570_v41  ;;  %v2794_v41 = vld [vmem:[%s3254_s16 + $0x10] sm:$0xe]  ;;  %v2795_v42 = vld [vmem:[%s3254_s16 + $0x18] sm:$0xe] }
  0x59   : > { %2956 = vmatmul.mubr.msk.bf16.gmra.mrb[4].mxu1 %vm453_vm0, %v2653_v16  ;;  %v1596_v30 = vshrl.u32 %v2776_v28, 16  ;;  %v1599_v27 = vshll.u32 %v2776_v28, 16  ;;  %v1610_v36 = vshrl.u32 %v2778_v25, 16  ;;  %v1613_v26 = vshll.u32 %v2778_v25, 16  ;;  %v3659_v16 = vld [vmem:[%s3254_s16 + $0x4c] sm:$0x1] }
  0x5a   : > { %2967 = vmatprep.mubr.msk.bf16.mxu1 %vm453_vm0, %v3162_v45  ;;  %v1524_v54 = vsel %vm3306_vm3, %v1519_v62, %v1523_v5  ;;  %v1538_v40 = vsel %vm3306_vm3, %v1533_v59, %v1537_v7  ;;  %v1591_v60 = vshll.u32 %v3639_v33, 16  ;;  %v1547_v29 = vrot.slane %v1546_v51, 4 }
  0x5b   : > { %v1551_v23 = vrot.slane %v1549_v12, 5  ;;  %v1565_v32 = vrot.slane %v1563_v24, 5  ;;  %v1579_v38 = vrot.slane %v1577_v17, 5  ;;  %v1561_v48 = vrot.slane %v1560_v22, 4  ;;  %v2796_v24 = vld [vmem:[%s3254_s16 + $0x20] sm:$0xe] }
  0x5c   : > { %v1575_v49 = vrot.slane %v1574_v34, 4  ;;  %v1598_v57 = vrot.slane %v1596_v30, 4  ;;  %v1601_v0 = vrot.slane %v1599_v27, 5  ;;  %v2784_v56 = vcombine.low %v1524_v54, %v1538_v40  ;;  %v2798_v22 = vld [vmem:[%s3254_s16 + $0x30] sm:$0xe] }
  0x5d   : > { %3000 = vmatmul.mubr.msk.bf16.vlgmr.msra.gmra.mrb[0].mxu0 %vm453_vm0, %v3157_v21  ;;  %v1612_v45 = vrot.slane %v1610_v36, 4  ;;  %v1615_v55 = vrot.slane %v1613_v26, 5  ;;  %v1593_v21 = vrot.slane %v1591_v60, 5  ;;  %v1552_v18 = vsel %vm3306_vm3, %v1547_v29, %v1551_v23  ;;  %v2799_v34 = vld [vmem:[%s3254_s16 + $0x38] sm:$0xe] }
  0x5e   : > { %3008 = vmatpush3.bf16.msra.mxu0 %v3585_v61  ;;  %3003 = vmatprep.mubr.msk.bf16.mxu0 %vm453_vm0, %v3159_v47  ;;  %v1588_v61 = vor.u32 %v1587_v20, %v1584_v13  ;;  %v1605_v63 = vshll.u32 %v3656_v43, 16  ;;  %v1566_v19 = vsel %vm3306_vm3, %v1561_v48, %v1565_v32  ;;  %v1602_v58 = vor.u32 %v1601_v0, %v1598_v57  ;;  %v2801_v29 = vld [vmem:[%s3254_s16 + $0x48] sm:$0xe] }
  0x5f   : > { %3009 = vmatprep.subr.bf16.mxu0 %v3161_v1  ;;  %v1616_v39 = vor.u32 %v1615_v55, %v1612_v45  ;;  %v1619_v37 = vshll.u32 %v3659_v16, 16  ;;  %v2785_v4 = vcombine.low %v1552_v18, %v1566_v19  ;;  %v2802_v59 = vrot.slane %v2794_v41, 9  ;;  %v3168_v45 = vld [vmem:[%s4130_s3] sm:$0xff]  }
  0x60   : > { %v1589_v10 = vrot.slane %v1588_v61, 4  ;;  %v1607_v47 = vrot.slane %v1605_v63, 5  ;;  %v1603_v7 = vrot.slane %v1602_v58, 4  ;;  %v1763_v13 = vrot.slane %v3597_v14, 5 }
  0x61   : > { %v1617_v28 = vrot.slane %v1616_v39, 4  ;;  %v1621_v62 = vrot.slane %v1619_v37, 5  ;;  %v2803_v20 = vrot.slane %v2795_v42, 9  ;;  %v1767_v25 = vrot.slane %v3600_v8, 5  ;;  %v2797_v8 = vld [vmem:[%s3254_s16 + $0x28] sm:$0xe] }
  0x62   : > { %3010 = vmatpush3.bf16.msra.mxu0 %v3161_v1  ;;  %v1580_v1 = vsel %vm3306_vm3, %v1575_v49, %v1579_v38  ;;  %v1594_v53 = vsel %vm3306_vm3, %v1589_v10, %v1593_v21  ;;  %v1608_v51 = vsel %vm3306_vm3, %v1603_v7, %v1607_v47  ;;  %v1764_v17 = vsel %vm3472_vm6, %v2802_v59, %v1763_v13 }
  0x63   : > { %3019 = vmatprep.subr.bf16.mxu0 %v3163_v9  ;;  %v2786_v5 = vcombine.low %v1580_v1, %v1594_v53  ;;  %v1622_v12 = vsel %vm3306_vm3, %v1617_v28, %v1621_v62  ;;  %v1768_v14 = vsel %vm3472_vm6, %v2803_v20, %v1767_v25  ;;  %v2804_v27 = vrot.slane %v2796_v24, 9 }
  0x64   : > { %v2787_v30 = vcombine.low %v1608_v51, %v1622_v12  ;;  %v2814_v36 = vcombine.low %v1764_v17, %v1768_v14  ;;  %v1771_v35 = vrot.slane %v3620_v11, 5  ;;  %v2805_v26 = vrot.slane %v2797_v8, 9  ;;  %v2800_v11 = vld [vmem:[%s3254_s16 + $0x40] sm:$0xe] }
  0x65   : > { %3004 = vmatmul.mubr.msk.bf16.gmra.mrb[4].mxu0 %vm453_vm0, %v3160_v44  ;;  %2968 = vmatmul.mubr.msk.bf16.vlgmr.msra.gmra.mrb[4].mxu1 %vm453_vm0, %v3164_v46  ;;  %v1775_v44 = vrot.slane %v3623_v3, 5  ;;  %v2806_v54 = vrot.slane %v2798_v22, 9  ;;  %v1779_v40 = vrot.slane %v3626_v6, 5  ;;  %v1783_v46 = vrot.slane %v3639_v33, 5 }
  0x66   : > { %3011 = vmatprep.mubr.msk.bf16.mxu0 %vm453_vm0, %v2784_v56  ;;  %3035 = vmatprep.mubr.msk.bf16.mxu1 %vm453_vm0, %v3376_v2  ;;  %v3165_v2 = vld [vmem:[%s4128_s1 + $0x88] sm:$0xff]   ;;  %v1772_v61 = vsel %vm3472_vm6, %v2804_v27, %v1771_v35  ;;  %v2808_v33 = vrot.slane %v2800_v11, 9  ;;  %v1787_v38 = vrot.slane %v3656_v43, 5  ;;  %v2809_v48 = vrot.slane %v2801_v29, 9  ;;  %v3166_v43 = vld [vmem:[%s4131_s4] sm:$0xff]  }
  0x67   : > { %v1776_v60 = vsel %vm3472_vm6, %v2805_v26, %v1775_v44  ;;  %v1780_v3 = vsel %vm3472_vm6, %v2806_v54, %v1779_v40  ;;  %v1791_v49 = vrot.slane %v3659_v16, 5  ;;  %v3167_v16 = vld [vmem:[%s4131_s4 + $0x8] sm:$0xff]   ;;  %3031 = vmatprep.subr.bf16.mxu1 %v3166_v43  ;;  %v2837_v11 = vld [vmem:[%s4132_s5] ss:$0 sm:$0xff] }
  0x68   : > { %v2815_v23 = vcombine.low %v1772_v61, %v1776_v60  ;;  %v1788_v57 = vsel %vm3472_vm6, %v2808_v33, %v1787_v38  ;;  %3032 = vmatpush3.bf16.msra.mxu1 %v3166_v43  ;;  %v2123_v61 = vlaneseq }
  0x69   : > { %v1792_v0 = vsel %vm3472_vm6, %v2809_v48, %v1791_v49  ;;  %3033 = vmatprep.subr.bf16.mxu1 %v3167_v16 }
  0x6a   : > { %v2817_v56 = vcombine.low %v1788_v57, %v1792_v0  ;;  %v3747_v60 = vand.u32 127, %v2123_v61 }
  0x6c   : > { %3034 = vmatpush3.bf16.msra.mxu1 %v3167_v16  ;;  %vm2296_vm8 = vcmp.ge.s32.totalorder %v3747_v60, 30  ;;  %vm2297_vm9 = vcmp.lt.s32.totalorder %v3747_v60, 38  ;;  %vm2125_vm10 = vcmp.ge.s32.totalorder %v3747_v60, 22  ;;  %vm2126_vm11 = vcmp.lt.s32.totalorder %v3747_v60, 30 }
  0x6d   : > { %3012 = vmatmul.mubr.msk.bf16.vlgmr.msra.gmra.mrb[0].mxu0 %vm453_vm0, %v2785_v4  ;;  %3043 = vmatprep.subr.bf16.mxu1 %v3168_v45  ;;  %vm3756_vm12 = vmand %vm2296_vm8, %vm2297_vm9 }
  0x6e   : > { %3020 = vmatpush3.bf16.msra.mxu0 %v3163_v9  ;;  %3015 = vmatprep.mubr.msk.bf16.mxu0 %vm453_vm0, %v2786_v5  ;;  %v2807_v9 = vrot.slane %v2799_v34, 9  ;;  %vm3760_vm13 = vmand %vm2125_vm10, %vm2126_vm11 }
  0x6f   : > { %3021 = vmatprep.subr.bf16.mxu0 %v3165_v2  ;;  %3036 = vmatmul.mubr.msk.bf16.vlgmr.msra.gmra.mrb[8].mxu1 %vm453_vm0, %v3409_v50 }
  0x70   : > { %v1784_v6 = vsel %vm3472_vm6, %v2807_v9, %v1783_v46  ;;  %3044 = vmatpush3.bf16.msra.mxu1 %v3168_v45  ;;  %3039 = vmatprep.mubr.msk.bf16.mxu1 %vm453_vm0, %v3469_v15  ;;  %v2824_v15 = vld [vmem:[%s4129_s2] ss:$0 sm:$0xff] }
  0x71   : > { %v2816_v32 = vcombine.low %v1780_v3, %v1784_v6  ;;  %3045 = vmatprep.subr.bf16.mxu1 %v3169_v31 }
  0x72   : > { %3022 = vmatpush3.bf16.msra.mxu0 %v3165_v2 }
  0x74   : > { %3046 = vmatpush3.bf16.msra.mxu1 %v3169_v31 }
  0x75   : > { %3016 = vmatmul.mubr.msk.bf16.gmra.mrb[4].mxu0 %vm453_vm0, %v2787_v30 }
  0x76   : > { %3023 = vmatprep.mubr.msk.bf16.mxu0 %vm453_vm0, %v2814_v36 }
  0x77   : > { %3040 = vmatmul.mubr.msk.bf16.gmra.mrb[12].mxu1 %vm453_vm0, %v3523_v52 }
  0x7d   : > { %3024 = vmatmul.mubr.msk.bf16.vlgmr.msra.gmra.mrb[0].mxu0 %vm453_vm0, %v2815_v23 }
  0x7e   : > { %3027 = vmatprep.mubr.msk.bf16.mxu0 %vm453_vm0, %v2816_v32 }
  0x85   : > { %3028 = vmatmul.mubr.msk.bf16.gmra.mrb[4].mxu0 %vm453_vm0, %v2817_v56 }
 0x124   : > { %v2953_v55 = vpop.f32.mrb[0].mxu1 }
 0x125   : > { %v774_v10 = vpop.f32.mrb[1].mxu1 }
 0x126   : > { %v2954_v21 = vpop.f32.mrb[2].mxu1 }
 0x127   : > { %v777_v18 = vpop.f32.mrb[3].mxu1 }
 0x138   : > { %v2969_v63 = vpop.f32.mrb[4].mxu1 }
 0x139   : > { %v921_v19 = vpop.f32.mrb[5].mxu1 }
 0x13a   : > { %v2970_v50 = vpop.f32.mrb[6].mxu1 }
 0x13b   : > { %v924_v58 = vpop.f32.mrb[7].mxu1 }
 0x150   : > { %v3025_v39 = vpop.f32.mrb[0].mxu0 }
 0x151   : > { %v3059_v52 = vadd.f32 %v3025_v39, %v2953_v55  ;;  %v1868_v37 = vpop.f32.mrb[1].mxu0 }
 0x152   : > { %v3060_v1 = vadd.f32 %v1868_v37, %v774_v10  ;;  %v3026_v53 = vpop.f32.mrb[2].mxu0 }
 0x153   : > { %v1916_v41 = vadd.f32 %v3059_v52, %v2824_v15  ;;  %v3061_v42 = vadd.f32 %v3026_v53, %v2954_v21  ;;  %v1871_v4 = vpop.f32.mrb[3].mxu0 }
 0x154   : > { %v1914_v47 = vadd.f32 %v3060_v1, %v2824_v15  ;;  %v3062_v5 = vadd.f32 %v1871_v4, %v777_v18 }
 0x155   : > { %v1917_v7 = vadd.f32 %v3061_v42, %v2824_v15  ;;  %v1924_v62 = vmax.f32 %v1916_v41, 0.0 }
 0x156   : > { %v1915_v28 = vadd.f32 %v3062_v5, %v2824_v15  ;;  %v1922_v59 = vmax.f32 %v1914_v47, 0.0 }
 0x157   : > { %v1925_v2 = vmax.f32 %v1917_v7, 0.0 }
 0x158   : > { %v1923_v13 = vmax.f32 %v1915_v28, 0.0  ;;  %v3029_v20 = vpop.f32.mrb[4].mxu0 }
 0x159   : > { %v1931_v25 = vpack.c.bf16 %v1925_v2, %v1924_v62  ;;  %v3063_v51 = vadd.f32 %v3029_v20, %v2969_v63  ;;  %v1884_v12 = vpop.f32.mrb[5].mxu0 }
 0x15a   : > { %v1930_v24 = vpack.c.bf16 %v1923_v13, %v1922_v59  ;;  %v3064_v17 = vadd.f32 %v1884_v12, %v921_v19  ;;  %v3030_v14 = vpop.f32.mrb[6].mxu0 }
 0x15b   : > { %v1920_v8 = vadd.f32 %v3063_v51, %v2824_v15  ;;  %v3065_v22 = vadd.f32 %v3030_v14, %v2970_v50  ;;  %v1887_v34 = vpop.f32.mrb[7].mxu0 }
 0x15c   : > { %v1918_v30 = vadd.f32 %v3064_v17, %v2824_v15  ;;  %v3066_v27 = vadd.f32 %v1887_v34, %v924_v58  ;;  %3047 = vmatprep.mubr.msk.bf16.mxu1 %vm453_vm0, %v1930_v24 }
 0x15d   : > { %v1921_v36 = vadd.f32 %v3065_v22, %v2824_v15  ;;  %3048 = vmatmul.mubr.msk.bf16.vlgmr.msra.gmra.mrb[8].mxu1 %vm453_vm0, %v1931_v25  ;;  %v1928_v26 = vmax.f32 %v1920_v8, 0.0 }
 0x15e   : > { %v1919_v35 = vadd.f32 %v3066_v27, %v2824_v15  ;;  %v1926_v54 = vmax.f32 %v1918_v30, 0.0 }
 0x15f   : > { %v1929_v44 = vmax.f32 %v1921_v36, 0.0 }
 0x160   : > { %v1927_v40 = vmax.f32 %v1919_v35, 0.0 }
 0x161   : > { %v1933_v9 = vpack.c.bf16 %v1929_v44, %v1928_v26 }
 0x162   : > { %v1932_v46 = vpack.c.bf16 %v1927_v40, %v1926_v54 }
 0x164   : > { %3051 = vmatprep.mubr.msk.bf16.mxu1 %vm453_vm0, %v1932_v46 }
 0x165   : > { %3052 = vmatmul.mubr.msk.bf16.gmra.mrb[12].mxu1 %vm453_vm0, %v1933_v9 }
 0x230   : > { %v3049_v6 = vpop.f32.mrb[8].mxu1 }
 0x231   : > { %v3764_v23 = vadd.f32 %v3049_v6, %v2837_v11  ;;  %v2077_v33 = vpop.f32.mrb[9].mxu1 }
 0x232   : > { %v3050_v32 = vpop.f32.mrb[10].mxu1  ;;  %v3766_v38 = vadd.f32 %v2837_v11, %v2077_v33 }
 0x233   : > { %v3768_v48 = vadd.f32 %v3050_v32, %v2837_v11  ;;  %v2080_v49 = vpop.f32.mrb[11].mxu1  ;;  %v2301_v57 = vsel %vm3756_vm12, %v3764_v23, -3.4028235e+38  ;;  %v2130_v0 = vsel %vm3760_vm13, %v3764_v23, -3.4028235e+38 }
 0x234   : > { %2311 = vmax.xlane.f32.xlu0 %v2301_v57  ;;  %2140 = vmax.xlane.f32.xlu1 %v2130_v0  ;;  %v2128_v56 = vsel %vm3760_vm13, %v3766_v38, -3.4028235e+38  ;;  %v3782_v55 = vadd.f32 %v2837_v11, %v2080_v49  ;;  %v2299_v21 = vsel %vm3756_vm12, %v3766_v38, -3.4028235e+38 }
 0x235   : > { %v2131_v43 = vsel %vm3760_vm13, %v3768_v48, -3.4028235e+38  ;;  %v2302_v18 = vsel %vm3756_vm12, %v3768_v48, -3.4028235e+38 }
 0x236   : > { %v2300_v50 = vsel %vm3756_vm12, %v3782_v55, -3.4028235e+38  ;;  %v2129_v58 = vsel %vm3760_vm13, %v3782_v55, -3.4028235e+38 }
 0x238   : > { %2136 = vmax.xlane.f32.xlu0 %v2128_v56  ;;  %2142 = vmax.xlane.f32.xlu1 %v2131_v43  ;;  %v3053_v16 = vpop.f32.mrb[12].mxu1 }
 0x239   : > { %v2093_v45 = vpop.f32.mrb[13].mxu1  ;;  %v3790_v63 = vadd.f32 %v3053_v16, %v2837_v11 }
 0x23a   : > { %v3054_v31 = vpop.f32.mrb[14].mxu1  ;;  %v3800_v39 = vadd.f32 %v2837_v11, %v2093_v45 }
 0x23b   : > { %v2096_v10 = vpop.f32.mrb[15].mxu1  ;;  %v3792_v19 = vadd.f32 %v3054_v31, %v2837_v11  ;;  %v3807_v52 = vsel %vm3760_vm13, %v3790_v63, -3.4028235e+38  ;;  %v3843_v4 = vsel %vm3756_vm12, %v3790_v63, -3.4028235e+38 }
 0x23c   : > { %2307 = vmax.xlane.f32.xlu0 %v2299_v21  ;;  %2313 = vmax.xlane.f32.xlu1 %v2302_v18  ;;  %v3802_v15 = vadd.f32 %v2837_v11, %v2096_v10  ;;  %v3819_v1 = vsel %vm3760_vm13, %v3800_v39, -3.4028235e+38  ;;  %v3831_v41 = vsel %vm3756_vm12, %v3800_v39, -3.4028235e+38 }
 0x23d   : > { %v3812_v37 = vsel %vm3760_vm13, %v3792_v19, -3.4028235e+38  ;;  %v3848_v47 = vsel %vm3756_vm12, %v3792_v19, -3.4028235e+38 }
 0x23e   : > { %v3824_v53 = vsel %vm3760_vm13, %v3802_v15, -3.4028235e+38  ;;  %v3836_v42 = vsel %vm3756_vm12, %v3802_v15, -3.4028235e+38 }
 0x240   : > { %2309 = vmax.xlane.f32.xlu1 %v2300_v50  ;;  %2138 = vmax.xlane.f32.xlu0 %v2129_v58 }
 0x244   : > { %2148 = vmax.xlane.f32.xlu0 %v3807_v52  ;;  %2150 = vmax.xlane.f32.xlu1 %v3812_v37 }
 0x248   : > { %2144 = vmax.xlane.f32.xlu0 %v3819_v1  ;;  %2146 = vmax.xlane.f32.xlu1 %v3824_v53 }
 0x24c   : > { %2315 = vmax.xlane.f32.xlu0 %v3831_v41  ;;  %2317 = vmax.xlane.f32.xlu1 %v3836_v42 }
 0x250   : > { %2319 = vmax.xlane.f32.xlu0 %v3843_v4  ;;  %2321 = vmax.xlane.f32.xlu1 %v3848_v47 }
 0x2c1   : > { %v2312_v5 = vpop.xlane.xlu0 %2311  ;;  %v2141_v7 = vpop.xlane.xlu1 %2140 }
 0x2c2   : > { %vm2325_vm14 = vcmp.eq.f32.partialorder %v2301_v57, %v2312_v5  ;;  %vm2154_vm15 = vcmp.eq.f32.partialorder %v2130_v0, %v2141_v7 }
 0x2c3   : > { %v3853_v28 = vsel %vm2325_vm14, %v3747_v60, 128  ;;  %v3856_v62 = vsel %vm2154_vm15, %v3747_v60, 128 }
 0x2c4   : > { %v2197_v2 = vshra.s32 %v3856_v62, 16  ;;  %v2368_v25 = vshra.s32 %v3853_v28, 16 }
 0x2c5   : > { %v2137_v59 = vpop.xlane.xlu0 %2136  ;;  %v2143_v13 = vpop.xlane.xlu1 %2142 }
 0x2c6   : > { %vm2152_vm0 = vcmp.eq.f32.partialorder %v2128_v56, %v2137_v59  ;;  %vm2155_vm1 = vcmp.eq.f32.partialorder %v2131_v43, %v2143_v13  ;;  %v3859_v20 = vcvt.s32.f32 %v2197_v2  ;;  %v3871_v22 = vcvt.s32.f32 %v2368_v25 }
 0x2c7   : > { %v3863_v51 = vsel %vm2152_vm0, %v3747_v60, 128  ;;  %v3866_v12 = vsel %vm2155_vm1, %v3747_v60, 128 }
 0x2c8   : > { %2200 = vmin.xlane.f32.xlu0 %v3859_v20  ;;  %v2211_v24 = vshra.s32 %v3866_v12, 16  ;;  %v2169_v8 = vshra.s32 %v3863_v51, 16 }
 0x2c9   : > { %v2308_v17 = vpop.xlane.xlu0 %2307  ;;  %v2314_v14 = vpop.xlane.xlu1 %2313 }
 0x2ca   : > { %vm2323_vm2 = vcmp.eq.f32.partialorder %v2299_v21, %v2308_v17  ;;  %vm2326_vm3 = vcmp.eq.f32.partialorder %v2302_v18, %v2314_v14  ;;  %v3873_v34 = vcvt.s32.f32 %v2211_v24  ;;  %v3884_v44 = vcvt.s32.f32 %v2169_v8 }
 0x2cb   : > { %v3876_v30 = vsel %vm2323_vm2, %v3747_v60, 128  ;;  %v3879_v27 = vsel %vm2326_vm3, %v3747_v60, 128  ;;  %v2196_v8 = vand.u32 65535, %v3856_v62 }
 0x2cc   : > { %2371 = vmin.xlane.f32.xlu0 %v3871_v22  ;;  %2214 = vmin.xlane.f32.xlu1 %v3873_v34  ;;  %v2382_v36 = vshra.s32 %v3879_v27, 16  ;;  %v2340_v40 = vshra.s32 %v3876_v30, 16 }
 0x2cd   : > { %v2310_v35 = vpop.xlane.xlu1 %2309  ;;  %v2139_v26 = vpop.xlane.xlu0 %2138 }
 0x2ce   : > { %vm2324_vm4 = vcmp.eq.f32.partialorder %v2300_v50, %v2310_v35  ;;  %vm2153_vm5 = vcmp.eq.f32.partialorder %v2129_v58, %v2139_v26  ;;  %v3886_v54 = vcvt.s32.f32 %v2382_v36  ;;  %v3901_v29 = vcvt.s32.f32 %v2340_v40 }
 0x2cf   : > { %v3890_v9 = vsel %vm2324_vm4, %v3747_v60, 128  ;;  %v3893_v46 = vsel %vm2153_vm5, %v3747_v60, 128  ;;  %v2367_v36 = vand.u32 65535, %v3853_v28  ;;  %v2210_v35 = vand.u32 65535, %v3866_v12 }
 0x2d0   : > { %2172 = vmin.xlane.f32.xlu0 %v3884_v44  ;;  %2385 = vmin.xlane.f32.xlu1 %v3886_v54  ;;  %v2183_v61 = vshra.s32 %v3893_v46, 16  ;;  %v2354_v6 = vshra.s32 %v3890_v9, 16  ;;  %v2198_v40 = vcvt.s32.f32 %v2196_v8 }
 0x2d1   : > { %v2149_v11 = vpop.xlane.xlu0 %2148  ;;  %v2151_v3 = vpop.xlane.xlu1 %2150  ;;  %v2369_v62 = vcvt.s32.f32 %v2367_v36  ;;  %v2212_v28 = vcvt.s32.f32 %v2210_v35 }
 0x2d2   : > { %vm2158_vm6 = vcmp.eq.f32.partialorder %v3807_v52, %v2149_v11  ;;  %vm2159_vm7 = vcmp.eq.f32.partialorder %v3812_v37, %v2151_v3  ;;  %v3903_v33 = vcvt.s32.f32 %v2183_v61  ;;  %v3914_v43 = vcvt.s32.f32 %v2354_v6 }
 0x2d3   : > { %v3906_v32 = vsel %vm2158_vm6, %v3747_v60, 128  ;;  %v3909_v49 = vsel %vm2159_vm7, %v3747_v60, 128  ;;  %v2168_v11 = vand.u32 65535, %v3863_v51  ;;  %v2381_v3 = vand.u32 65535, %v3879_v27 }
 0x2d4   : > { %2343 = vmin.xlane.f32.xlu0 %v3901_v29  ;;  %2186 = vmin.xlane.f32.xlu1 %v3903_v33  ;;  %v2253_v57 = vshra.s32 %v3906_v32, 16  ;;  %v2267_v45 = vshra.s32 %v3909_v49, 16  ;;  %v2339_v51 = vand.u32 65535, %v3876_v30  ;;  %v2182_v27 = vand.u32 65535, %v3893_v46 }
 0x2d5   : > { %v2145_v0 = vpop.xlane.xlu0 %2144  ;;  %v2147_v56 = vpop.xlane.xlu1 %2146  ;;  %v2353_v30 = vand.u32 65535, %v3890_v9  ;;  %v2252_v46 = vand.u32 65535, %v3906_v32  ;;  %v2266_v9 = vand.u32 65535, %v3909_v49 }
 0x2d6   : > { %vm2156_vm8 = vcmp.eq.f32.partialorder %v3819_v1, %v2145_v0  ;;  %vm2157_vm9 = vcmp.eq.f32.partialorder %v3824_v53, %v2147_v56  ;;  %v3918_v16 = vcvt.s32.f32 %v2253_v57  ;;  %v3935_v37 = vcvt.s32.f32 %v2267_v45 }
 0x2d7   : > { %v3922_v31 = vsel %vm2156_vm8, %v3747_v60, 128  ;;  %v3925_v10 = vsel %vm2157_vm9, %v3747_v60, 128  ;;  %v2170_v45 = vcvt.s32.f32 %v2168_v11  ;;  %v2268_v35 = vcvt.s32.f32 %v2266_v9 }
 0x2d8   : > { %2256 = vmin.xlane.f32.xlu0 %v3918_v16  ;;  %2357 = vmin.xlane.f32.xlu1 %v3914_v43  ;;  %v2225_v21 = vshra.s32 %v3922_v31, 16  ;;  %v2239_v58 = vshra.s32 %v3925_v10, 16  ;;  %v2224_v32 = vand.u32 65535, %v3922_v31  ;;  %v2238_v49 = vand.u32 65535, %v3925_v10 }
 0x2d9   : > { %v2316_v18 = vpop.xlane.xlu0 %2315  ;;  %v2318_v50 = vpop.xlane.xlu1 %2317 }
 0x2da   : > { %vm2327_vm10 = vcmp.eq.f32.partialorder %v3831_v41, %v2316_v18  ;;  %vm2328_vm11 = vcmp.eq.f32.partialorder %v3836_v42, %v2318_v50  ;;  %v3933_v52 = vcvt.s32.f32 %v2225_v21  ;;  %v3946_v2 = vcvt.s32.f32 %v2239_v58 }
 0x2db   : > { %v3938_v1 = vsel %vm2327_vm10, %v3747_v60, 128  ;;  %v3941_v53 = vsel %vm2328_vm11, %v3747_v60, 128  ;;  %v2383_v21 = vcvt.s32.f32 %v2381_v3  ;;  %v2341_v58 = vcvt.s32.f32 %v2339_v51 }
 0x2dc   : > { %2228 = vmin.xlane.f32.xlu0 %v3933_v52  ;;  %2270 = vmin.xlane.f32.xlu1 %v3935_v37  ;;  %v2396_v5 = vshra.s32 %v3938_v1, 16  ;;  %v2410_v59 = vshra.s32 %v3941_v53, 16  ;;  %v2395_v31 = vand.u32 65535, %v3938_v1  ;;  %v2226_v36 = vcvt.s32.f32 %v2224_v32 }
 0x2dd   : > { %v2320_v7 = vpop.xlane.xlu0 %2319  ;;  %v2322_v41 = vpop.xlane.xlu1 %2321  ;;  %v2409_v10 = vand.u32 65535, %v3941_v53  ;;  %v2240_v3 = vcvt.s32.f32 %v2238_v49 }
 0x2de   : > { %vm2329_vm12 = vcmp.eq.f32.partialorder %v3843_v4, %v2320_v7  ;;  %vm2330_vm13 = vcmp.eq.f32.partialorder %v3848_v47, %v2322_v41  ;;  %v3950_v42 = vcvt.s32.f32 %v2396_v5  ;;  %v3964_v4 = vcvt.s32.f32 %v2410_v59 }
 0x2df   : > { %v3954_v13 = vsel %vm2329_vm12, %v3747_v60, 128  ;;  %v3957_v25 = vsel %vm2330_vm13, %v3747_v60, 128  ;;  %v2184_v5 = vcvt.s32.f32 %v2182_v27  ;;  %v2254_v59 = vcvt.s32.f32 %v2252_v46 }
 0x2e0   : > { %2399 = vmin.xlane.f32.xlu0 %v3950_v42  ;;  %2242 = vmin.xlane.f32.xlu1 %v3946_v2  ;;  %v2424_v24 = vshra.s32 %v3954_v13, 16  ;;  %v2438_v47 = vshra.s32 %v3957_v25, 16  ;;  %v2423_v1 = vand.u32 65535, %v3954_v13  ;;  %v2397_v11 = vcvt.s32.f32 %v2395_v31 }
 0x2e1   : > { %v2437_v53 = vand.u32 65535, %v3957_v25 }
 0x2e2   : > { %v3962_v17 = vcvt.s32.f32 %v2424_v24  ;;  %v3969_v14 = vcvt.s32.f32 %v2438_v47  ;;  %v2355_v24 = vcvt.s32.f32 %v2353_v30 }
 0x2e3   : > { %v2439_v51 = vcvt.s32.f32 %v2437_v53 }
 0x2e4   : > { %2427 = vmin.xlane.f32.xlu0 %v3962_v17  ;;  %2413 = vmin.xlane.f32.xlu1 %v3964_v4 }
 0x2e8   : > { %2441 = vmin.xlane.f32.xlu1 %v3969_v14 }
 0x355   : > { %v3975_v26 = vpop.xlane.xlu0 %2200 }
 0x356   : > { %vm2202_vm14 = vcmp.eq.f32.partialorder %v3859_v20, %v3975_v26  ;;  %v2207_v27 = vcvt.f32.s32 %v3975_v26 }
 0x357   : > { %v2203_v61 = vsel %vm2202_vm14, %v2198_v40, inf  ;;  %vm2467_vm14 = vcmp.eq.s32.totalorder %v3747_v60, 120 }
 0x358   : > { %2204 = vmin.xlane.f32.xlu0 %v2203_v61 }
 0x359   : > { %v3981_v6 = vpop.xlane.xlu0 %2371  ;;  %v3983_v57 = vpop.xlane.xlu1 %2214 }
 0x35a   : > { %vm2373_vm15 = vcmp.eq.f32.partialorder %v3871_v22, %v3981_v6  ;;  %vm2216_vm0 = vcmp.eq.f32.partialorder %v3873_v34, %v3983_v57 }
 0x35b   : > { %v2374_v12 = vsel %vm2373_vm15, %v2369_v62, inf  ;;  %v2217_v20 = vsel %vm2216_vm0, %v2212_v28, inf  ;;  %v2425_v28 = vcvt.s32.f32 %v2423_v1  ;;  %vm2476_vm15 = vcmp.eq.s32.totalorder %v3747_v60, 121 }
 0x35c   : > { %2375 = vmin.xlane.f32.xlu0 %v2374_v12  ;;  %2218 = vmin.xlane.f32.xlu1 %v2217_v20  ;;  %v2411_v12 = vcvt.s32.f32 %v2409_v10 }
 0x35d   : > { %v3991_v0 = vpop.xlane.xlu0 %2172  ;;  %v3993_v56 = vpop.xlane.xlu1 %2385 }
 0x35e   : > { %vm2174_vm1 = vcmp.eq.f32.partialorder %v3884_v44, %v3991_v0  ;;  %vm2387_vm2 = vcmp.eq.f32.partialorder %v3886_v54, %v3993_v56  ;;  %v2392_v26 = vcvt.f32.s32 %v3993_v56 }
 0x35f   : > { %v2175_v22 = vsel %vm2174_vm1, %v2170_v45, inf  ;;  %v2388_v34 = vsel %vm2387_vm2, %v2383_v21, inf  ;;  %v2378_v45 = vcvt.f32.s32 %v3981_v6 }
 0x360   : > { %2176 = vmin.xlane.f32.xlu0 %v2175_v22  ;;  %2389 = vmin.xlane.f32.xlu1 %v2388_v34 }
 0x361   : > { %v4001_v18 = vpop.xlane.xlu0 %2343  ;;  %v4003_v50 = vpop.xlane.xlu1 %2186  ;;  %v2379_v30 = vshll.u32 %v2378_v45, 16 }
 0x362   : > { %vm2345_vm3 = vcmp.eq.f32.partialorder %v3901_v29, %v4001_v18  ;;  %vm2188_vm4 = vcmp.eq.f32.partialorder %v3903_v33, %v4003_v50 }
 0x363   : > { %v2346_v44 = vsel %vm2345_vm3, %v2341_v58, inf  ;;  %v2189_v54 = vsel %vm2188_vm4, %v2184_v5, inf }
 0x364   : > { %2347 = vmin.xlane.f32.xlu0 %v2346_v44  ;;  %2190 = vmin.xlane.f32.xlu1 %v2189_v54  ;;  %v2179_v44 = vcvt.f32.s32 %v3991_v0  ;;  %v2393_v0 = vshll.u32 %v2392_v26, 16 }
 0x365   : > { %v4011_v7 = vpop.xlane.xlu0 %2256  ;;  %v4013_v41 = vpop.xlane.xlu1 %2357 }
 0x366   : > { %vm2258_vm5 = vcmp.eq.f32.partialorder %v3918_v16, %v4011_v7  ;;  %vm2359_vm6 = vcmp.eq.f32.partialorder %v3914_v43, %v4013_v41  ;;  %v2364_v10 = vcvt.f32.s32 %v4013_v41 }
 0x367   : > { %v2259_v29 = vsel %vm2258_vm5, %v2254_v59, inf  ;;  %v2360_v33 = vsel %vm2359_vm6, %v2355_v24, inf }
 0x368   : > { %2260 = vmin.xlane.f32.xlu0 %v2259_v29  ;;  %2361 = vmin.xlane.f32.xlu1 %v2360_v33  ;;  %v2180_v33 = vshll.u32 %v2179_v44, 16  ;;  %v2365_v41 = vshll.u32 %v2364_v10, 16 }
 0x369   : > { %v4021_v47 = vpop.xlane.xlu0 %2228  ;;  %v4023_v8 = vpop.xlane.xlu1 %2270 }
 0x36a   : > { %vm2230_vm7 = vcmp.eq.f32.partialorder %v3933_v52, %v4021_v47  ;;  %vm2272_vm8 = vcmp.eq.f32.partialorder %v3935_v37, %v4023_v8 }
 0x36b   : > { %v2231_v43 = vsel %vm2230_vm7, %v2226_v36, inf  ;;  %v2273_v16 = vsel %vm2272_vm8, %v2268_v35, inf  ;;  %v2193_v35 = vcvt.f32.s32 %v4003_v50 }
 0x36c   : > { %2232 = vmin.xlane.f32.xlu0 %v2231_v43  ;;  %2274 = vmin.xlane.f32.xlu1 %v2273_v16 }
 0x36d   : > { %v4031_v40 = vpop.xlane.xlu0 %2399  ;;  %v4033_v61 = vpop.xlane.xlu1 %2242 }
 0x36e   : > { %vm2401_vm9 = vcmp.eq.f32.partialorder %v3950_v42, %v4031_v40  ;;  %vm2244_vm10 = vcmp.eq.f32.partialorder %v3946_v2, %v4033_v61 }
 0x36f   : > { %v2402_v52 = vsel %vm2401_vm9, %v2397_v11, inf  ;;  %v2245_v37 = vsel %vm2244_vm10, %v2240_v3, inf }
 0x370   : > { %2403 = vmin.xlane.f32.xlu0 %v2402_v52  ;;  %2246 = vmin.xlane.f32.xlu1 %v2245_v37 }
 0x371   : > { %v4040_v62 = vpop.xlane.xlu0 %2427  ;;  %v4042_v13 = vpop.xlane.xlu1 %2413 }
 0x372   : > { %vm2429_vm11 = vcmp.eq.f32.partialorder %v3962_v17, %v4040_v62  ;;  %vm2415_vm12 = vcmp.eq.f32.partialorder %v3964_v4, %v4042_v13  ;;  %v2221_v17 = vcvt.f32.s32 %v3983_v57  ;;  %v2208_v4 = vshll.u32 %v2207_v27, 16 }
 0x373   : > { %v2430_v42 = vsel %vm2429_vm11, %v2425_v28, inf  ;;  %v2416_v2 = vsel %vm2415_vm12, %v2411_v12, inf  ;;  %v2350_v57 = vcvt.f32.s32 %v4001_v18  ;;  %v2194_v12 = vshll.u32 %v2193_v35, 16 }
 0x374   : > { %2431 = vmin.xlane.f32.xlu0 %v2430_v42  ;;  %2417 = vmin.xlane.f32.xlu1 %v2416_v2  ;;  %v2222_v46 = vshll.u32 %v2221_v17, 16 }
 0x375   : > { %v4048_v20 = vpop.xlane.xlu1 %2441  ;;  %v2351_v16 = vshll.u32 %v2350_v57, 16 }
 0x376   : > { %vm2443_vm13 = vcmp.eq.f32.partialorder %v3969_v14, %v4048_v20 }
 0x377   : > { %v2444_v25 = vsel %vm2443_vm13, %v2439_v51, inf }
 0x378   : > { %2445 = vmin.xlane.f32.xlu1 %v2444_v25 }
 0x3e5   : > { %v2205_v21 = vpop.xlane.xlu0 %2204 }
 0x3e6   : > { %v2206_v22 = vcvt.f32.s32 %v2205_v21  ;;  %v2235_v21 = vcvt.f32.s32 %v4021_v47 }
 0x3e8   : > { %v2209_v34 = vadd.s32 %v2208_v4, %v2206_v22 }
 0x3e9   : > { %v2376_v58 = vpop.xlane.xlu0 %2375  ;;  %v2219_v5 = vpop.xlane.xlu1 %2218 }
 0x3ea   : > { %v2840_v14 = vadd.s32 4294967274, %v2209_v34  ;;  %v2377_v54 = vcvt.f32.s32 %v2376_v58  ;;  %v2220_v9 = vcvt.f32.s32 %v2219_v5 }
 0x3ec   : > { %v2380_v32 = vadd.s32 %v2379_v30, %v2377_v54  ;;  %v2223_v6 = vadd.s32 %v2222_v46, %v2220_v9  ;;  %v2290_v59 = vcvt.s32.f32 %v2840_v14  ;;  %v2263_v30 = vcvt.f32.s32 %v4011_v7 }
 0x3ed   : > { %v2177_v24 = vpop.xlane.xlu0 %2176  ;;  %v2390_v29 = vpop.xlane.xlu1 %2389  ;;  %v2406_v14 = vcvt.f32.s32 %v4031_v40  ;;  %v2434_v40 = vcvt.f32.s32 %v4040_v62 }
 0x3ee   : > { %v2848_v49 = vadd.s32 4294967266, %v2380_v32  ;;  %v2841_v31 = vadd.s32 4294967274, %v2223_v6  ;;  %v2178_v36 = vcvt.f32.s32 %v2177_v24  ;;  %v2391_v56 = vcvt.f32.s32 %v2390_v29 }
 0x3ef   : > { %v2470_v1 = vsel %vm2467_vm14, %v2290_v59, %v3764_v23  ;;  %v2236_v32 = vshll.u32 %v2235_v21, 16  ;;  %v2264_v59 = vshll.u32 %v2263_v30, 16  ;;  %v2277_v24 = vcvt.f32.s32 %v4023_v8 }
 0x3f0   : > { %v2461_v18 = vcvt.s32.f32 %v2848_v49  ;;  %v2181_v43 = vadd.s32 %v2180_v33, %v2178_v36  ;;  %v2394_v11 = vadd.s32 %v2393_v0, %v2391_v56  ;;  %v2291_v37 = vcvt.s32.f32 %v2841_v31 }
 0x3f1   : > { %v2348_v50 = vpop.xlane.xlu0 %2347  ;;  %v2191_v3 = vpop.xlane.xlu1 %2190  ;;  %v2249_v29 = vcvt.f32.s32 %v4033_v61  ;;  %v2407_v49 = vshll.u32 %v2406_v14, 16 }
 0x3f2   : > { %v2479_v52 = vsel %vm2476_vm15, %v2461_v18, %v2470_v1  ;;  %v2838_v53 = vadd.s32 4294967274, %v2181_v43  ;;  %v2349_v28 = vcvt.f32.s32 %v2348_v50  ;;  %v2849_v42 = vadd.s32 4294967266, %v2394_v11 }
 0x3f3   : > { %2487 = vst [vmem:[%s4065_s20 + $0x10] sm:$0xff] %v2479_v52  ;;  %v2192_v2 = vcvt.f32.s32 %v2191_v3  ;;  %v2471_v4 = vsel %vm2467_vm14, %v2291_v37, %v3768_v48  ;;  %v2420_v18 = vcvt.f32.s32 %v4042_v13  ;;  %v2250_v62 = vshll.u32 %v2249_v29, 16 }
 0x3f4   : > { %v2352_v51 = vadd.s32 %v2351_v16, %v2349_v28  ;;  %v2288_v25 = vcvt.s32.f32 %v2838_v53  ;;  %v2462_v27 = vcvt.s32.f32 %v2849_v42  ;;  %v2278_v16 = vshll.u32 %v2277_v24, 16 }
 0x3f5   : > { %v2195_v45 = vadd.s32 %v2194_v12, %v2192_v2  ;;  %v2261_v23 = vpop.xlane.xlu0 %2260  ;;  %v2362_v17 = vpop.xlane.xlu1 %2361  ;;  %v2435_v1 = vshll.u32 %v2434_v40, 16  ;;  %v2448_v11 = vcvt.f32.s32 %v4048_v20  ;;  %v2421_v13 = vshll.u32 %v2420_v18, 16 }
 0x3f6   : > { %v2846_v22 = vadd.s32 4294967266, %v2352_v51  ;;  %v2363_v34 = vcvt.f32.s32 %v2362_v17  ;;  %v2480_v46 = vsel %vm2476_vm15, %v2462_v27, %v2471_v4  ;;  %v2468_v47 = vsel %vm2467_vm14, %v2288_v25, %v3766_v38 }
 0x3f7   : > { %v2839_v58 = vadd.s32 4294967274, %v2195_v45  ;;  %2488 = vst [vmem:[%s4065_s20 + $0x18] sm:$0xff] %v2480_v46  ;;  %v2262_v48 = vcvt.f32.s32 %v2261_v23 }
 0x3f8   : > { %v2459_v5 = vcvt.s32.f32 %v2846_v22  ;;  %v2366_v44 = vadd.s32 %v2365_v41, %v2363_v34  ;;  %v2449_v41 = vshll.u32 %v2448_v11, 16 }
 0x3f9   : > { %v2289_v54 = vcvt.s32.f32 %v2839_v58  ;;  %v2233_v9 = vpop.xlane.xlu0 %2232  ;;  %v2275_v26 = vpop.xlane.xlu1 %2274  ;;  %v2265_v36 = vadd.s32 %v2264_v59, %v2262_v48 }
 0x3fa   : > { %v2477_v7 = vsel %vm2476_vm15, %v2459_v5, %v2468_v47  ;;  %v2847_v6 = vadd.s32 4294967266, %v2366_v44  ;;  %v2234_v57 = vcvt.f32.s32 %v2233_v9  ;;  %v2276_v0 = vcvt.f32.s32 %v2275_v26 }
 0x3fb   : > { %2485 = vst [vmem:[%s4065_s20] sm:$0xff] %v2477_v7  ;;  %v2469_v31 = vsel %vm2467_vm14, %v2289_v54, %v3782_v55  ;;  %v2844_v55 = vadd.s32 4294967274, %v2265_v36 }
 0x3fc   : > { %v2460_v38 = vcvt.s32.f32 %v2847_v6  ;;  %v2237_v33 = vadd.s32 %v2236_v32, %v2234_v57  ;;  %v2279_v52 = vadd.s32 %v2278_v16, %v2276_v0 }
 0x3fd   : > { %v2404_v35 = vpop.xlane.xlu0 %2403  ;;  %v2247_v56 = vpop.xlane.xlu1 %2246  ;;  %v2294_v23 = vcvt.s32.f32 %v2844_v55 }
 0x3fe   : > { %v2478_v8 = vsel %vm2476_vm15, %v2460_v38, %v2469_v31  ;;  %v2842_v61 = vadd.s32 4294967274, %v2237_v33  ;;  %v2405_v43 = vcvt.f32.s32 %v2404_v35  ;;  %v2248_v10 = vcvt.f32.s32 %v2247_v56 }
 0x3ff   : > { %2486 = vst [vmem:[%s4065_s20 + $0x8] sm:$0xff] %v2478_v8  ;;  %v2845_v17 = vadd.s32 4294967274, %v2279_v52 }
 0x400   : > { %v2408_v50 = vadd.s32 %v2407_v49, %v2405_v43  ;;  %v2292_v3 = vcvt.s32.f32 %v2842_v61  ;;  %v2251_v37 = vadd.s32 %v2250_v62, %v2248_v10 }
 0x401   : > { %v2432_v53 = vpop.xlane.xlu0 %2431  ;;  %v2418_v28 = vpop.xlane.xlu1 %2417  ;;  %v2295_v14 = vcvt.s32.f32 %v2845_v17 }
 0x402   : > { %v2850_v12 = vadd.s32 4294967266, %v2408_v50  ;;  %v2433_v42 = vcvt.f32.s32 %v2432_v53  ;;  %v2419_v2 = vcvt.f32.s32 %v2418_v28  ;;  %v2843_v51 = vadd.s32 4294967274, %v2251_v37 }
 0x403   : > { %v2472_v20 = vsel %vm2467_vm14, %v2292_v3, %v3800_v39  ;;  %v2474_v39 = vsel %vm2467_vm14, %v2294_v23, %v3790_v63  ;;  %v2475_v32 = vsel %vm2467_vm14, %v2295_v14, %v3792_v19 }
 0x404   : > { %v2463_v25 = vcvt.s32.f32 %v2850_v12  ;;  %v2436_v27 = vadd.s32 %v2435_v1, %v2433_v42  ;;  %v2422_v45 = vadd.s32 %v2421_v13, %v2419_v2  ;;  %v2293_v21 = vcvt.s32.f32 %v2843_v51 }
 0x405   : > { %v2446_v4 = vpop.xlane.xlu1 %2445 }
 0x406   : > { %v2481_v22 = vsel %vm2476_vm15, %v2463_v25, %v2472_v20  ;;  %v2852_v34 = vadd.s32 4294967266, %v2436_v27  ;;  %v2851_v30 = vadd.s32 4294967266, %v2422_v45  ;;  %v2447_v46 = vcvt.f32.s32 %v2446_v4 }
 0x407   : > { %2489 = vst [vmem:[%s4065_s20 + $0x20] sm:$0xff] %v2481_v22  ;;  %v2473_v47 = vsel %vm2467_vm14, %v2293_v21, %v3802_v15 }
 0x408   : > { %v2465_v58 = vcvt.s32.f32 %v2852_v34  ;;  %v2464_v5 = vcvt.s32.f32 %v2851_v30  ;;  %v2450_v44 = vadd.s32 %v2449_v41, %v2447_v46 }
 0x40a   : > { %v2483_v54 = vsel %vm2476_vm15, %v2465_v58, %v2474_v39  ;;  %v2482_v48 = vsel %vm2476_vm15, %v2464_v5, %v2473_v47  ;;  %v2853_v9 = vadd.s32 4294967266, %v2450_v44 }
 0x40b   : > { %2491 = vst [vmem:[%s4065_s20 + $0x30] sm:$0xff] %v2483_v54  ;;  %2490 = vst [vmem:[%s4065_s20 + $0x28] sm:$0xff] %v2482_v48 }
 0x40c   : > { %v2466_v26 = vcvt.s32.f32 %v2853_v9 }
 0x40e   : > { %v2484_v63 = vsel %vm2476_vm15, %v2466_v26, %v2475_v32 }
 0x40f   : > { %2492 = vst [vmem:[%s4065_s20 + $0x38] sm:$0xff] %v2484_v63 }
 0x410 PF: > { %s18_s24 = sadd.s32 1, %s3176_s24  }
 0x411   : > { %p15_p4 = scmp.ge.s32.totalorder %s18_s24, 4  }
 0x413   :  { %17 = sbr.rel (!%p15_p4) target bundleno = 1 (0x1), region = 96 }

// kernel: panoptic_bev_forward.4
= control target key start
LH: loop header
LB: loop body
LE: loop exit
PB: predicated region body
PF: predicated region fallthrough
CT: control target
= control target key end

     0   :  { %15 = vsyncpa [#allocation3], 0  ;;  %s2183_s0 = inlined_call_operand.vmem [shape: bf16[2,5,5,128], index: 0, kind: input, shape index: {}]   ;;  %s2184_s1 = inlined_call_operand.vmem [shape: bf16[4,128,32], index: 1, kind: input, shape index: {}]   ;;  %s2185_s2 = inlined_call_operand.vmem [shape: f32[1,32], index: 2, kind: input, shape index: {}]   ;;  %s2186_s3 = inlined_call_operand.vmem [shape: f32[2,1,32], index: 3, kind: input, shape index: {}]   ;;  %s2187_s4 = inlined_call_operand.vmem [shape: bf16[32,32], index: 4, kind: input, shape index: {}]   ;;  %s2188_s5 = inlined_call_operand.vmem [shape: f32[1,32], index: 5, kind: input, shape index: {}]   ;;  %s2189_s6 = inlined_call_operand.vmem [shape: bf16[32,2], index: 6, kind: input, shape index: {}]   ;;  %s2190_s7 = inlined_call_operand.vmem [shape: f32[1,2], index: 7, kind: input, shape index: {}]   ;;  %s2191_s8 = inlined_call_operand.hbm [shape: bf16[2,4,4,32], index: 8, kind: output, shape index: {0}]   ;;  %s2192_s9 = inlined_call_operand.vmem [shape: f32[2,4,4,2], index: 9, kind: output, shape index: {1}]  }
   0x1   :  { %17 = vsyncpa [#allocation3 + $0x1], 0  ;;  %s1845_s30 = smov 0   ;;  %s1847_s10 = smov 0  }
   0x2   :  { %s1849_s11 = smov 0   ;;  %s1851_s12 = smov 0  }
   0x3 LB: > { %s1866_s13 = sadd.s32 4294967295, %s1787_s12   ;;  %s1377_s14 = sadd.s32 4294967294, %s1787_s12   ;;  %s1787_s12 = sphi %s1851_s12, %s2204_s12   ;;  %s1783_s11 = sphi %s1849_s11, %s2203_s11   ;;  %s1779_s10 = sphi %s1847_s10, %s2202_s10   ;;  %s1775_s30 = sphi %s1845_s30, %s2201_s30  }
   0x4   : > { %s1870_s15 = sadd.s32 1, %s1787_s12   ;;  %s208_s16 = sadd.s32 1, %s1783_s11 }
   0x5   : > { %s205_s17 = ssub.s32 %s1787_s12, %s1870_s15  ;;  %p218_p0 = scmp.ne.s32.totalorder %s1783_s11, %s1779_s10 }
   0x6   : > { %p206_p1 = scmp.eq.s32.totalorder %s205_s17, 0  ;;  %p219_p2 = scmp.eq.s32.totalorder %s1866_s13, 1 }
   0x7   : > { %p224_p3 = scmp.ne.s32.totalorder %s1779_s10, %s1775_s30  ;;  %p225_p4 = scmp.eq.s32.totalorder %s1377_s14, 1 }
   0x8   : > { %s1881_s18 = scalar_select %p206_p1, %s1783_s11, %s208_s16  }
   0x9   : > { %p1883_p5 = por %p219_p2, %p218_p0  ;;  %p1887_p6 = por %p225_p4, %p224_p3 }
   0xa   : > { %p1380_p7 = scmp.ge.s32.totalorder %s1787_s12, 1  ;;  %p301_p8 = scmp.lt.s32.totalorder %s1787_s12, 3 }
   0xc   : > { %p302_p9 = pnand %p1380_p7, %p301_p8 }
   0xd   : > { %v1681_v0 = vld [vmem:[%s2184_s1 + $0x40] sm:$0xff] (!%p302_p9)   ;;  %v1789_v1 = vmov (!%p302_p9), 0.0   ;;  %v1683_v3 = vld [vmem:[%s2184_s1 + $0x48] sm:$0xff] (!%p302_p9)   ;;  %vm1790_vm0 = vmmov (!%p302_p9), 0   ;;  %p345_p10 = scmp.lt.s32.totalorder (!%p302_p9), %s1866_s13, 1  ;;  %v1685_v5 = vld [vmem:[%s2184_s1 + $0x50] sm:$0xff] (!%p302_p9)   ;;  %v504_v21 = vlaneseq (!%p302_p9) }
   0xe   : > { %305 = sbr.rel (%p302_p9) target bundleno = 746 (0x2ea), region = 52  ;;  %1540 = vmatprep.subr.bf16.mxu0 (!%p302_p9), %v1789_v1  ;;  %1560 = vmatprep.subr.bf16.mxu1 (!%p302_p9), %v1789_v1  ;;  %v1682_v2 = vld [vmem:[%s2184_s1] sm:$0xff] (!%p302_p9)   ;;  %v1684_v4 = vld [vmem:[%s2184_s1 + $0x8] sm:$0xff] (!%p302_p9)   ;;  %v1686_v6 = vld [vmem:[%s2184_s1 + $0x10] sm:$0xff] (!%p302_p9)   ;;  %vm419_vm1 = vsmask.f32 (!%p302_p9), 1280 }
   0xf   : > { %1541 = vmatpush3.bf16.msra.mxu0 (!%p302_p9), %v1681_v0  ;;  %1556 = vmatprep.mubr.msk.bf16.mxu0 (!%p302_p9), %vm1790_vm0, %v1789_v1  ;;  %v1687_v7 = vld [vmem:[%s2184_s1 + $0x58] sm:$0xff] (!%p302_p9)   ;;  %v1689_v9 = vld [vmem:[%s2184_s1 + $0x60] sm:$0xff] (!%p302_p9)   ;;  %v1691_v11 = vld [vmem:[%s2184_s1 + $0x68] sm:$0xff] (!%p302_p9)   ;;  %vm420_vm2 = vsmask.f32 (!%p302_p9), 3336  ;;  %v505_v53 = vshrl.u32 (!%p302_p9), %v504_v21, 7 }
  0x10   : > { %1561 = vmatpush3.bf16.msra.mxu1 (!%p302_p9), %v1682_v2  ;;  %1542 = vmatprep.subr.bf16.mxu0 (!%p302_p9), %v1789_v1  ;;  %v1688_v8 = vld [vmem:[%s2184_s1 + $0x18] sm:$0xff] (!%p302_p9)   ;;  %v1690_v10 = vld [vmem:[%s2184_s1 + $0x20] sm:$0xff] (!%p302_p9)   ;;  %v1692_v13 = vld [vmem:[%s2184_s1 + $0x28] sm:$0xff] (!%p302_p9)   ;;  %vm422_vm3 = vsmask.f32 (!%p302_p9), 5392  ;;  %vm1118_vm8 = vcmask (!%p302_p9), 261120  }
  0x11   : > { %1562 = vmatprep.subr.bf16.mxu1 (!%p302_p9), %v1789_v1  ;;  %1576 = vmatprep.mubr.msk.bf16.mxu1 (!%p302_p9), %vm1790_vm0, %v1789_v1  ;;  %vm1958_vm4 = vmor (!%p302_p9), %vm419_vm1, %vm420_vm2  ;;  %vm424_vm5 = vsmask.f32 (!%p302_p9), 7448  ;;  %v1693_v22 = vld [vmem:[%s2184_s1 + $0x70] sm:$0xff] (!%p302_p9)   ;;  %v1695_v49 = vld [vmem:[%s2184_s1 + $0x78] sm:$0xff] (!%p302_p9)   ;;  %v1791_v58 = vmov (!%p302_p9), 1983009808  }
  0x12   : > { %v1694_v27 = vld [vmem:[%s2184_s1 + $0x30] sm:$0xff] (!%p302_p9)   ;;  %vm1972_vm6 = vmor (!%p302_p9), %vm1958_vm4, %vm422_vm3  ;;  %v1696_v54 = vld [vmem:[%s2184_s1 + $0x38] sm:$0xff] (!%p302_p9)   ;;  %v502_v59 = vunpack.c.l.s4 (!%p302_p9), %v1791_v58  ;;  %s335_s28 = sand.u32 (!%p302_p9), 1, %s1779_s10   ;;  %vm1175_vm9 = vcmask (!%p302_p9), 254976   ;;  %s1792_s17 = smov (!%p302_p9), [#allocation2]  }
  0x13   : > { %1543 = vmatpush3.bf16.msra.mxu0 (!%p302_p9), %v1683_v3  ;;  %vm1981_vm7 = vmor (!%p302_p9), %vm1972_vm6, %vm424_vm5  ;;  %v1703_v21 = vld [vmem:[%s2184_s1 + $0x90] sm:$0xff] (!%p302_p9)   ;;  %s1381_s21 = sshll.u32 (!%p302_p9), %s335_s28, 3  ;;  %s2135_s27 = scalar_lea.sflag (!%p302_p9), [#allocation3], %s335_s28 }
  0x14   : > { %1563 = vmatpush3.bf16.msra.mxu1 (!%p302_p9), %v1684_v4  ;;  %1544 = vmatprep.subr.bf16.mxu0 (!%p302_p9), %v1789_v1  ;;  %v503_v4 = vunpack.c.0.s8 (!%p302_p9), %v502_v59  ;;  %s337_s23 = scalar_lea.vmem (!%p302_p9), [#allocation2], %s1381_s21 }
  0x15   : > { %s1915_s29 = scalar_select %p345_p10, %s1866_s13, 1  ;;  %1564 = vmatprep.subr.bf16.mxu1 %v1789_v1 }
  0x17   : > { %s1636_s22 = smul.u32 20, %s1915_s29  ;;  %1545 = vmatpush3.bf16.msra.mxu0 %v1685_v5  ;;  %s352_s24 = scalar_lea.vmem %s2186_s3, %s1915_s29 }
  0x18   : > { %1565 = vmatpush3.bf16.msra.mxu1 %v1686_v6  ;;  %1546 = vmatprep.subr.bf16.mxu0 %v1789_v1 }
  0x19   : > { %1566 = vmatprep.subr.bf16.mxu1 %v1789_v1  ;;  %s1937_s14 = scalar_lea.vmem %s2183_s0, %s1636_s22  ;;  %s1497_s22 = sshll.u32 %s1866_s13, 7 }
  0x1a   : > { %v1385_v12 = vld.sshfl [vmem:[%s1937_s14] sm:$0x13 pattern:$0x76325410]  ;;  %s2131_s26 = scalar_lea.hbm %s2191_s8, %s1497_s22  ;;  %s1729_s13 = sshll.u32 %s1792_s17, 4  ;;  %s1730_s13 = int_to_ptr.vmem [resolvable:$false] %s1729_s13 }
  0x1b   : > { %1547 = vmatpush3.bf16.msra.mxu0 %v1687_v7  ;;  %v1386_v14 = vld.sshfl [vmem:[%s1937_s14 + $0x4] sm:$0x13 pattern:$0x76325410]  ;;  %v394_v15 = vcombine.high %v1385_v12, %v1385_v12  ;;  %v427_v24 = vshrl.u32 %v1385_v12, 16  ;;  %v430_v25 = vshll.u32 %v1385_v12, 16 }
  0x1c   : > { %1567 = vmatpush3.bf16.msra.mxu1 %v1688_v8  ;;  %1548 = vmatprep.subr.bf16.mxu0 %v1789_v1  ;;  %v1387_v16 = vld.sshfl [vmem:[%s1937_s14 + $0x8] sm:$0x13 pattern:$0x76325410]  ;;  %v402_v17 = vcombine.high %v1386_v14, %v1386_v14  ;;  %v441_v28 = vshrl.u32 %v1386_v14, 16  ;;  %v444_v29 = vshll.u32 %v1386_v14, 16  ;;  %v2006_v8 = vsub.s32 %v503_v4, %v505_v53 }
  0x1d   : > { %1568 = vmatprep.subr.bf16.mxu1 %v1789_v1  ;;  %v1388_v18 = vld.sshfl [vmem:[%s1937_s14 + $0xc] sm:$0x13 pattern:$0x76325410]  ;;  %v410_v19 = vcombine.high %v1387_v16, %v1387_v16  ;;  %v436_v26 = vshll.u32 %v394_v15, 16  ;;  %v455_v31 = vshrl.u32 %v1387_v16, 16 }
  0x1e   : > { %v418_v23 = vcombine.high %v1388_v18, %v1388_v18  ;;  %v450_v30 = vshll.u32 %v402_v17, 16  ;;  %v429_v33 = vrot.slane %v427_v24, 6  ;;  %v432_v34 = vrot.slane %v430_v25, 7  ;;  %v1700_v12 = vld [vmem:[%s2184_s1 + $0xc0] sm:$0xff]   ;;  %v1702_v17 = vld [vmem:[%s2184_s1 + $0xc8] sm:$0xff]   ;;  %v1706_v24 = vld [vmem:[%s2184_s1 + $0xd8] sm:$0xff]  }
  0x1f   : > { %1549 = vmatpush3.bf16.msra.mxu0 %v1689_v9  ;;  %v438_v35 = vrot.slane %v436_v26, 7  ;;  %v458_v36 = vshll.u32 %v1387_v16, 16  ;;  %v443_v37 = vrot.slane %v441_v28, 6  ;;  %v446_v38 = vrot.slane %v444_v29, 7  ;;  %v1699_v15 = vld [vmem:[%s2184_s1 + $0x80] sm:$0xff]   ;;  %v1705_v29 = vld [vmem:[%s2184_s1 + $0x98] sm:$0xff]  }
  0x20   : > { %1569 = vmatpush3.bf16.msra.mxu1 %v1690_v10  ;;  %1550 = vmatprep.subr.bf16.mxu0 %v1789_v1  ;;  %v452_v39 = vrot.slane %v450_v30, 7  ;;  %v457_v40 = vrot.slane %v455_v31, 6  ;;  %v433_v41 = vor.u32 %v432_v34, %v429_v33  ;;  %v464_v43 = vshll.u32 %v410_v19, 16  ;;  %v1704_v19 = vld [vmem:[%s2184_s1 + $0xd0] sm:$0xff]   ;;  %v1708_v30 = vld [vmem:[%s2184_s1 + $0xe0] sm:$0xff]   ;;  %s1731_s21 = scalar_lea.vmem %s1730_s13, 256 }
  0x21   : > { %1570 = vmatprep.subr.bf16.mxu1 %v1789_v1  ;;  %v460_v42 = vrot.slane %v458_v36, 7  ;;  %v469_v44 = vshrl.u32 %v1388_v18, 16  ;;  %v447_v46 = vor.u32 %v446_v38, %v443_v37  ;;  %v472_v47 = vshll.u32 %v1388_v18, 16  ;;  %v1701_v18 = vld [vmem:[%s2184_s1 + $0x88] sm:$0xff]   ;;  %v1707_v34 = vld [vmem:[%s2184_s1 + $0xa0] sm:$0xff]  }
  0x22   : > { %v478_v48 = vshll.u32 %v418_v23, 16  ;;  %v434_v50 = vrot.slane %v433_v41, 2  ;;  %v466_v56 = vrot.slane %v464_v43, 7  ;;  %v1709_v37 = vld [vmem:[%s2184_s1 + $0xa8] sm:$0xff]   ;;  %v1711_v43 = vld [vmem:[%s2184_s1 + $0xb0] sm:$0xff]  }
  0x23   : > { %1551 = vmatpush3.bf16.msra.mxu0 %v1691_v11  ;;  %v461_v51 = vor.u32 %v460_v42, %v457_v40  ;;  %v471_v52 = vrot.slane %v469_v44, 6  ;;  %v448_v55 = vrot.slane %v447_v46, 2  ;;  %v474_v57 = vrot.slane %v472_v47, 7  ;;  %v1712_v40 = vld [vmem:[%s2184_s1 + $0xf0] sm:$0xff]   ;;  %v1714_v46 = vld [vmem:[%s2184_s1 + $0xf8] sm:$0xff]  }
  0x24   : > { %1571 = vmatpush3.bf16.msra.mxu1 %v1692_v13  ;;  %1552 = vmatprep.subr.bf16.mxu0 %v1789_v1  ;;  %v1721_v60 = vld.sshfl [vmem:[%s1937_s14] sm:$0xf pattern:$0x76325410]  ;;  %v439_v62 = vsel %vm1981_vm7, %v434_v50, %v438_v35  ;;  %v480_v0 = vrot.slane %v478_v48, 7  ;;  %v1710_v35 = vld [vmem:[%s2184_s1 + $0xe8] sm:$0xff]  }
  0x25   : > { %1572 = vmatprep.subr.bf16.mxu1 %v1789_v1  ;;  %v1722_v61 = vld.sshfl [vmem:[%s1937_s14 + $0x8] sm:$0xf pattern:$0x76325410]  ;;  %v462_v63 = vrot.slane %v461_v51, 2  ;;  %v1999_v2 = vsel %vm1981_vm7, %v448_v55, %v452_v39  ;;  %v475_v3 = vor.u32 %v474_v57, %v471_v52  ;;  %v1713_v47 = vld [vmem:[%s2184_s1 + $0xb8] sm:$0xff]  }
  0x26   : > { %v499_v5 = vcombine.low %v439_v62, %v1999_v2  ;;  %v626_v13 = vcombine.low %v1721_v60, %v1722_v61  ;;  %v1456_v20 = vld.sshfl [vmem:[%s1937_s14 + $0x10] sm:$0x13 pattern:$0x76325410]  ;;  %v1717_v50 = vld [vmem:[%s2187_s4] sm:$0xff]   ;;  %v1718_v51 = vld [vmem:[%s2187_s4 + $0x8] sm:$0xff]  }
  0x27   : > { %1553 = vmatpush3.bf16.msra.mxu0 %v1693_v22  ;;  %v2004_v6 = vsel %vm1981_vm7, %v462_v63, %v466_v56  ;;  %v476_v7 = vrot.slane %v475_v3, 2  ;;  %v891_v22 = vcombine.high %v1456_v20, %v1456_v20  ;;  %v935_v23 = vshrl.u32 %v1456_v20, 16  ;;  %v1723_v41 = vld.sshfl [vmem:[%s1937_s14 + $0x4] sm:$0xf pattern:$0x76325410] }
  0x28   : > { %1573 = vmatpush3.bf16.msra.mxu1 %v1694_v27  ;;  %1554 = vmatprep.subr.bf16.mxu0 %v1789_v1  ;;  %v507_v11 = vrot.slane %v499_v5, %v2006_v8  ;;  %v938_v25 = vshll.u32 %v1456_v20, 16  ;;  %v965_v38 = vcombine.low %v1999_v2, %v2004_v6  ;;  %v1724_v42 = vld.sshfl [vmem:[%s1937_s14 + $0xc] sm:$0xf pattern:$0x76325410]  ;;  %v1719_v20 = vld [vmem:[%s2189_s6] sm:$0xff]  }
  0x29   : > { %1574 = vmatprep.subr.bf16.mxu1 %v1789_v1  ;;  %v2012_v9 = vsel %vm1981_vm7, %v476_v7, %v480_v0  ;;  %v937_v26 = vrot.slane %v935_v23, 6  ;;  %v944_v27 = vshll.u32 %v891_v22, 16  ;;  %v1483_v22 = vld [vmem:[%s2188_s5] ss:$0 sm:$0xff] }
  0x2a   : > { %v500_v10 = vcombine.low %v2004_v6, %v2012_v9  ;;  %v940_v28 = vrot.slane %v938_v25, 7  ;;  %v973_v44 = vrot.slane %v965_v38, %v2006_v8  ;;  %v1481_v6 = vld [vmem:[%s2185_s2] ss:$0 sm:$0xff] }
  0x2b   : > { %1555 = vmatpush3.bf16.msra.mxu0 %v1695_v49  ;;  %v946_v32 = vrot.slane %v944_v27, 7  ;;  %v759_v49 = vcombine.low %v1723_v41, %v1724_v42 }
  0x2c   : > { %1575 = vmatpush3.bf16.msra.mxu1 %v1696_v54  ;;  %1580 = vmatprep.subr.bf16.mxu0 %v1789_v1  ;;  %v514_v14 = vrot.slane %v500_v10, %v2006_v8  ;;  %v941_v31 = vor.u32 %v940_v28, %v937_v26 }
  0x2d   : > { %1600 = vmatprep.subr.bf16.mxu1 %v1789_v1 }
  0x2e   : > { %v515_v16 = vcombine.low %v507_v11, %v514_v14  ;;  %v942_v33 = vrot.slane %v941_v31, 2 }
  0x2f   : > { %1577 = vmatmul.mubr.bf16.vlgmr.msra.gmra.mrb[0].mxu1 %v626_v13 }
  0x30   : > { %1601 = vmatpush3.bf16.msra.mxu1 %v1700_v12  ;;  %1616 = vmatprep.mubr.msk.bf16.mxu1 %vm1790_vm0, %v1789_v1  ;;  %v947_v36 = vsel %vm1981_vm7, %v942_v33, %v946_v32 }
  0x31   : > { %1602 = vmatprep.subr.bf16.mxu1 %v1789_v1  ;;  %1557 = vmatmul.mubr.bf16.vlgmr.msra.gmra.mrb[0].mxu0 %v515_v16  ;;  %v966_v39 = vcombine.low %v2012_v9, %v947_v36 }
  0x32   : > { %1581 = vmatpush3.bf16.msra.mxu0 %v1699_v15  ;;  %1596 = vmatprep.mubr.msk.bf16.mxu0 %vm1790_vm0, %v1789_v1  ;;  %v1482_v15 = vld [vmem:[%s352_s24] ss:$0 sm:$0xff]  ;;  %s1278_s24 = sshll.u32 %s337_s23, 4  ;;  %s2133_s24 = int_to_ptr.vmem [resolvable:$true] %s1278_s24 }
  0x33   : > { %1582 = vmatprep.subr.bf16.mxu0 %v1789_v1  ;;  %v980_v45 = vrot.slane %v966_v39, %v2006_v8  ;;  %s1725_s16 = scalar_lea.vmem %s2133_s24, 128  ;;  %p1732_p0 = scmp.lt.s32.totalorder %s2133_s24, %s1730_s13 }
  0x34   : > { %1603 = vmatpush3.bf16.msra.mxu1 %v1702_v17  ;;  %p1726_p11 = scmp.ne.s32.totalorder %s2133_s24, %s1725_s16  ;;  %p1733_p1 = scmp.lt.s32.totalorder %s1731_s21, %s1725_s16 }
  0x35   : > { %1604 = vmatprep.subr.bf16.mxu1 %v1789_v1  ;;  %v981_v48 = vcombine.low %v973_v44, %v980_v45 }
  0x36   : > { %1583 = vmatpush3.bf16.msra.mxu0 %v1701_v18  ;;  %p1727_p12 = pnand %p1726_p11, %p1883_p5  ;;  %p1734_p2 = por %p1733_p1, %p1732_p0 }
  0x37   : > { %1584 = vmatprep.subr.bf16.mxu0 %v1789_v1 }
  0x38   : > { %1605 = vmatpush3.bf16.msra.mxu1 %v1704_v19  ;;  %p1728_p13 = pneg %p1727_p12 }
  0x39   : > { %1606 = vmatprep.subr.bf16.mxu1 %v1789_v1 }
  0x3a   : > { %1585 = vmatpush3.bf16.msra.mxu0 %v1703_v21  ;;  %v1720_v21 = vld [vmem:[%s2189_s6 + $0x8] sm:$0xff]   ;;  %p1735_p3 = pnand %p1734_p2, %p1728_p13 }
  0x3b   : > { %1586 = vmatprep.subr.bf16.mxu0 %v1789_v1 }
  0x3c   : > { %1607 = vmatpush3.bf16.msra.mxu1 %v1706_v24 }
  0x3d   : > { %1608 = vmatprep.subr.bf16.mxu1 %v1789_v1 }
  0x3e   : > { %1587 = vmatpush3.bf16.msra.mxu0 %v1705_v29 }
  0x3f   : > { %1588 = vmatprep.subr.bf16.mxu0 %v1789_v1 }
  0x40   : > { %1609 = vmatpush3.bf16.msra.mxu1 %v1708_v30 }
  0x41   : > { %1610 = vmatprep.subr.bf16.mxu1 %v1789_v1 }
  0x42   : > { %1589 = vmatpush3.bf16.msra.mxu0 %v1707_v34 }
  0x43   : > { %1590 = vmatprep.subr.bf16.mxu0 %v1789_v1 }
  0x44   : > { %1611 = vmatpush3.bf16.msra.mxu1 %v1710_v35 }
  0x45   : > { %1612 = vmatprep.subr.bf16.mxu1 %v1789_v1 }
  0x46   : > { %1591 = vmatpush3.bf16.msra.mxu0 %v1709_v37 }
  0x47   : > { %1592 = vmatprep.subr.bf16.mxu0 %v1789_v1 }
  0x48   : > { %1613 = vmatpush3.bf16.msra.mxu1 %v1712_v40 }
  0x49   : > { %1614 = vmatprep.subr.bf16.mxu1 %v1789_v1 }
  0x4a   : > { %1593 = vmatpush3.bf16.msra.mxu0 %v1711_v43 }
  0x4b   : > { %1594 = vmatprep.subr.bf16.mxu0 %v1789_v1 }
  0x4c   : > { %1615 = vmatpush3.bf16.msra.mxu1 %v1714_v46 }
  0x4d   : > { %1628 = vmatprep.subr.bf16.mxu1 %v1789_v1 }
  0x4e   : > { %1595 = vmatpush3.bf16.msra.mxu0 %v1713_v47 }
  0x4f   : > { %1617 = vmatmul.mubr.bf16.vlgmr.msra.gmra.mrb[4].mxu1 %v981_v48  ;;  %1620 = vmatprep.subr.bf16.mxu0 %v1789_v1 }
  0x50   : > { %1632 = vmatprep.mubr.msk.bf16.mxu1 %vm1790_vm0, %v1789_v1  ;;  %1629 = vmatpush3.bf16.msra.mxu1 %v1719_v20 }
  0x51   : > { %1597 = vmatmul.mubr.bf16.vlgmr.msra.gmra.mrb[4].mxu0 %v759_v49  ;;  %1630 = vmatprep.subr.bf16.mxu1 %v1789_v1 }
  0x52   : > { %1624 = vmatprep.mubr.msk.bf16.mxu0 %vm1790_vm0, %v1789_v1  ;;  %1621 = vmatpush3.bf16.msra.mxu0 %v1717_v50 }
  0x53   : > { %1622 = vmatprep.subr.bf16.mxu0 %v1789_v1 }
  0x54   : > { %1631 = vmatpush3.bf16.msra.mxu1 %v1720_v21 }
  0x56   : > { %1623 = vmatpush3.bf16.msra.mxu0 %v1718_v51 }
 0x102   : > { %v710_v52 = vpop.f32.mrb[0].mxu1 }
 0x103   : > { %v1578_v53 = vpop.f32.mrb[1].mxu1 }
 0x104   : > { %v713_v54 = vpop.f32.mrb[2].mxu1  ;;  %v599_v55 = vpop.f32.mrb[0].mxu0 }
 0x105   : > { %v1579_v56 = vpop.f32.mrb[3].mxu1  ;;  %v711_v57 = vadd.f32 %v710_v52, %v599_v55  ;;  %v1558_v58 = vpop.f32.mrb[1].mxu0 }
 0x106   : > { %v602_v59 = vpop.f32.mrb[2].mxu0 }
 0x107   : > { %v714_v60 = vadd.f32 %v713_v54, %v602_v59  ;;  %v1559_v61 = vpop.f32.mrb[3].mxu0 }
 0x122   : > { %v1065_v62 = vpop.f32.mrb[4].mxu1 }
 0x123   : > { %v1618_v63 = vpop.f32.mrb[5].mxu1 }
 0x124   : > { %v1068_v0 = vpop.f32.mrb[6].mxu1  ;;  %v843_v2 = vpop.f32.mrb[4].mxu0 }
 0x125   : > { %v1619_v3 = vpop.f32.mrb[7].mxu1  ;;  %v850_v4 = vadd.f32 %v843_v2, %v711_v57  ;;  %v1598_v5 = vpop.f32.mrb[5].mxu0 }
 0x126   : > { %v846_v7 = vpop.f32.mrb[6].mxu0 }
 0x127   : > { %v1072_v8 = vadd.f32 %v1065_v62, %v850_v4  ;;  %v851_v9 = vadd.f32 %v846_v7, %v714_v60  ;;  %v1599_v10 = vpop.f32.mrb[7].mxu0 }
 0x129   : > { %v1081_v11 = vadd.f32 %v1481_v6, %v1072_v8  ;;  %v1073_v12 = vadd.f32 %v1068_v0, %v851_v9 }
 0x12b   : > { %v1083_v13 = vmax.f32 %v1081_v11, 0.0  ;;  %v1082_v14 = vadd.f32 %v1481_v6, %v1073_v12 }
 0x12d   : > { %v1084_v16 = vmax.f32 %v1082_v14, 0.0  ;;  %v1092_v17 = vadd.f32 %v1482_v15, %v1083_v13 }
 0x12f   : > { %v1093_v18 = vadd.f32 %v1482_v15, %v1084_v16 }
 0x131   : > { %v1094_v19 = vpack.c.bf16 %v1093_v18, %v1092_v17 }
 0x133   : > { %1625 = vmatmul.mubr.msk.bf16.vlgmr.msra.gmra.mrb[8].mxu0 %vm1118_vm8, %v1094_v19 }
 0x206   : > { %v1156_v23 = vpop.f32.mrb[8].mxu0 }
 0x207   : > { %v1157_v24 = vadd.f32 %v1483_v22, %v1156_v23  ;;  %v1626_v25 = vpop.f32.mrb[9].mxu0 }
 0x208   : > { %v1159_v26 = vpop.f32.mrb[10].mxu0 }
 0x209   : > { %v1163_v27 = vmax.f32 %v1157_v24, 0.0  ;;  %v1160_v28 = vadd.f32 %v1483_v22, %v1159_v26  ;;  %v1627_v29 = vpop.f32.mrb[11].mxu0 }
 0x20b   : > { %v1167_v1 = vcombine.high %v1163_v27, %v1163_v27  ;;  %v1171_v30 = vpack.c.bf16 %v1163_v27, %v1163_v27  ;;  %v1164_v31 = vmax.f32 %v1160_v28, 0.0 }
 0x20d   : > { %v1172_v32 = vpack.c.bf16 %v1167_v1, %v1167_v1  ;;  %1176 = vst.msk [vmem:[%s337_s23] sm:$0x3] %vm1175_vm9, %v1171_v30  ;;  %v1168_v33 = vcombine.high %v1164_v31, %v1164_v31  ;;  %v1173_v34 = vpack.c.bf16 %v1164_v31, %v1164_v31  ;;  %v1180_v35 = vpack.c.bf16 %v1164_v31, %v1163_v27 }
 0x20f   : > { %1177 = vst.msk [vmem:[%s337_s23 + $0x2] sm:$0x3] %vm1175_vm9, %v1172_v32  ;;  %v1174_v36 = vpack.c.bf16 %v1168_v33, %v1168_v33  ;;  %1178 = vst.msk [vmem:[%s337_s23 + $0x4] sm:$0x3] %vm1175_vm9, %v1173_v34  ;;  %1633 = vmatmul.mubr.msk.bf16.vlgmr.msra.gmra.mrb[8].mxu1 %vm1118_vm8, %v1180_v35 }
 0x211   : > { %1179 = vst.msk [vmem:[%s337_s23 + $0x6] sm:$0x3] %vm1175_vm9, %v1174_v36 }
 0x212   : > { %1738 = shalt.err (!%p1735_p3)
}
 0x213   : > { %s1739_s28 = scalar_lea.hbm %s2131_s26, 128  ;;  %s1743_s14 = scalar_lea.hbm %s2191_s8, 256 }
 0x214   : > { %p1740_p4 = scmp.ne.s32.totalorder %s2131_s26, %s1739_s28  ;;  %p1744_p9 = scmp.lt.u32.totalorder %s2131_s26, %s2191_s8 }
 0x215   : > { %p1745_p10 = scmp.lt.u32.totalorder %s1743_s14, %s1739_s28  ;;  %p1747_p12 = scmp.lt.u32.totalorder %s1739_s28, %s2131_s26 }
 0x216   : > { %p1741_p7 = pnand %p1740_p4, %p1883_p5 }
 0x217   : > { %p1746_p11 = por %p1745_p10, %p1744_p9 }
 0x218   : > { %p1742_p8 = pneg %p1741_p7 }
 0x219   : > { %p1748_p13 = por %p1747_p12, %p1746_p11 }
 0x21b   : > { %p1749_p0 = pnand %p1748_p13, %p1742_p8 }
 0x21d   : > { %1752 = shalt.err (!%p1749_p0)
}
 0x21e   : > { %s1793_s16 = smov 32   ;;  %s1794_s13 = smov 2   ;;  %v1487_v37 = vld [vmem:[%s2190_s7] ss:$0 sm:$0xff]  ;;  %vm1254_vm10 = vcmask 11264  }
 0x21f   : > { %1637 = dma.vmem_to_hbm [thread:$0]  (%p1883_p5), %s2133_s24, 128, %s2131_s26, %s2135_s27, %s1793_s16, %s1793_s16, %s1794_s13  }
 0x220   : > { %s1496_s21 = sshll.u32 %s1915_s29, 4 }
 0x221   : > { %s357_s28 = scalar_lea.vmem %s2192_s9, %s1496_s21 }
 0x2e2   : > { %v1241_v38 = vpop.f32.mrb[8].mxu1 }
 0x2e3   : > { %v1242_v39 = vadd.f32 %v1487_v37, %v1241_v38  ;;  %v1634_v40 = vpop.f32.mrb[9].mxu1 }
 0x2e4   : > { %v1244_v41 = vpop.f32.mrb[10].mxu1 }
 0x2e5   : > { %v1250_v42 = vcombine.high %v1242_v39, %v1242_v39  ;;  %1255 = vst.msk [vmem:[%s357_s28] sm:$0xf] %vm1254_vm10, %v1242_v39  ;;  %v1245_v43 = vadd.f32 %v1487_v37, %v1244_v41  ;;  %v1635_v44 = vpop.f32.mrb[11].mxu1 }
 0x2e7   : > { %1256 = vst.msk [vmem:[%s357_s28 + $0x4] sm:$0xf] %vm1254_vm10, %v1250_v42  ;;  %v1251_v45 = vcombine.high %v1245_v43, %v1245_v43  ;;  %1257 = vst.msk [vmem:[%s357_s28 + $0x8] sm:$0xf] %vm1254_vm10, %v1245_v43 }
 0x2e9   : > { %1258 = vst.msk [vmem:[%s357_s28 + $0xc] sm:$0xf] %vm1254_vm10, %v1251_v45 }
 0x2ea PF: > { %p1643_p5 = scmp.ge.s32.totalorder %s1787_s12, 2  ;;  %s1296_s19 = sand.u32 1, %s1775_s30  }
 0x2eb   : > { %s1297_s29 = scalar_lea.sflag [#allocation3], %s1296_s19 }
 0x2ec   : > { %p1640_p1 = pnand %p1643_p5, %p1887_p6 }
 0x2ee   : > { %1770 = dma.done.wait (!%p1640_p1), %s1297_s29, 128  }
 0x2ef   : > { %1772 = vsyncadd (!%p1640_p1), %s1297_s29, 4294967168  ;;  %p20_p2 = scmp.ge.s32.totalorder %s1870_s15, 4   ;;  %s2201_s30 = smov %s1779_s10 }
 0x2f0   : > { %s2202_s10 = smov %s1783_s11  ;;  %s2203_s11 = smov %s1881_s18 }
 0x2f1   : > { %s2204_s12 = smov %s1870_s15  ;;  %22 = sbr.rel (!%p20_p2) target bundleno = 3 (0x3), region = 106 }
 0x2f8   :  { %1310 = vsyncpa [#allocation3], 1 }
 0x2f9   :  { %1312 = vsyncpa [#allocation3 + $0x1], 1 }

</bundles_post_ra>
